<compile_context>
chip_gen: v7x
topology: tpu7x:2x2x1
jax: 0.10.0
libtpu: 0.0.40
codegen_flags: <defaults>
</compile_context>

<pallas_src>
import functools

import jax
import jax.numpy as jnp
from jax.experimental import pallas as pl
from jax.experimental.pallas import tpu as pltpu

_LANES = 128
_ACC_ROWS = 64                       # resident accumulator rows per slice (ILP)
_CHUNK_ROWS = 2048                   # in-kernel elementwise chunk (bounds VMEM temps)
_TILE_BYTES = 4 * 1024 * 1024        # ~4 MiB DMA block per input per buffer
_NUM_SLICES = 2                      # leading "parallel" axis -> one slice per v7x TC
_VMEM_LIMIT_BYTES = 48 * 1024 * 1024
_PALLAS_MIN_ELEMS = 256 * 1024       # below this, fused XLA beats a kernel launch
_ALIGN_ELEMS = _ACC_ROWS * _LANES    # 8192: Pallas slab is a multiple of this


def _cdiv(a: int, b: int) -> int:
    return -(-a // b)


def _make_sum_kernel(loss_type, n_inner, total_blocks, valid_tail_rows, need_tail):
    """sum(|p-t|) or sum((p-t)^2) accumulated into a (1, 64, 128) resident f32 row."""

    def accum_rows(p_ref, t_ref, acc_ref, nrows):
        # nrows is a static multiple of _ACC_ROWS. Chunked so f32 temporaries stay
        # small (~3 MiB) even with 4 MiB bf16 DMA blocks; fully unrolled statically.
        for r0 in range(0, nrows, _CHUNK_ROWS):
            r1 = min(r0 + _CHUNK_ROWS, nrows)
            d = p_ref[r0:r1, :].astype(jnp.float32) - t_ref[r0:r1, :].astype(jnp.float32)
            v = jnp.abs(d) if loss_type == "l1" else d * d
            # 64 independent accumulator rows -> wide VALU ILP; stays off the XLU.
            acc_ref[...] += jnp.sum(v.reshape(-1, _ACC_ROWS, _LANES), axis=0)[None, :, :]

    def kernel(p_ref, t_ref, acc_ref):
        c = pl.program_id(0)          # parallel slice (one per TensorCore on v7x)
        i = pl.program_id(1)          # reduction step within the slice

        @pl.when(i == 0)
        def _init():
            acc_ref[...] = jnp.zeros_like(acc_ref)

        if need_tail:
            # Invariant: the only partial block is the globally-last one; its valid
            # prefix is a static multiple of 64 rows, so the garbage rows of the
            # edge block are simply never read (no iota / mask on the hot path).
            is_tail = (c * n_inner + i) == (total_blocks - 1)

            @pl.when(jnp.logical_not(is_tail))
            def _full():
                accum_rows(p_ref, t_ref, acc_ref, p_ref.shape[0])

            @pl.when(is_tail)
            def _tail():
                accum_rows(p_ref, t_ref, acc_ref, valid_tail_rows)
        else:
            accum_rows(p_ref, t_ref, acc_ref, p_ref.shape[0])

    return kernel


@functools.partial(jax.jit, static_argnames=("loss_type",))
def _pallas_sum(pred2d, tgt2d, *, loss_type: str):
    """sum(|p - t|) or sum((p - t)^2) over a (rows, 128) slab, rows % 64 == 0."""
    rows = pred2d.shape[0]
    assert rows % _ACC_ROWS == 0 and pred2d.shape[1] == _LANES

    itemsize = max(jnp.dtype(pred2d.dtype).itemsize, jnp.dtype(tgt2d.dtype).itemsize)
    cap_rows = max(_ACC_ROWS, (_TILE_BYTES // (_LANES * itemsize)) // _ACC_ROWS * _ACC_ROWS)
    tile_rows = min(cap_rows, rows)                 # multiple of 64 by construction
    total_blocks = _cdiv(rows, tile_rows)

    # Prefer an even block count so the 2 parallel slices tile the slab exactly
    # (no clamped / duplicated trailing block -> no wasted HBM traffic).
    if total_blocks > 1 and total_blocks % _NUM_SLICES != 0:
        half = max(_ACC_ROWS, (tile_rows // 2) // _ACC_ROWS * _ACC_ROWS)
        if _cdiv(rows, half) % _NUM_SLICES == 0:
            tile_rows = half
            total_blocks = _cdiv(rows, half)

    num_slices = _NUM_SLICES if total_blocks % _NUM_SLICES == 0 else 1
    n_inner = total_blocks // num_slices
    valid_tail_rows = rows - (total_blocks - 1) * tile_rows   # multiple of 64
    need_tail = valid_tail_rows != tile_rows

    in_spec = pl.BlockSpec((tile_rows, _LANES), lambda c, i: (c * n_inner + i, 0))

    acc = pl.pallas_call(
        _make_sum_kernel(loss_type, n_inner, total_blocks, valid_tail_rows, need_tail),
        out_shape=jax.ShapeDtypeStruct((num_slices, _ACC_ROWS, _LANES), jnp.float32),
        grid_spec=pltpu.PrefetchScalarGridSpec(
            num_scalar_prefetch=0,
            grid=(num_slices, n_inner),
            in_specs=[in_spec, in_spec],
            out_specs=pl.BlockSpec((1, _ACC_ROWS, _LANES), lambda c, i: (c, 0, 0)),
        ),
        compiler_params=pltpu.CompilerParams(
            dimension_semantics=("parallel", "arbitrary"),
            vmem_limit_bytes=_VMEM_LIMIT_BYTES,
        ),
    )(pred2d, tgt2d)

    # Single cheap cross-lane reduce of the (num_slices, 64, 128) partials.
    return jnp.sum(acc)


def _xla_term(pred, tgt, loss_type):
    d = pred.astype(jnp.float32) - tgt.astype(jnp.float32)
    return jnp.mean(jnp.abs(d)) if loss_type == "l1" else jnp.mean(d * d)


def _loss_term(pred, tgt, loss_type):
    count = int(pred.size)
    same_shape = pred.shape == tgt.shape
    pallas_dtype = (pred.dtype == tgt.dtype) and pred.dtype in (jnp.float32, jnp.bfloat16)
    if not (same_shape and pallas_dtype and count >= _PALLAS_MIN_ELEMS):
        return _xla_term(pred, tgt, loss_type)

    flat_p = pred.reshape(-1)
    flat_t = tgt.reshape(-1)
    bulk = (count // _ALIGN_ELEMS) * _ALIGN_ELEMS   # multiple of 64*128
    if bulk == count:
        p2d = flat_p.reshape(-1, _LANES)            # free reshape, no HBM copy
        t2d = flat_t.reshape(-1, _LANES)
        tail = jnp.float32(0.0)
    else:
        # TODO(synk): the prefix slice copies `bulk` elements in HBM; a manual-DMA
        # (memory_space=pl.ANY) variant could read the ragged slab fully in place.
        p2d = flat_p[:bulk].reshape(-1, _LANES)
        t2d = flat_t[:bulk].reshape(-1, _LANES)
        dtail = flat_p[bulk:].astype(jnp.float32) - flat_t[bulk:].astype(jnp.float32)
        tail = jnp.sum(jnp.abs(dtail) if loss_type == "l1" else dtail * dtail)

    s = _pallas_sum(p2d, t2d, loss_type=loss_type) + tail
    return s / jnp.float32(count)


def head_pose_matching_loss(pred_thetas, target_thetas, loss_type: str = "l2"):
    """JAX/Pallas equivalent of HeadPoseMatchingLoss.forward.

    Accepts a single array or a list of arrays (matching PyTorch semantics).
    Returns a scalar f32 loss.
    """
    if not isinstance(pred_thetas, (list, tuple)):
        pred_thetas = [pred_thetas]
        target_thetas = [target_thetas]

    loss = jnp.float32(0.0)
    for pred, tgt in zip(pred_thetas, target_thetas):
        if loss_type not in ("l1", "l2"):
            continue  # mirrors PyTorch: unknown loss_type adds nothing
        loss = loss + _loss_term(pred, tgt, loss_type)
    return loss


def _reference_loss(pred_thetas, target_thetas, loss_type="l2"):
    if not isinstance(pred_thetas, (list, tuple)):
        pred_thetas = [pred_thetas]
        target_thetas = [target_thetas]
    loss = jnp.float32(0.0)
    for p, t in zip(pred_thetas, target_thetas):
        d = p.astype(jnp.float32) - t.astype(jnp.float32)
        loss = loss + (jnp.abs(d).mean() if loss_type == "l1" else (d * d).mean())
    return loss


if __name__ == "__main__":
    key = jax.random.PRNGKey(0)
    k1, k2, k3, k4, k5, k6 = jax.random.split(key, 6)

    # Small, realistic head-pose theta batch: (batch=2, 3, 4) -> XLA fallback path.
    pred_small = jax.random.normal(k1, (2, 3, 4), dtype=jnp.float32)
    tgt_small = jax.random.normal(k2, (2, 3, 4), dtype=jnp.float32)
    out_small = jax.block_until_ready(
        head_pose_matching_loss(pred_small, tgt_small, loss_type="l2"))
    ref_small = _reference_loss(pred_small, tgt_small, "l2")
    assert jnp.allclose(out_small, ref_small, rtol=1e-5, atol=1e-6), (out_small, ref_small)

    # f32 batch, size aligned to 64*128 -> Pallas path: zero-copy reshape, single
    # full block, single slice, no tail branch.
    pred_f32 = jax.random.normal(k3, (32768, 3, 4), dtype=jnp.float32)
    tgt_f32 = jax.random.normal(k4, (32768, 3, 4), dtype=jnp.float32)
    out_f32 = jax.block_until_ready(
        head_pose_matching_loss(pred_f32, tgt_f32, loss_type="l2"))
    ref_f32 = _reference_loss(pred_f32, tgt_f32, "l2")
    assert jnp.allclose(out_f32, ref_f32, rtol=1e-4, atol=1e-6), (out_f32, ref_f32)

    # bf16 batch, ragged size -> Pallas path with dtype-aware 16384-row (4 MiB)
    # blocks, 2 parallel slices (one per v7x TensorCore), gated partial tail block,
    # plus the small XLA tail for the unaligned remainder.
    pred_bf16 = jax.random.normal(k5, (180000, 3, 4), dtype=jnp.bfloat16)
    tgt_bf16 = jax.random.normal(k6, (180000, 3, 4), dtype=jnp.bfloat16)
    out_bf16 = jax.block_until_ready(
        head_pose_matching_loss(pred_bf16, tgt_bf16, loss_type="l2"))
    ref_bf16 = _reference_loss(pred_bf16, tgt_bf16, "l2")
    assert jnp.allclose(out_bf16, ref_bf16, rtol=1e-3, atol=1e-5), (out_bf16, ref_bf16)

    # List case mixing shapes/dtypes + l1 variant (one fallback term, one Pallas term).
    out_l1 = jax.block_until_ready(
        head_pose_matching_loss([pred_small, pred_bf16], [tgt_small, tgt_bf16],
                                loss_type="l1"))
    ref_l1 = _reference_loss([pred_small, pred_bf16], [tgt_small, tgt_bf16], "l1")
    assert jnp.allclose(out_l1, ref_l1, rtol=1e-3, atol=1e-5), (out_l1, ref_l1)

    print("KERNEL_OK")
</pallas_src>

<mosaic_0001>
module attributes {stable_mosaic.version = 11 : i64} {
  func.func @kernel(%arg0: i32, %arg1: i32, %arg2: memref<3072x128xf32, #tpu.memory_space<vmem>>, %arg3: memref<3072x128xf32, #tpu.memory_space<vmem>>, %arg4: memref<1x64x128xf32, #tpu.memory_space<vmem>>) attributes {dimension_semantics = [#tpu.dimension_semantics<parallel>, #tpu.dimension_semantics<arbitrary>], iteration_bounds = array<i64: 1, 1>, scalar_prefetch = 0 : i64, scratch_operands = 0 : i64, tpu.core_type = #tpu.core_type<tc>, window_params = [{transform_indices = @transform_0, window_bounds = array<i64: 3072, 128>}, {transform_indices = @transform_1, window_bounds = array<i64: 3072, 128>}, {transform_indices = @transform_2, window_bounds = array<i64: 1, 64, 128>}]} {
    %c0_i32 = arith.constant 0 : i32
    %0 = arith.cmpi eq, %arg1, %c0_i32 : i32
    %1 = arith.extui %0 : i1 to i32
    %c0_i32_0 = arith.constant 0 : i32
    %2 = arith.cmpi ne, %1, %c0_i32_0 : i32
    scf.if %2 {
      %cst_20 = arith.constant 0.000000e+00 : f32
      %23 = vector.broadcast %cst_20 : f32 to vector<1x64x128xf32>
      %c0_21 = arith.constant 0 : index
      %c0_22 = arith.constant 0 : index
      %c0_23 = arith.constant 0 : index
      %24 = vector.load %arg4[%c0_21, %c0_22, %c0_23] : memref<1x64x128xf32, #tpu.memory_space<vmem>>, vector<1x64x128xf32>
      tpu.vector_store %arg4[%c0_21, %c0_22, %c0_23], %23 {strides = array<i32>} : memref<1x64x128xf32, #tpu.memory_space<vmem>>, vector<1x64x128xf32>,
    } else {
    }
    %c0 = arith.constant 0 : index
    %c0_1 = arith.constant 0 : index
    %3 = vector.load %arg2[%c0, %c0_1] : memref<3072x128xf32, #tpu.memory_space<vmem>>, vector<2048x128xf32>
    %c0_2 = arith.constant 0 : index
    %c0_3 = arith.constant 0 : index
    %4 = vector.load %arg3[%c0_2, %c0_3] : memref<3072x128xf32, #tpu.memory_space<vmem>>, vector<2048x128xf32>
    %5 = arith.subf %3, %4 : vector<2048x128xf32>
    %6 = arith.mulf %5, %5 : vector<2048x128xf32>
    %c0_4 = arith.constant 0 : index
    %c0_5 = arith.constant 0 : index
    %c0_6 = arith.constant 0 : index
    %7 = vector.load %arg4[%c0_4, %c0_5, %c0_6] : memref<1x64x128xf32, #tpu.memory_space<vmem>>, vector<1x64x128xf32>
    %8 = vector.shape_cast %6 : vector<2048x128xf32> to vector<32x64x128xf32>
    %cst = arith.constant dense<0.000000e+00> : vector<64x128xf32>
    %9 = vector.multi_reduction <add>, %8, %cst [0] : vector<32x64x128xf32> to vector<64x128xf32>
    %10 = vector.shape_cast %9 : vector<64x128xf32> to vector<1x64x128xf32>
    %11 = arith.addf %7, %10 : vector<1x64x128xf32>
    %c0_7 = arith.constant 0 : index
    %c0_8 = arith.constant 0 : index
    %c0_9 = arith.constant 0 : index
    %12 = vector.load %arg4[%c0_7, %c0_8, %c0_9] : memref<1x64x128xf32, #tpu.memory_space<vmem>>, vector<1x64x128xf32>
    tpu.vector_store %arg4[%c0_7, %c0_8, %c0_9], %11 {strides = array<i32>} : memref<1x64x128xf32, #tpu.memory_space<vmem>>, vector<1x64x128xf32>,
    %c2048 = arith.constant 2048 : index
    %c0_10 = arith.constant 0 : index
    %13 = vector.load %arg2[%c2048, %c0_10] : memref<3072x128xf32, #tpu.memory_space<vmem>>, vector<1024x128xf32>
    %c2048_11 = arith.constant 2048 : index
    %c0_12 = arith.constant 0 : index
    %14 = vector.load %arg3[%c2048_11, %c0_12] : memref<3072x128xf32, #tpu.memory_space<vmem>>, vector<1024x128xf32>
    %15 = arith.subf %13, %14 : vector<1024x128xf32>
    %16 = arith.mulf %15, %15 : vector<1024x128xf32>
    %c0_13 = arith.constant 0 : index
    %c0_14 = arith.constant 0 : index
    %c0_15 = arith.constant 0 : index
    %17 = vector.load %arg4[%c0_13, %c0_14, %c0_15] : memref<1x64x128xf32, #tpu.memory_space<vmem>>, vector<1x64x128xf32>
    %18 = vector.shape_cast %16 : vector<1024x128xf32> to vector<16x64x128xf32>
    %cst_16 = arith.constant dense<0.000000e+00> : vector<64x128xf32>
    %19 = vector.multi_reduction <add>, %18, %cst_16 [0] : vector<16x64x128xf32> to vector<64x128xf32>
    %20 = vector.shape_cast %19 : vector<64x128xf32> to vector<1x64x128xf32>
    %21 = arith.addf %17, %20 : vector<1x64x128xf32>
    %c0_17 = arith.constant 0 : index
    %c0_18 = arith.constant 0 : index
    %c0_19 = arith.constant 0 : index
    %22 = vector.load %arg4[%c0_17, %c0_18, %c0_19] : memref<1x64x128xf32, #tpu.memory_space<vmem>>, vector<1x64x128xf32>
    tpu.vector_store %arg4[%c0_17, %c0_18, %c0_19], %21 {strides = array<i32>} : memref<1x64x128xf32, #tpu.memory_space<vmem>>, vector<1x64x128xf32>,
    return
  }
  func.func @transform_0(%arg0: i32, %arg1: i32) -> (i32, i32) {
    %c1_i32 = arith.constant 1 : i32
    %0 = arith.muli %arg0, %c1_i32 : i32
    %1 = arith.addi %0, %arg1 : i32
    %c0_i32 = arith.constant 0 : i32
    %c0_i32_0 = arith.constant 0 : i32
    return %1, %c0_i32 : i32, i32
  }
  func.func @transform_1(%arg0: i32, %arg1: i32) -> (i32, i32) {
    %c1_i32 = arith.constant 1 : i32
    %0 = arith.muli %arg0, %c1_i32 : i32
    %1 = arith.addi %0, %arg1 : i32
    %c0_i32 = arith.constant 0 : i32
    %c0_i32_0 = arith.constant 0 : i32
    return %1, %c0_i32 : i32, i32
  }
  func.func @transform_2(%arg0: i32, %arg1: i32) -> (i32, i32, i32) {
    %c0_i32 = arith.constant 0 : i32
    %c0_i32_0 = arith.constant 0 : i32
    %c0_i32_1 = arith.constant 0 : i32
    return %arg0, %c0_i32, %c0_i32_0 : i32, i32, i32
  }
}

</mosaic_0001>

<bundles_post_ra>
// kernel: _pallas_sum.1
= control target key start
LH: loop header
LB: loop body
LE: loop exit
PB: predicated region body
PF: predicated region fallthrough
CT: control target
= control target key end

     0   :  { %7 = vsyncpa [#allocation3], 0  ;;  %s5353_s0 = inlined_call_operand.hbm [shape: f32[3072,128], index: 0, kind: input, shape index: {}]   ;;  %s5354_s1 = inlined_call_operand.hbm [shape: f32[3072,128], index: 1, kind: input, shape index: {}]   ;;  %s5355_s2 = inlined_call_operand.vmem [shape: f32[1,64,128], index: 2, kind: output, shape index: {}]  }
   0x1   :  { %8 = vsyncpa [#allocation5], 0  ;;  %s2074_s9 = smov [#allocation2]   ;;  %s2026_s13 = scalar_lea.hbm %s5353_s0, 49152 }
   0x2   :  { %s18_s10 = sshll.u32 %s2074_s9, 4  ;;  %p2027_p0 = scmp.ne.s32.totalorder %s5353_s0, %s2026_s13  ;;  %s19_s10 = int_to_ptr.vmem [resolvable:$true] %s18_s10 }
   0x3   :  { %p2030_p1 = scmp.lt.u32.totalorder %s2026_s13, %s5353_s0 }
   0x5   :  { %p2032_p2 = pnand %p2030_p1, %p2027_p0 }
   0x7   :  { %2035 = shalt.err (!%p2032_p2)
}
   0x8   :  { %s2036_s18 = scalar_lea.vmem %s19_s10, 49152  ;;  %p2041_p4 = scmp.lt.s32.totalorder %s19_s10, %s19_s10 }
   0x9   :  { %p2037_p3 = scmp.ne.s32.totalorder %s19_s10, %s2036_s18  ;;  %p2042_p5 = scmp.lt.s32.totalorder %s2036_s18, %s2036_s18 }
   0xb   :  { %p2043_p6 = por %p2042_p5, %p2041_p4 }
   0xd   :  { %p2044_p7 = pnand %p2043_p6, %p2037_p3 }
   0xf   :  { %2047 = shalt.err (!%p2044_p7)
}
  0x10   :  { %s2075_s19 = smov 128   ;;  %s2076_s20 = smov 8  }
  0x11   :  { %24 = dma.hbm_to_vmem [thread:$0]  %s5353_s0, 49152, %s19_s10, [#allocation3], %s2075_s19, %s2075_s19, %s2076_s20  }
  0x12   :  { %s2077_s23 = smov [#allocation4]   ;;  %s2048_s27 = scalar_lea.hbm %s5354_s1, 49152 }
  0x13   :  { %s34_s24 = sshll.u32 %s2077_s23, 4  ;;  %p2049_p8 = scmp.ne.s32.totalorder %s5354_s1, %s2048_s27  ;;  %s35_s24 = int_to_ptr.vmem [resolvable:$true] %s34_s24 }
  0x14   :  { %p2052_p9 = scmp.lt.u32.totalorder %s2048_s27, %s5354_s1 }
  0x16   :  { %p2054_p10 = pnand %p2052_p9, %p2049_p8 }
  0x18   :  { %2057 = shalt.err (!%p2054_p10)
}
  0x19   :  { %s2058_s4 = scalar_lea.vmem %s35_s24, 49152  ;;  %p2063_p12 = scmp.lt.s32.totalorder %s35_s24, %s35_s24 }
  0x1a   :  { %p2059_p11 = scmp.ne.s32.totalorder %s35_s24, %s2058_s4  ;;  %p2064_p13 = scmp.lt.s32.totalorder %s2058_s4, %s2058_s4 }
  0x1c   :  { %p2065_p0 = por %p2064_p13, %p2063_p12 }
  0x1e   :  { %p2066_p1 = pnand %p2065_p0, %p2059_p11 }
  0x20   :  { %2069 = shalt.err (!%p2066_p1)
}
  0x21   :  { %40 = dma.hbm_to_vmem [thread:$0]  %s5354_s1, 49152, %s35_s24, [#allocation5], %s2075_s19, %s2075_s19, %s2076_s20  }
  0x22   :  { %2070 = dma.done.wait [#allocation3], 49152  }
  0x23   :  { %2071 = vsyncadd [#allocation3], 4294918144 }
  0x24   :  { %2072 = dma.done.wait [#allocation5], 49152  }
  0x25   :  { %2073 = vsyncadd [#allocation5], 4294918144  ;;  %v63_v0 = vld [vmem:[#allocation2] sm:$0xff]  ;;  %v64_v1 = vld [vmem:[#allocation2 + $0x8] sm:$0xff] }
  0x26   :  { %v65_v2 = vld [vmem:[#allocation2 + $0x10] sm:$0xff]  ;;  %v66_v3 = vld [vmem:[#allocation2 + $0x18] sm:$0xff]  ;;  %v67_v4 = vld [vmem:[#allocation2 + $0x20] sm:$0xff] }
  0x27   :  { %v68_v5 = vld [vmem:[#allocation2 + $0x28] sm:$0xff]  ;;  %v69_v6 = vld [vmem:[#allocation2 + $0x30] sm:$0xff]  ;;  %v70_v7 = vld [vmem:[#allocation2 + $0x38] sm:$0xff] }
  0x28   :  { %v71_v8 = vld [vmem:[#allocation2 + $0x40] sm:$0xff]  ;;  %v72_v9 = vld [vmem:[#allocation2 + $0x48] sm:$0xff]  ;;  %v73_v10 = vld [vmem:[#allocation2 + $0x50] sm:$0xff] }
  0x29   :  { %v74_v11 = vld [vmem:[#allocation2 + $0x58] sm:$0xff]  ;;  %v75_v12 = vld [vmem:[#allocation2 + $0x60] sm:$0xff]  ;;  %v76_v13 = vld [vmem:[#allocation2 + $0x68] sm:$0xff] }
  0x2a   :  { %v319_v14 = vld [vmem:[#allocation4] sm:$0xff]  ;;  %v320_v15 = vld [vmem:[#allocation4 + $0x8] sm:$0xff]  ;;  %v77_v16 = vld [vmem:[#allocation2 + $0x70] sm:$0xff] }
  0x2b   :  { %v78_v17 = vld [vmem:[#allocation2 + $0x78] sm:$0xff]  ;;  %v79_v18 = vld [vmem:[#allocation2 + $0x80] sm:$0xff]  ;;  %v321_v19 = vld [vmem:[#allocation4 + $0x10] sm:$0xff]  ;;  %v575_v22 = vsub.f32 %v63_v0, %v319_v14  ;;  %v576_v23 = vsub.f32 %v64_v1, %v320_v15 }
  0x2c   :  { %v322_v20 = vld [vmem:[#allocation4 + $0x18] sm:$0xff]  ;;  %v323_v21 = vld [vmem:[#allocation4 + $0x20] sm:$0xff]  ;;  %v80_v24 = vld [vmem:[#allocation2 + $0x88] sm:$0xff]  ;;  %v577_v30 = vsub.f32 %v65_v2, %v321_v19 }
  0x2d   :  { %v81_v25 = vld [vmem:[#allocation2 + $0x90] sm:$0xff]  ;;  %v82_v26 = vld [vmem:[#allocation2 + $0x98] sm:$0xff]  ;;  %v324_v27 = vld [vmem:[#allocation4 + $0x28] sm:$0xff]  ;;  %v578_v31 = vsub.f32 %v66_v3, %v322_v20  ;;  %v579_v32 = vsub.f32 %v67_v4, %v323_v21  ;;  %v2119_v42 = vmul.f32 %v575_v22, %v575_v22  ;;  %v2127_v52 = vmul.f32 %v576_v23, %v576_v23 }
  0x2e   :  { %v325_v28 = vld [vmem:[#allocation4 + $0x30] sm:$0xff]  ;;  %v326_v29 = vld [vmem:[#allocation4 + $0x38] sm:$0xff]  ;;  %v83_v33 = vld [vmem:[#allocation2 + $0xa0] sm:$0xff]  ;;  %v580_v39 = vsub.f32 %v68_v5, %v324_v27  ;;  %v2135_v62 = vmul.f32 %v577_v30, %v577_v30 }
  0x2f   :  { %v84_v34 = vld [vmem:[#allocation2 + $0xa8] sm:$0xff]  ;;  %v85_v35 = vld [vmem:[#allocation2 + $0xb0] sm:$0xff]  ;;  %v327_v36 = vld [vmem:[#allocation4 + $0x40] sm:$0xff]  ;;  %v581_v40 = vsub.f32 %v69_v6, %v325_v28  ;;  %v2117_v41 = vsub.f32 %v70_v7, %v326_v29  ;;  %5356 = vst [vmem:[#allocation8_spill] sm:$0xff] %v2119_v42 }
  0x30   :  { %v328_v37 = vld [vmem:[#allocation4 + $0x48] sm:$0xff]  ;;  %v329_v38 = vld [vmem:[#allocation4 + $0x50] sm:$0xff]  ;;  %v86_v43 = vld [vmem:[#allocation2 + $0xb8] sm:$0xff]  ;;  %v2121_v49 = vsub.f32 %v71_v8, %v327_v36  ;;  %5357 = vst [vmem:[#allocation9_spill] sm:$0xff] %v2127_v52  ;;  %v2143_v8 = vmul.f32 %v578_v31, %v578_v31 }
  0x31   :  { %v87_v44 = vld [vmem:[#allocation2 + $0xc0] sm:$0xff]  ;;  %v88_v45 = vld [vmem:[#allocation2 + $0xc8] sm:$0xff]  ;;  %v330_v46 = vld [vmem:[#allocation4 + $0x58] sm:$0xff]  ;;  %v2123_v50 = vsub.f32 %v72_v9, %v328_v37  ;;  %v2125_v51 = vsub.f32 %v73_v10, %v329_v38  ;;  %5358 = vst [vmem:[#allocation10_spill] sm:$0xff] %v2135_v62 }
  0x32   :  { %v331_v47 = vld [vmem:[#allocation4 + $0x60] sm:$0xff]  ;;  %v332_v48 = vld [vmem:[#allocation4 + $0x68] sm:$0xff]  ;;  %v89_v53 = vld [vmem:[#allocation2 + $0xd0] sm:$0xff]  ;;  %v2129_v59 = vsub.f32 %v74_v11, %v330_v46  ;;  %5359 = vst [vmem:[#allocation11_spill] sm:$0xff] %v2143_v8 }
  0x33   :  { %v90_v54 = vld [vmem:[#allocation2 + $0xd8] sm:$0xff]  ;;  %v91_v55 = vld [vmem:[#allocation2 + $0xe0] sm:$0xff]  ;;  %v333_v56 = vld [vmem:[#allocation4 + $0x70] sm:$0xff]  ;;  %v2131_v60 = vsub.f32 %v75_v12, %v331_v47  ;;  %v2133_v61 = vsub.f32 %v76_v13, %v332_v48 }
  0x34   :  { %v334_v57 = vld [vmem:[#allocation4 + $0x78] sm:$0xff]  ;;  %v335_v58 = vld [vmem:[#allocation4 + $0x80] sm:$0xff]  ;;  %v92_v63 = vld [vmem:[#allocation2 + $0xe8] sm:$0xff]  ;;  %v2137_v5 = vsub.f32 %v77_v16, %v333_v56  ;;  %v2151_v16 = vmul.f32 %v579_v32, %v579_v32 }
  0x35   :  { %v93_v0 = vld [vmem:[#allocation2 + $0xf0] sm:$0xff]  ;;  %v94_v1 = vld [vmem:[#allocation2 + $0xf8] sm:$0xff]  ;;  %v336_v2 = vld [vmem:[#allocation4 + $0x88] sm:$0xff]  ;;  %v2139_v6 = vsub.f32 %v78_v17, %v334_v57  ;;  %v2141_v7 = vsub.f32 %v79_v18, %v335_v58 }
  0x36   :  { %v337_v3 = vld [vmem:[#allocation4 + $0x90] sm:$0xff]  ;;  %v338_v4 = vld [vmem:[#allocation4 + $0x98] sm:$0xff]  ;;  %v95_v9 = vld [vmem:[#allocation2 + $0x100] sm:$0xff]  ;;  %v2145_v15 = vsub.f32 %v80_v24, %v336_v2  ;;  %5360 = vst [vmem:[#allocation12_spill] sm:$0xff] %v2151_v16  ;;  %v2159_v24 = vmul.f32 %v580_v39, %v580_v39 }
  0x37   :  { %v96_v10 = vld [vmem:[#allocation2 + $0x108] sm:$0xff]  ;;  %v97_v11 = vld [vmem:[#allocation2 + $0x110] sm:$0xff]  ;;  %v339_v12 = vld [vmem:[#allocation4 + $0xa0] sm:$0xff]  ;;  %v2147_v19 = vsub.f32 %v81_v25, %v337_v3  ;;  %v2149_v20 = vsub.f32 %v82_v26, %v338_v4 }
  0x38   :  { %v340_v13 = vld [vmem:[#allocation4 + $0xa8] sm:$0xff]  ;;  %v341_v14 = vld [vmem:[#allocation4 + $0xb0] sm:$0xff]  ;;  %v98_v17 = vld [vmem:[#allocation2 + $0x118] sm:$0xff]  ;;  %v2153_v28 = vsub.f32 %v83_v33, %v339_v12  ;;  %5361 = vst [vmem:[#allocation13_spill] sm:$0xff] %v2159_v24  ;;  %v2167_v33 = vmul.f32 %v581_v40, %v581_v40 }
  0x39   :  { %v99_v21 = vld [vmem:[#allocation2 + $0x120] sm:$0xff]  ;;  %v100_v18 = vld [vmem:[#allocation2 + $0x128] sm:$0xff]  ;;  %v342_v22 = vld [vmem:[#allocation4 + $0xb8] sm:$0xff]  ;;  %v2155_v29 = vsub.f32 %v84_v34, %v340_v13  ;;  %v2157_v30 = vsub.f32 %v85_v35, %v341_v14 }
  0x3a   :  { %v343_v23 = vld [vmem:[#allocation4 + $0xc0] sm:$0xff]  ;;  %v344_v27 = vld [vmem:[#allocation4 + $0xc8] sm:$0xff]  ;;  %v101_v25 = vld [vmem:[#allocation2 + $0x130] sm:$0xff]  ;;  %v2161_v38 = vsub.f32 %v86_v43, %v342_v22  ;;  %5362 = vst [vmem:[#allocation14_spill] sm:$0xff] %v2167_v33  ;;  %v2177_v43 = vmul.f32 %v2117_v41, %v2117_v41 }
  0x3b   :  { %v102_v31 = vld [vmem:[#allocation2 + $0x138] sm:$0xff]  ;;  %v103_v26 = vld [vmem:[#allocation2 + $0x140] sm:$0xff]  ;;  %v345_v36 = vld [vmem:[#allocation4 + $0xd0] sm:$0xff]  ;;  %v2163_v46 = vsub.f32 %v87_v44, %v343_v23  ;;  %v2165_v47 = vsub.f32 %v88_v45, %v344_v27 }
  0x3c   :  { %v346_v32 = vld [vmem:[#allocation4 + $0xd8] sm:$0xff]  ;;  %v347_v37 = vld [vmem:[#allocation4 + $0xe0] sm:$0xff]  ;;  %v104_v34 = vld [vmem:[#allocation2 + $0x148] sm:$0xff]  ;;  %v2169_v58 = vsub.f32 %v89_v53, %v345_v36  ;;  %5363 = vst [vmem:[#allocation15_spill] sm:$0xff] %v2177_v43 }
  0x3d   :  { %v105_v48 = vld [vmem:[#allocation2 + $0x150] sm:$0xff]  ;;  %v106_v35 = vld [vmem:[#allocation2 + $0x158] sm:$0xff]  ;;  %v348_v56 = vld [vmem:[#allocation4 + $0xe8] sm:$0xff]  ;;  %v2171_v2 = vsub.f32 %v90_v54, %v346_v32  ;;  %v2173_v3 = vsub.f32 %v91_v55, %v347_v37  ;;  %v2187_v54 = vmul.f32 %v2121_v49, %v2121_v49 }
  0x3e   :  { %v349_v39 = vld [vmem:[#allocation4 + $0xf0] sm:$0xff]  ;;  %v350_v57 = vld [vmem:[#allocation4 + $0xf8] sm:$0xff]  ;;  %v107_v44 = vld [vmem:[#allocation2 + $0x160] sm:$0xff]  ;;  %v2179_v14 = vsub.f32 %v92_v63, %v348_v56 }
  0x3f   :  { %v108_v45 = vld [vmem:[#allocation2 + $0x168] sm:$0xff]  ;;  %v109_v40 = vld [vmem:[#allocation2 + $0x170] sm:$0xff]  ;;  %v351_v4 = vld [vmem:[#allocation4 + $0x100] sm:$0xff]  ;;  %v2181_v22 = vsub.f32 %v93_v0, %v349_v39  ;;  %v2183_v53 = vsub.f32 %v94_v1, %v350_v57  ;;  %5364 = vst [vmem:[#allocation16_spill] sm:$0xff] %v2187_v54  ;;  %v2197_v0 = vmul.f32 %v2123_v50, %v2123_v50 }
  0x40   :  { %v352_v12 = vld [vmem:[#allocation4 + $0x108] sm:$0xff]  ;;  %v353_v13 = vld [vmem:[#allocation4 + $0x110] sm:$0xff]  ;;  %v110_v55 = vld [vmem:[#allocation2 + $0x178] sm:$0xff]  ;;  %v2189_v37 = vsub.f32 %v95_v9, %v351_v4 }
  0x41   :  { %v111_v23 = vld [vmem:[#allocation2 + $0x180] sm:$0xff]  ;;  %v112_v41 = vld [vmem:[#allocation2 + $0x188] sm:$0xff]  ;;  %v354_v27 = vld [vmem:[#allocation4 + $0x118] sm:$0xff]  ;;  %v2191_v43 = vsub.f32 %v96_v10, %v352_v12  ;;  %v2193_v63 = vsub.f32 %v97_v11, %v353_v13  ;;  %5365 = vst [vmem:[#allocation17_spill] sm:$0xff] %v2197_v0  ;;  %v2207_v10 = vmul.f32 %v2125_v51, %v2125_v51 }
  0x42   :  { %v355_v36 = vld [vmem:[#allocation4 + $0x120] sm:$0xff]  ;;  %v356_v32 = vld [vmem:[#allocation4 + $0x128] sm:$0xff]  ;;  %v113_v1 = vld [vmem:[#allocation2 + $0x190] sm:$0xff]  ;;  %v2199_v24 = vsub.f32 %v98_v17, %v354_v27 }
  0x43   :  { %v114_v56 = vld [vmem:[#allocation2 + $0x198] sm:$0xff]  ;;  %v115_v49 = vld [vmem:[#allocation2 + $0x1a0] sm:$0xff]  ;;  %v357_v39 = vld [vmem:[#allocation4 + $0x130] sm:$0xff]  ;;  %v2201_v16 = vsub.f32 %v99_v21, %v355_v36  ;;  %v2203_v9 = vsub.f32 %v100_v18, %v356_v32  ;;  %5366 = vst [vmem:[#allocation18_spill] sm:$0xff] %v2207_v10  ;;  %v2217_v21 = vmul.f32 %v2129_v59, %v2129_v59 }
  0x44   :  { %v358_v57 = vld [vmem:[#allocation4 + $0x138] sm:$0xff]  ;;  %v359_v33 = vld [vmem:[#allocation4 + $0x140] sm:$0xff]  ;;  %v116_v11 = vld [vmem:[#allocation2 + $0x1a8] sm:$0xff]  ;;  %v2209_v62 = vsub.f32 %v101_v25, %v357_v39 }
  0x45   :  { %v117_v4 = vld [vmem:[#allocation2 + $0x1b0] sm:$0xff]  ;;  %v118_v50 = vld [vmem:[#allocation2 + $0x1b8] sm:$0xff]  ;;  %v360_v12 = vld [vmem:[#allocation4 + $0x148] sm:$0xff]  ;;  %v2211_v0 = vsub.f32 %v102_v31, %v358_v57  ;;  %v2213_v17 = vsub.f32 %v103_v26, %v359_v33  ;;  %5368 = vst [vmem:[#allocation20_spill] sm:$0xff] %v2217_v21  ;;  %v2227_v31 = vmul.f32 %v2131_v60, %v2131_v60 }
  0x46   :  { %v361_v13 = vld [vmem:[#allocation4 + $0x150] sm:$0xff]  ;;  %v362_v8 = vld [vmem:[#allocation4 + $0x158] sm:$0xff]  ;;  %v119_v18 = vld [vmem:[#allocation2 + $0x1c0] sm:$0xff]  ;;  %v2219_v52 = vsub.f32 %v104_v34, %v360_v12 }
  0x47   :  { %5367 = vst [vmem:[#allocation19_spill] sm:$0xff] %v2213_v17  ;;  %v120_v27 = vld [vmem:[#allocation2 + $0x1c8] sm:$0xff]  ;;  %v121_v51 = vld [vmem:[#allocation2 + $0x1d0] sm:$0xff]  ;;  %v363_v36 = vld [vmem:[#allocation4 + $0x160] sm:$0xff]  ;;  %v2221_v54 = vsub.f32 %v105_v48, %v361_v13  ;;  %v2223_v25 = vsub.f32 %v106_v35, %v362_v8  ;;  %v2237_v8 = vmul.f32 %v2133_v61, %v2133_v61 }
  0x48   :  { %v364_v32 = vld [vmem:[#allocation4 + $0x168] sm:$0xff]  ;;  %v365_v10 = vld [vmem:[#allocation4 + $0x170] sm:$0xff]  ;;  %5371 = vst [vmem:[#allocation23_spill] sm:$0xff] %v2227_v31  ;;  %v122_v26 = vld [vmem:[#allocation2 + $0x1d8] sm:$0xff]  ;;  %v2229_v42 = vsub.f32 %v107_v44, %v363_v36 }
  0x49   :  { %5369 = vst [vmem:[#allocation21_spill] sm:$0xff] %v2221_v54  ;;  %5370 = vst [vmem:[#allocation22_spill] sm:$0xff] %v2223_v25  ;;  %v123_v33 = vld [vmem:[#allocation2 + $0x1e0] sm:$0xff]  ;;  %v124_v59 = vld [vmem:[#allocation2 + $0x1e8] sm:$0xff]  ;;  %v2231_v17 = vsub.f32 %v108_v45, %v364_v32  ;;  %v2233_v34 = vsub.f32 %v109_v40, %v365_v10  ;;  %v2247_v45 = vmul.f32 %v2137_v5, %v2137_v5 }
  0x4a   :  { %v366_v39 = vld [vmem:[#allocation4 + $0x178] sm:$0xff]  ;;  %v367_v57 = vld [vmem:[#allocation4 + $0x180] sm:$0xff]  ;;  %v368_v21 = vld [vmem:[#allocation4 + $0x188] sm:$0xff]  ;;  %5374 = vst [vmem:[#allocation26_spill] sm:$0xff] %v2237_v8 }
  0x4b   :  { %5372 = vst [vmem:[#allocation24_spill] sm:$0xff] %v2231_v17  ;;  %5373 = vst [vmem:[#allocation25_spill] sm:$0xff] %v2233_v34  ;;  %v125_v48 = vld [vmem:[#allocation2 + $0x1f0] sm:$0xff]  ;;  %v126_v35 = vld [vmem:[#allocation2 + $0x1f8] sm:$0xff]  ;;  %v2239_v25 = vsub.f32 %v110_v55, %v366_v39  ;;  %v2241_v54 = vsub.f32 %v111_v23, %v367_v57  ;;  %v2243_v44 = vsub.f32 %v112_v41, %v368_v21 }
  0x4c   :  { %v127_v60 = vld [vmem:[#allocation2 + $0x200] sm:$0xff]  ;;  %v369_v12 = vld [vmem:[#allocation4 + $0x190] sm:$0xff]  ;;  %v370_v13 = vld [vmem:[#allocation4 + $0x198] sm:$0xff]  ;;  %5377 = vst [vmem:[#allocation29_spill] sm:$0xff] %v2247_v45  ;;  %v2257_v23 = vmul.f32 %v2139_v6, %v2139_v6 }
  0x4d   :  { %v371_v31 = vld [vmem:[#allocation4 + $0x1a0] sm:$0xff]  ;;  %5375 = vst [vmem:[#allocation27_spill] sm:$0xff] %v2241_v54  ;;  %5376 = vst [vmem:[#allocation28_spill] sm:$0xff] %v2243_v44  ;;  %v128_v40 = vld [vmem:[#allocation2 + $0x208] sm:$0xff]  ;;  %v2249_v34 = vsub.f32 %v113_v1, %v369_v12  ;;  %v2251_v17 = vsub.f32 %v114_v56, %v370_v13  ;;  %v2267_v56 = vmul.f32 %v2141_v7, %v2141_v7 }
  0x4e   :  { %v129_v10 = vld [vmem:[#allocation2 + $0x210] sm:$0xff]  ;;  %v130_v61 = vld [vmem:[#allocation2 + $0x218] sm:$0xff]  ;;  %v372_v36 = vld [vmem:[#allocation4 + $0x1a8] sm:$0xff]  ;;  %v2253_v55 = vsub.f32 %v115_v49, %v371_v31  ;;  %5380 = vst [vmem:[#allocation32_spill] sm:$0xff] %v2257_v23 }
  0x4f   :  { %v373_v32 = vld [vmem:[#allocation4 + $0x1b0] sm:$0xff]  ;;  %v374_v8 = vld [vmem:[#allocation4 + $0x1b8] sm:$0xff]  ;;  %5378 = vst [vmem:[#allocation30_spill] sm:$0xff] %v2251_v17  ;;  %v131_v41 = vld [vmem:[#allocation2 + $0x220] sm:$0xff]  ;;  %v2259_v44 = vsub.f32 %v116_v11, %v372_v36 }
  0x50   :  { %5379 = vst [vmem:[#allocation31_spill] sm:$0xff] %v2253_v55  ;;  %v132_v21 = vld [vmem:[#allocation2 + $0x228] sm:$0xff]  ;;  %v133_v5 = vld [vmem:[#allocation2 + $0x230] sm:$0xff]  ;;  %v375_v39 = vld [vmem:[#allocation4 + $0x1c0] sm:$0xff]  ;;  %v2261_v54 = vsub.f32 %v117_v4, %v373_v32  ;;  %v2263_v1 = vsub.f32 %v118_v50, %v374_v8  ;;  %v2277_v4 = vmul.f32 %v2145_v15, %v2145_v15 }
  0x51   :  { %v376_v57 = vld [vmem:[#allocation4 + $0x1c8] sm:$0xff]  ;;  %v377_v45 = vld [vmem:[#allocation4 + $0x1d0] sm:$0xff]  ;;  %5383 = vst [vmem:[#allocation35_spill] sm:$0xff] %v2267_v56  ;;  %v134_v49 = vld [vmem:[#allocation2 + $0x238] sm:$0xff]  ;;  %v2269_v55 = vsub.f32 %v119_v18, %v375_v39 }
  0x52   :  { %5381 = vst [vmem:[#allocation33_spill] sm:$0xff] %v2261_v54  ;;  %5382 = vst [vmem:[#allocation34_spill] sm:$0xff] %v2263_v1  ;;  %v135_v31 = vld [vmem:[#allocation2 + $0x240] sm:$0xff]  ;;  %v136_v6 = vld [vmem:[#allocation2 + $0x248] sm:$0xff]  ;;  %v2271_v17 = vsub.f32 %v120_v27, %v376_v57  ;;  %v2273_v11 = vsub.f32 %v121_v51, %v377_v45  ;;  %v2287_v27 = vmul.f32 %v2147_v19, %v2147_v19 }
  0x53   :  { %v378_v12 = vld [vmem:[#allocation4 + $0x1d8] sm:$0xff]  ;;  %v379_v13 = vld [vmem:[#allocation4 + $0x1e0] sm:$0xff]  ;;  %v380_v23 = vld [vmem:[#allocation4 + $0x1e8] sm:$0xff]  ;;  %5386 = vst [vmem:[#allocation38_spill] sm:$0xff] %v2277_v4 }
  0x54   :  { %5384 = vst [vmem:[#allocation36_spill] sm:$0xff] %v2271_v17  ;;  %5385 = vst [vmem:[#allocation37_spill] sm:$0xff] %v2273_v11  ;;  %v137_v50 = vld [vmem:[#allocation2 + $0x250] sm:$0xff]  ;;  %v138_v8 = vld [vmem:[#allocation2 + $0x258] sm:$0xff]  ;;  %v2279_v1 = vsub.f32 %v122_v26, %v378_v12  ;;  %v2281_v54 = vsub.f32 %v123_v33, %v379_v13  ;;  %v2283_v18 = vsub.f32 %v124_v59, %v380_v23 }
  0x55   :  { %v139_v7 = vld [vmem:[#allocation2 + $0x260] sm:$0xff]  ;;  %v381_v36 = vld [vmem:[#allocation4 + $0x1f0] sm:$0xff]  ;;  %v382_v32 = vld [vmem:[#allocation4 + $0x1f8] sm:$0xff]  ;;  %5389 = vst [vmem:[#allocation41_spill] sm:$0xff] %v2287_v27  ;;  %v2297_v33 = vmul.f32 %v2149_v20, %v2149_v20 }
  0x56   :  { %v383_v56 = vld [vmem:[#allocation4 + $0x200] sm:$0xff]  ;;  %5387 = vst [vmem:[#allocation39_spill] sm:$0xff] %v2281_v54  ;;  %5388 = vst [vmem:[#allocation40_spill] sm:$0xff] %v2283_v18  ;;  %v140_v51 = vld [vmem:[#allocation2 + $0x268] sm:$0xff]  ;;  %v2289_v11 = vsub.f32 %v125_v48, %v381_v36  ;;  %v2291_v17 = vsub.f32 %v126_v35, %v382_v32  ;;  %v2307_v35 = vmul.f32 %v2153_v28, %v2153_v28 }
  0x57   :  { %v141_v45 = vld [vmem:[#allocation2 + $0x270] sm:$0xff]  ;;  %v142_v15 = vld [vmem:[#allocation2 + $0x278] sm:$0xff]  ;;  %v384_v39 = vld [vmem:[#allocation4 + $0x208] sm:$0xff]  ;;  %v2293_v26 = vsub.f32 %v127_v60, %v383_v56  ;;  %5392 = vst [vmem:[#allocation44_spill] sm:$0xff] %v2297_v33 }
  0x58   :  { %v385_v57 = vld [vmem:[#allocation4 + $0x210] sm:$0xff]  ;;  %v386_v4 = vld [vmem:[#allocation4 + $0x218] sm:$0xff]  ;;  %5390 = vst [vmem:[#allocation42_spill] sm:$0xff] %v2291_v17  ;;  %v143_v59 = vld [vmem:[#allocation2 + $0x280] sm:$0xff]  ;;  %v2299_v18 = vsub.f32 %v128_v40, %v384_v39 }
  0x59   :  { %5391 = vst [vmem:[#allocation43_spill] sm:$0xff] %v2293_v26  ;;  %v144_v23 = vld [vmem:[#allocation2 + $0x288] sm:$0xff]  ;;  %v145_v19 = vld [vmem:[#allocation2 + $0x290] sm:$0xff]  ;;  %v387_v12 = vld [vmem:[#allocation4 + $0x220] sm:$0xff]  ;;  %v2301_v54 = vsub.f32 %v129_v10, %v385_v57  ;;  %v2303_v48 = vsub.f32 %v130_v61, %v386_v4  ;;  %v2317_v10 = vmul.f32 %v2155_v29, %v2155_v29 }
  0x5a   :  { %v388_v13 = vld [vmem:[#allocation4 + $0x228] sm:$0xff]  ;;  %v389_v27 = vld [vmem:[#allocation4 + $0x230] sm:$0xff]  ;;  %5395 = vst [vmem:[#allocation47_spill] sm:$0xff] %v2307_v35  ;;  %v146_v60 = vld [vmem:[#allocation2 + $0x298] sm:$0xff]  ;;  %v2309_v26 = vsub.f32 %v131_v41, %v387_v12 }
  0x5b   :  { %5393 = vst [vmem:[#allocation45_spill] sm:$0xff] %v2301_v54  ;;  %5394 = vst [vmem:[#allocation46_spill] sm:$0xff] %v2303_v48  ;;  %v147_v56 = vld [vmem:[#allocation2 + $0x2a0] sm:$0xff]  ;;  %v148_v20 = vld [vmem:[#allocation2 + $0x2a8] sm:$0xff]  ;;  %v2311_v17 = vsub.f32 %v132_v21, %v388_v13  ;;  %v2313_v40 = vsub.f32 %v133_v5, %v389_v27  ;;  %v2327_v21 = vmul.f32 %v2157_v30, %v2157_v30 }
  0x5c   :  { %v390_v36 = vld [vmem:[#allocation4 + $0x238] sm:$0xff]  ;;  %v391_v32 = vld [vmem:[#allocation4 + $0x240] sm:$0xff]  ;;  %v392_v33 = vld [vmem:[#allocation4 + $0x248] sm:$0xff]  ;;  %5398 = vst [vmem:[#allocation50_spill] sm:$0xff] %v2317_v10 }
  0x5d   :  { %5396 = vst [vmem:[#allocation48_spill] sm:$0xff] %v2311_v17  ;;  %5397 = vst [vmem:[#allocation49_spill] sm:$0xff] %v2313_v40  ;;  %v149_v61 = vld [vmem:[#allocation2 + $0x2b0] sm:$0xff]  ;;  %v150_v4 = vld [vmem:[#allocation2 + $0x2b8] sm:$0xff]  ;;  %v2319_v48 = vsub.f32 %v134_v49, %v390_v36  ;;  %v2321_v54 = vsub.f32 %v135_v31, %v391_v32  ;;  %v2323_v41 = vsub.f32 %v136_v6, %v392_v33 }
  0x5e   :  { %v151_v28 = vld [vmem:[#allocation2 + $0x2c0] sm:$0xff]  ;;  %v393_v39 = vld [vmem:[#allocation4 + $0x250] sm:$0xff]  ;;  %v394_v57 = vld [vmem:[#allocation4 + $0x258] sm:$0xff]  ;;  %5401 = vst [vmem:[#allocation53_spill] sm:$0xff] %v2327_v21  ;;  %v2337_v31 = vmul.f32 %v2161_v38, %v2161_v38 }
  0x5f   :  { %v395_v35 = vld [vmem:[#allocation4 + $0x260] sm:$0xff]  ;;  %5399 = vst [vmem:[#allocation51_spill] sm:$0xff] %v2321_v54  ;;  %5400 = vst [vmem:[#allocation52_spill] sm:$0xff] %v2323_v41  ;;  %v152_v5 = vld [vmem:[#allocation2 + $0x2c8] sm:$0xff]  ;;  %v2329_v40 = vsub.f32 %v137_v50, %v393_v39  ;;  %v2331_v17 = vsub.f32 %v138_v8, %v394_v57  ;;  %v2347_v8 = vmul.f32 %v2163_v46, %v2163_v46 }
  0x60   :  { %v153_v27 = vld [vmem:[#allocation2 + $0x2d0] sm:$0xff]  ;;  %v154_v29 = vld [vmem:[#allocation2 + $0x2d8] sm:$0xff]  ;;  %v396_v12 = vld [vmem:[#allocation4 + $0x268] sm:$0xff]  ;;  %v2333_v49 = vsub.f32 %v139_v7, %v395_v35  ;;  %5404 = vst [vmem:[#allocation56_spill] sm:$0xff] %v2337_v31 }
  0x61   :  { %v397_v13 = vld [vmem:[#allocation4 + $0x270] sm:$0xff]  ;;  %v398_v10 = vld [vmem:[#allocation4 + $0x278] sm:$0xff]  ;;  %5402 = vst [vmem:[#allocation54_spill] sm:$0xff] %v2331_v17  ;;  %v155_v6 = vld [vmem:[#allocation2 + $0x2e0] sm:$0xff]  ;;  %v2339_v41 = vsub.f32 %v140_v51, %v396_v12 }
  0x62   :  { %5403 = vst [vmem:[#allocation55_spill] sm:$0xff] %v2333_v49  ;;  %v156_v33 = vld [vmem:[#allocation2 + $0x2e8] sm:$0xff]  ;;  %v157_v30 = vld [vmem:[#allocation2 + $0x2f0] sm:$0xff]  ;;  %v399_v36 = vld [vmem:[#allocation4 + $0x280] sm:$0xff]  ;;  %v2341_v54 = vsub.f32 %v141_v45, %v397_v13  ;;  %v2343_v50 = vsub.f32 %v142_v15, %v398_v10  ;;  %v2357_v45 = vmul.f32 %v2165_v47, %v2165_v47 }
  0x63   :  { %v400_v32 = vld [vmem:[#allocation4 + $0x288] sm:$0xff]  ;;  %v401_v21 = vld [vmem:[#allocation4 + $0x290] sm:$0xff]  ;;  %5407 = vst [vmem:[#allocation59_spill] sm:$0xff] %v2347_v8  ;;  %v158_v7 = vld [vmem:[#allocation2 + $0x2f8] sm:$0xff]  ;;  %v2349_v49 = vsub.f32 %v143_v59, %v399_v36 }
  0x64   :  { %5405 = vst [vmem:[#allocation57_spill] sm:$0xff] %v2341_v54  ;;  %5406 = vst [vmem:[#allocation58_spill] sm:$0xff] %v2343_v50  ;;  %v159_v35 = vld [vmem:[#allocation2 + $0x300] sm:$0xff]  ;;  %v160_v38 = vld [vmem:[#allocation2 + $0x308] sm:$0xff]  ;;  %v2351_v17 = vsub.f32 %v144_v23, %v400_v32  ;;  %v2353_v51 = vsub.f32 %v145_v19, %v401_v21  ;;  %v2367_v23 = vmul.f32 %v2169_v58, %v2169_v58 }
  0x65   :  { %v402_v39 = vld [vmem:[#allocation4 + $0x298] sm:$0xff]  ;;  %v403_v57 = vld [vmem:[#allocation4 + $0x2a0] sm:$0xff]  ;;  %v404_v31 = vld [vmem:[#allocation4 + $0x2a8] sm:$0xff]  ;;  %5410 = vst [vmem:[#allocation62_spill] sm:$0xff] %v2357_v45 }
  0x66   :  { %5408 = vst [vmem:[#allocation60_spill] sm:$0xff] %v2351_v17  ;;  %5409 = vst [vmem:[#allocation61_spill] sm:$0xff] %v2353_v51  ;;  %v161_v15 = vld [vmem:[#allocation2 + $0x310] sm:$0xff]  ;;  %v162_v10 = vld [vmem:[#allocation2 + $0x318] sm:$0xff]  ;;  %v2359_v50 = vsub.f32 %v146_v60, %v402_v39  ;;  %v2361_v54 = vsub.f32 %v147_v56, %v403_v57  ;;  %v2363_v59 = vsub.f32 %v148_v20, %v404_v31 }
  0x67   :  { %v163_v46 = vld [vmem:[#allocation2 + $0x320] sm:$0xff]  ;;  %v405_v12 = vld [vmem:[#allocation4 + $0x2b0] sm:$0xff]  ;;  %v406_v13 = vld [vmem:[#allocation4 + $0x2b8] sm:$0xff]  ;;  %5413 = vst [vmem:[#allocation65_spill] sm:$0xff] %v2367_v23  ;;  %v2377_v56 = vmul.f32 %v2171_v2, %v2171_v2 }
  0x68   :  { %v407_v8 = vld [vmem:[#allocation4 + $0x2c0] sm:$0xff]  ;;  %5411 = vst [vmem:[#allocation63_spill] sm:$0xff] %v2361_v54  ;;  %5412 = vst [vmem:[#allocation64_spill] sm:$0xff] %v2363_v59  ;;  %v164_v19 = vld [vmem:[#allocation2 + $0x328] sm:$0xff]  ;;  %v2369_v51 = vsub.f32 %v149_v61, %v405_v12  ;;  %v2371_v17 = vsub.f32 %v150_v4, %v406_v13  ;;  %v2387_v4 = vmul.f32 %v2173_v3, %v2173_v3 }
  0x69   :  { %v165_v21 = vld [vmem:[#allocation2 + $0x330] sm:$0xff]  ;;  %v166_v47 = vld [vmem:[#allocation2 + $0x338] sm:$0xff]  ;;  %v408_v36 = vld [vmem:[#allocation4 + $0x2c8] sm:$0xff]  ;;  %v2373_v60 = vsub.f32 %v151_v28, %v407_v8  ;;  %5416 = vst [vmem:[#allocation68_spill] sm:$0xff] %v2377_v56 }
  0x6a   :  { %v409_v32 = vld [vmem:[#allocation4 + $0x2d0] sm:$0xff]  ;;  %v410_v45 = vld [vmem:[#allocation4 + $0x2d8] sm:$0xff]  ;;  %5414 = vst [vmem:[#allocation66_spill] sm:$0xff] %v2371_v17  ;;  %v167_v20 = vld [vmem:[#allocation2 + $0x340] sm:$0xff]  ;;  %v2379_v59 = vsub.f32 %v152_v5, %v408_v36 }
  0x6b   :  { %5415 = vst [vmem:[#allocation67_spill] sm:$0xff] %v2373_v60  ;;  %v168_v31 = vld [vmem:[#allocation2 + $0x348] sm:$0xff]  ;;  %v169_v58 = vld [vmem:[#allocation2 + $0x350] sm:$0xff]  ;;  %v411_v39 = vld [vmem:[#allocation4 + $0x2e0] sm:$0xff]  ;;  %v2381_v54 = vsub.f32 %v153_v27, %v409_v32  ;;  %v2383_v61 = vsub.f32 %v154_v29, %v410_v45  ;;  %v2397_v27 = vmul.f32 %v2179_v14, %v2179_v14 }
  0x6c   :  { %v412_v57 = vld [vmem:[#allocation4 + $0x2e8] sm:$0xff]  ;;  %v413_v23 = vld [vmem:[#allocation4 + $0x2f0] sm:$0xff]  ;;  %5419 = vst [vmem:[#allocation71_spill] sm:$0xff] %v2387_v4  ;;  %v170_v28 = vld [vmem:[#allocation2 + $0x358] sm:$0xff]  ;;  %v2389_v60 = vsub.f32 %v155_v6, %v411_v39 }
  0x6d   :  { %5417 = vst [vmem:[#allocation69_spill] sm:$0xff] %v2381_v54  ;;  %5418 = vst [vmem:[#allocation70_spill] sm:$0xff] %v2383_v61  ;;  %v171_v8 = vld [vmem:[#allocation2 + $0x360] sm:$0xff]  ;;  %v172_v2 = vld [vmem:[#allocation2 + $0x368] sm:$0xff]  ;;  %v2391_v17 = vsub.f32 %v156_v33, %v412_v57  ;;  %v2393_v5 = vsub.f32 %v157_v30, %v413_v23  ;;  %v2407_v33 = vmul.f32 %v2181_v22, %v2181_v22 }
  0x6e   :  { %v414_v12 = vld [vmem:[#allocation4 + $0x2f8] sm:$0xff]  ;;  %v415_v13 = vld [vmem:[#allocation4 + $0x300] sm:$0xff]  ;;  %v416_v56 = vld [vmem:[#allocation4 + $0x308] sm:$0xff]  ;;  %5422 = vst [vmem:[#allocation74_spill] sm:$0xff] %v2397_v27 }
  0x6f   :  { %5420 = vst [vmem:[#allocation72_spill] sm:$0xff] %v2391_v17  ;;  %5421 = vst [vmem:[#allocation73_spill] sm:$0xff] %v2393_v5  ;;  %v173_v29 = vld [vmem:[#allocation2 + $0x370] sm:$0xff]  ;;  %v174_v45 = vld [vmem:[#allocation2 + $0x378] sm:$0xff]  ;;  %v2399_v61 = vsub.f32 %v158_v7, %v414_v12  ;;  %v2401_v54 = vsub.f32 %v159_v35, %v415_v13  ;;  %v2403_v6 = vsub.f32 %v160_v38, %v416_v56 }
  0x70   :  { %v175_v3 = vld [vmem:[#allocation2 + $0x380] sm:$0xff]  ;;  %v417_v36 = vld [vmem:[#allocation4 + $0x310] sm:$0xff]  ;;  %v418_v32 = vld [vmem:[#allocation4 + $0x318] sm:$0xff]  ;;  %5425 = vst [vmem:[#allocation77_spill] sm:$0xff] %v2407_v33  ;;  %v2417_v35 = vmul.f32 %v2183_v53, %v2183_v53 }
  0x71   :  { %v419_v4 = vld [vmem:[#allocation4 + $0x320] sm:$0xff]  ;;  %5423 = vst [vmem:[#allocation75_spill] sm:$0xff] %v2401_v54  ;;  %5424 = vst [vmem:[#allocation76_spill] sm:$0xff] %v2403_v6  ;;  %v176_v30 = vld [vmem:[#allocation2 + $0x388] sm:$0xff]  ;;  %v2409_v5 = vsub.f32 %v161_v15, %v417_v36  ;;  %v2411_v17 = vsub.f32 %v162_v10, %v418_v32  ;;  %v2427_v10 = vmul.f32 %v2189_v37, %v2189_v37 }
  0x72   :  { %v177_v23 = vld [vmem:[#allocation2 + $0x390] sm:$0xff]  ;;  %v178_v14 = vld [vmem:[#allocation2 + $0x398] sm:$0xff]  ;;  %v420_v39 = vld [vmem:[#allocation4 + $0x328] sm:$0xff]  ;;  %v2413_v7 = vsub.f32 %v163_v46, %v419_v4  ;;  %5428 = vst [vmem:[#allocation80_spill] sm:$0xff] %v2417_v35 }
  0x73   :  { %v421_v57 = vld [vmem:[#allocation4 + $0x330] sm:$0xff]  ;;  %v422_v27 = vld [vmem:[#allocation4 + $0x338] sm:$0xff]  ;;  %5426 = vst [vmem:[#allocation78_spill] sm:$0xff] %v2411_v17  ;;  %v179_v38 = vld [vmem:[#allocation2 + $0x3a0] sm:$0xff]  ;;  %v2419_v6 = vsub.f32 %v164_v19, %v420_v39 }
  0x74   :  { %5427 = vst [vmem:[#allocation79_spill] sm:$0xff] %v2413_v7  ;;  %v180_v56 = vld [vmem:[#allocation2 + $0x3a8] sm:$0xff]  ;;  %v181_v22 = vld [vmem:[#allocation2 + $0x3b0] sm:$0xff]  ;;  %v423_v12 = vld [vmem:[#allocation4 + $0x340] sm:$0xff]  ;;  %v2421_v54 = vsub.f32 %v165_v21, %v421_v57  ;;  %v2423_v15 = vsub.f32 %v166_v47, %v422_v27  ;;  %v2437_v21 = vmul.f32 %v2191_v43, %v2191_v43 }
  0x75   :  { %v424_v13 = vld [vmem:[#allocation4 + $0x348] sm:$0xff]  ;;  %v425_v33 = vld [vmem:[#allocation4 + $0x350] sm:$0xff]  ;;  %5431 = vst [vmem:[#allocation83_spill] sm:$0xff] %v2427_v10  ;;  %v182_v46 = vld [vmem:[#allocation2 + $0x3b8] sm:$0xff]  ;;  %v2429_v7 = vsub.f32 %v167_v20, %v423_v12 }
  0x76   :  { %5429 = vst [vmem:[#allocation81_spill] sm:$0xff] %v2421_v54  ;;  %5430 = vst [vmem:[#allocation82_spill] sm:$0xff] %v2423_v15  ;;  %v183_v4 = vld [vmem:[#allocation2 + $0x3c0] sm:$0xff]  ;;  %v184_v53 = vld [vmem:[#allocation2 + $0x3c8] sm:$0xff]  ;;  %v2431_v17 = vsub.f32 %v168_v31, %v424_v13  ;;  %v2433_v19 = vsub.f32 %v169_v58, %v425_v33  ;;  %v2447_v31 = vmul.f32 %v2193_v63, %v2193_v63 }
  0x77   :  { %v426_v36 = vld [vmem:[#allocation4 + $0x358] sm:$0xff]  ;;  %v427_v32 = vld [vmem:[#allocation4 + $0x360] sm:$0xff]  ;;  %v428_v35 = vld [vmem:[#allocation4 + $0x368] sm:$0xff]  ;;  %5434 = vst [vmem:[#allocation86_spill] sm:$0xff] %v2437_v21 }
  0x78   :  { %5432 = vst [vmem:[#allocation84_spill] sm:$0xff] %v2431_v17  ;;  %5433 = vst [vmem:[#allocation85_spill] sm:$0xff] %v2433_v19  ;;  %v185_v47 = vld [vmem:[#allocation2 + $0x3d0] sm:$0xff]  ;;  %v186_v27 = vld [vmem:[#allocation2 + $0x3d8] sm:$0xff]  ;;  %v2439_v15 = vsub.f32 %v170_v28, %v426_v36  ;;  %v2441_v54 = vsub.f32 %v171_v8, %v427_v32  ;;  %v2443_v20 = vsub.f32 %v172_v2, %v428_v35 }
  0x79   :  { %v187_v37 = vld [vmem:[#allocation2 + $0x3e0] sm:$0xff]  ;;  %v429_v39 = vld [vmem:[#allocation4 + $0x370] sm:$0xff]  ;;  %v430_v57 = vld [vmem:[#allocation4 + $0x378] sm:$0xff]  ;;  %5437 = vst [vmem:[#allocation89_spill] sm:$0xff] %v2447_v31  ;;  %v2457_v8 = vmul.f32 %v2199_v24, %v2199_v24 }
  0x7a   :  { %v431_v10 = vld [vmem:[#allocation4 + $0x380] sm:$0xff]  ;;  %5435 = vst [vmem:[#allocation87_spill] sm:$0xff] %v2441_v54  ;;  %5436 = vst [vmem:[#allocation88_spill] sm:$0xff] %v2443_v20  ;;  %v188_v58 = vld [vmem:[#allocation2 + $0x3e8] sm:$0xff]  ;;  %v2449_v19 = vsub.f32 %v173_v29, %v429_v39  ;;  %v2451_v17 = vsub.f32 %v174_v45, %v430_v57  ;;  %v2467_v45 = vmul.f32 %v2201_v16, %v2201_v16 }
  0x7b   :  { %v189_v33 = vld [vmem:[#allocation2 + $0x3f0] sm:$0xff]  ;;  %v190_v43 = vld [vmem:[#allocation2 + $0x3f8] sm:$0xff]  ;;  %v432_v12 = vld [vmem:[#allocation4 + $0x388] sm:$0xff]  ;;  %v2453_v28 = vsub.f32 %v175_v3, %v431_v10  ;;  %5440 = vst [vmem:[#allocation92_spill] sm:$0xff] %v2457_v8 }
  0x7c   :  { %v433_v13 = vld [vmem:[#allocation4 + $0x390] sm:$0xff]  ;;  %v434_v21 = vld [vmem:[#allocation4 + $0x398] sm:$0xff]  ;;  %5438 = vst [vmem:[#allocation90_spill] sm:$0xff] %v2451_v17  ;;  %v191_v2 = vld [vmem:[#allocation2 + $0x400] sm:$0xff]  ;;  %v2459_v20 = vsub.f32 %v176_v30, %v432_v12 }
  0x7d   :  { %5439 = vst [vmem:[#allocation91_spill] sm:$0xff] %v2453_v28  ;;  %v192_v35 = vld [vmem:[#allocation2 + $0x408] sm:$0xff]  ;;  %v193_v63 = vld [vmem:[#allocation2 + $0x410] sm:$0xff]  ;;  %v435_v36 = vld [vmem:[#allocation4 + $0x3a0] sm:$0xff]  ;;  %v2461_v54 = vsub.f32 %v177_v23, %v433_v13  ;;  %v2463_v29 = vsub.f32 %v178_v14, %v434_v21  ;;  %v2477_v23 = vmul.f32 %v2203_v9, %v2203_v9 }
  0x7e   :  { %v436_v32 = vld [vmem:[#allocation4 + $0x3a8] sm:$0xff]  ;;  %v437_v31 = vld [vmem:[#allocation4 + $0x3b0] sm:$0xff]  ;;  %5443 = vst [vmem:[#allocation95_spill] sm:$0xff] %v2467_v45  ;;  %v194_v3 = vld [vmem:[#allocation2 + $0x418] sm:$0xff]  ;;  %v2469_v28 = vsub.f32 %v179_v38, %v435_v36 }
  0x7f   :  { %5441 = vst [vmem:[#allocation93_spill] sm:$0xff] %v2461_v54  ;;  %5442 = vst [vmem:[#allocation94_spill] sm:$0xff] %v2463_v29  ;;  %v195_v10 = vld [vmem:[#allocation2 + $0x420] sm:$0xff]  ;;  %v196_v24 = vld [vmem:[#allocation2 + $0x428] sm:$0xff]  ;;  %v2471_v17 = vsub.f32 %v180_v56, %v436_v32  ;;  %v2473_v30 = vsub.f32 %v181_v22, %v437_v31  ;;  %v2487_v56 = vmul.f32 %v2209_v62, %v2209_v62 }
  0x80   :  { %v438_v39 = vld [vmem:[#allocation4 + $0x3b8] sm:$0xff]  ;;  %v439_v57 = vld [vmem:[#allocation4 + $0x3c0] sm:$0xff]  ;;  %v440_v8 = vld [vmem:[#allocation4 + $0x3c8] sm:$0xff]  ;;  %5446 = vst [vmem:[#allocation98_spill] sm:$0xff] %v2477_v23 }
  0x81   :  { %5444 = vst [vmem:[#allocation96_spill] sm:$0xff] %v2471_v17  ;;  %5445 = vst [vmem:[#allocation97_spill] sm:$0xff] %v2473_v30  ;;  %v197_v14 = vld [vmem:[#allocation2 + $0x430] sm:$0xff]  ;;  %v198_v21 = vld [vmem:[#allocation2 + $0x438] sm:$0xff]  ;;  %v2479_v29 = vsub.f32 %v182_v46, %v438_v39  ;;  %v2481_v54 = vsub.f32 %v183_v4, %v439_v57  ;;  %v2483_v38 = vsub.f32 %v184_v53, %v440_v8 }
  0x82   :  { %v199_v16 = vld [vmem:[#allocation2 + $0x440] sm:$0xff]  ;;  %v441_v12 = vld [vmem:[#allocation4 + $0x3d0] sm:$0xff]  ;;  %v442_v13 = vld [vmem:[#allocation4 + $0x3d8] sm:$0xff]  ;;  %5449 = vst [vmem:[#allocation101_spill] sm:$0xff] %v2487_v56  ;;  %v2497_v4 = vmul.f32 %v2211_v0, %v2211_v0 }
  0x83   :  { %v443_v45 = vld [vmem:[#allocation4 + $0x3e0] sm:$0xff]  ;;  %5447 = vst [vmem:[#allocation99_spill] sm:$0xff] %v2481_v54  ;;  %5448 = vst [vmem:[#allocation100_spill] sm:$0xff] %v2483_v38  ;;  %v200_v22 = vld [vmem:[#allocation2 + $0x448] sm:$0xff]  ;;  %v2489_v30 = vsub.f32 %v185_v47, %v441_v12  ;;  %v2491_v17 = vsub.f32 %v186_v27, %v442_v13 }
  0x84   :  { %v201_v31 = vld [vmem:[#allocation2 + $0x450] sm:$0xff]  ;;  %v202_v9 = vld [vmem:[#allocation2 + $0x458] sm:$0xff]  ;;  %v444_v36 = vld [vmem:[#allocation4 + $0x3e8] sm:$0xff]  ;;  %v2493_v46 = vsub.f32 %v187_v37, %v443_v45  ;;  %5453 = vst [vmem:[#allocation105_spill] sm:$0xff] %v2497_v4 }
  0x85   :  { %v445_v32 = vld [vmem:[#allocation4 + $0x3f0] sm:$0xff]  ;;  %v446_v23 = vld [vmem:[#allocation4 + $0x3f8] sm:$0xff]  ;;  %5450 = vst [vmem:[#allocation102_spill] sm:$0xff] %v2489_v30  ;;  %5451 = vst [vmem:[#allocation103_spill] sm:$0xff] %v2491_v17  ;;  %v2499_v38 = vsub.f32 %v188_v58, %v444_v36 }
  0x86   :  { %5452 = vst [vmem:[#allocation104_spill] sm:$0xff] %v2493_v46  ;;  %v203_v53 = vld [vmem:[#allocation2 + $0x460] sm:$0xff]  ;;  %v204_v8 = vld [vmem:[#allocation2 + $0x468] sm:$0xff]  ;;  %v205_v62 = vld [vmem:[#allocation2 + $0x470] sm:$0xff]  ;;  %v2501_v54 = vsub.f32 %v189_v33, %v445_v32  ;;  %v2503_v47 = vsub.f32 %v190_v43, %v446_v23  ;;  %v2517_v33 = vmul.f32 %v2219_v52, %v2219_v52 }
  0x87   :  { %v447_v39 = vld [vmem:[#allocation4 + $0x400] sm:$0xff]  ;;  %v448_v57 = vld [vmem:[#allocation4 + $0x408] sm:$0xff]  ;;  %v449_v56 = vld [vmem:[#allocation4 + $0x410] sm:$0xff] }
  0x88   :  { %5454 = vst [vmem:[#allocation106_spill] sm:$0xff] %v2501_v54  ;;  %5455 = vst [vmem:[#allocation107_spill] sm:$0xff] %v2503_v47  ;;  %v5456_v27 = vld [vmem:[#allocation19_spill] sm:$0xff]  ;;  %v207_v12 = vld [vmem:[#allocation2 + $0x480] sm:$0xff]  ;;  %v2509_v17 = vsub.f32 %v191_v2, %v447_v39  ;;  %v2511_v30 = vsub.f32 %v192_v35, %v448_v57  ;;  %v2513_v58 = vsub.f32 %v193_v63, %v449_v56 }
  0x89   :  { %v2507_v37 = vmul.f32 %v5456_v27, %v5456_v27  ;;  %v206_v45 = vld [vmem:[#allocation2 + $0x478] sm:$0xff]  ;;  %v208_v0 = vld [vmem:[#allocation2 + $0x488] sm:$0xff]  ;;  %v451_v4 = vld [vmem:[#allocation4 + $0x420] sm:$0xff]  ;;  %5461 = vst [vmem:[#allocation111_spill] sm:$0xff] %v2517_v33 }
  0x8a   :  { %v450_v13 = vld [vmem:[#allocation4 + $0x418] sm:$0xff]  ;;  %v452_v46 = vld [vmem:[#allocation4 + $0x428] sm:$0xff]  ;;  %5458 = vst [vmem:[#allocation108_spill] sm:$0xff] %v2509_v17  ;;  %5459 = vst [vmem:[#allocation109_spill] sm:$0xff] %v2511_v30  ;;  %v2521_v54 = vsub.f32 %v195_v10, %v451_v4 }
  0x8b   :  { %5457 = vst [vmem:[#allocation19_spill] sm:$0xff] %v2507_v37  ;;  %5460 = vst [vmem:[#allocation110_spill] sm:$0xff] %v2513_v58  ;;  %v209_v43 = vld [vmem:[#allocation2 + $0x490] sm:$0xff]  ;;  %v210_v23 = vld [vmem:[#allocation2 + $0x498] sm:$0xff]  ;;  %v2519_v47 = vsub.f32 %v194_v3, %v450_v13  ;;  %v2523_v2 = vsub.f32 %v196_v24, %v452_v46 }
  0x8c   :  { %v211_v36 = vld [vmem:[#allocation2 + $0x4a0] sm:$0xff]  ;;  %v453_v32 = vld [vmem:[#allocation4 + $0x430] sm:$0xff]  ;;  %v454_v27 = vld [vmem:[#allocation4 + $0x438] sm:$0xff]  ;;  %5463 = vst [vmem:[#allocation113_spill] sm:$0xff] %v2521_v54 }
  0x8d   :  { %v455_v37 = vld [vmem:[#allocation4 + $0x440] sm:$0xff]  ;;  %5462 = vst [vmem:[#allocation112_spill] sm:$0xff] %v2519_v47  ;;  %5464 = vst [vmem:[#allocation114_spill] sm:$0xff] %v2523_v2  ;;  %v5465_v35 = vld [vmem:[#allocation21_spill] sm:$0xff]  ;;  %v2529_v30 = vsub.f32 %v197_v14, %v453_v32  ;;  %v2531_v17 = vsub.f32 %v198_v21, %v454_v27  ;;  %v2547_v21 = vmul.f32 %v2229_v42, %v2229_v42 }
  0x8e   :  { %v2527_v63 = vmul.f32 %v5465_v35, %v5465_v35  ;;  %v212_v56 = vld [vmem:[#allocation2 + $0x4a8] sm:$0xff]  ;;  %v213_v39 = vld [vmem:[#allocation2 + $0x4b0] sm:$0xff]  ;;  %v214_v52 = vld [vmem:[#allocation2 + $0x4b8] sm:$0xff]  ;;  %v2533_v3 = vsub.f32 %v199_v16, %v455_v37 }
  0x8f   :  { %v456_v57 = vld [vmem:[#allocation4 + $0x448] sm:$0xff]  ;;  %v457_v33 = vld [vmem:[#allocation4 + $0x450] sm:$0xff]  ;;  %v458_v58 = vld [vmem:[#allocation4 + $0x458] sm:$0xff]  ;;  %5467 = vst [vmem:[#allocation115_spill] sm:$0xff] %v2531_v17 }
  0x90   :  { %5466 = vst [vmem:[#allocation21_spill] sm:$0xff] %v2527_v63  ;;  %5468 = vst [vmem:[#allocation116_spill] sm:$0xff] %v2533_v3  ;;  %v5469_v10 = vld [vmem:[#allocation22_spill] sm:$0xff]  ;;  %v215_v46 = vld [vmem:[#allocation2 + $0x4c0] sm:$0xff]  ;;  %v2539_v54 = vsub.f32 %v200_v22, %v456_v57  ;;  %v2541_v47 = vsub.f32 %v201_v31, %v457_v33  ;;  %v2543_v14 = vsub.f32 %v202_v9, %v458_v58 }
  0x91   :  { %v2537_v24 = vmul.f32 %v5469_v10, %v5469_v10  ;;  %v216_v4 = vld [vmem:[#allocation2 + $0x4c8] sm:$0xff]  ;;  %v217_v13 = vld [vmem:[#allocation2 + $0x4d0] sm:$0xff]  ;;  %v459_v35 = vld [vmem:[#allocation4 + $0x460] sm:$0xff]  ;;  %5474 = vst [vmem:[#allocation120_spill] sm:$0xff] %v2547_v21 }
  0x92   :  { %v460_v63 = vld [vmem:[#allocation4 + $0x468] sm:$0xff]  ;;  %v461_v2 = vld [vmem:[#allocation4 + $0x470] sm:$0xff]  ;;  %5471 = vst [vmem:[#allocation117_spill] sm:$0xff] %v2539_v54  ;;  %5472 = vst [vmem:[#allocation118_spill] sm:$0xff] %v2541_v47  ;;  %v2549_v3 = vsub.f32 %v203_v53, %v459_v35 }
  0x93   :  { %5470 = vst [vmem:[#allocation22_spill] sm:$0xff] %v2537_v24  ;;  %5473 = vst [vmem:[#allocation119_spill] sm:$0xff] %v2543_v14  ;;  %v218_v16 = vld [vmem:[#allocation2 + $0x4d8] sm:$0xff]  ;;  %v219_v37 = vld [vmem:[#allocation2 + $0x4e0] sm:$0xff]  ;;  %v2551_v17 = vsub.f32 %v204_v8, %v460_v63  ;;  %v2553_v22 = vsub.f32 %v205_v62, %v461_v2 }
  0x94   :  { %v220_v32 = vld [vmem:[#allocation2 + $0x4e8] sm:$0xff]  ;;  %v462_v27 = vld [vmem:[#allocation4 + $0x478] sm:$0xff]  ;;  %v463_v10 = vld [vmem:[#allocation4 + $0x480] sm:$0xff]  ;;  %5475 = vst [vmem:[#allocation121_spill] sm:$0xff] %v2549_v3 }
  0x95   :  { %v464_v24 = vld [vmem:[#allocation4 + $0x488] sm:$0xff]  ;;  %5476 = vst [vmem:[#allocation122_spill] sm:$0xff] %v2551_v17  ;;  %5477 = vst [vmem:[#allocation123_spill] sm:$0xff] %v2553_v22  ;;  %v5478_v31 = vld [vmem:[#allocation24_spill] sm:$0xff]  ;;  %v2559_v47 = vsub.f32 %v206_v45, %v462_v27  ;;  %v2561_v54 = vsub.f32 %v207_v12, %v463_v10  ;;  %v2577_v12 = vmul.f32 %v2239_v25, %v2239_v25 }
  0x96   :  { %v2557_v9 = vmul.f32 %v5478_v31, %v5478_v31  ;;  %v221_v58 = vld [vmem:[#allocation2 + $0x4f0] sm:$0xff]  ;;  %v222_v33 = vld [vmem:[#allocation2 + $0x4f8] sm:$0xff]  ;;  %v223_v42 = vld [vmem:[#allocation2 + $0x500] sm:$0xff]  ;;  %v2563_v53 = vsub.f32 %v208_v0, %v464_v24 }
  0x97   :  { %v465_v57 = vld [vmem:[#allocation4 + $0x490] sm:$0xff]  ;;  %v466_v21 = vld [vmem:[#allocation4 + $0x498] sm:$0xff]  ;;  %v467_v14 = vld [vmem:[#allocation4 + $0x4a0] sm:$0xff]  ;;  %5480 = vst [vmem:[#allocation124_spill] sm:$0xff] %v2561_v54 }
  0x98   :  { %5479 = vst [vmem:[#allocation24_spill] sm:$0xff] %v2557_v9  ;;  %5481 = vst [vmem:[#allocation125_spill] sm:$0xff] %v2563_v53  ;;  %v5482_v8 = vld [vmem:[#allocation25_spill] sm:$0xff]  ;;  %v225_v63 = vld [vmem:[#allocation2 + $0x510] sm:$0xff]  ;;  %v2569_v17 = vsub.f32 %v209_v43, %v465_v57  ;;  %v2571_v3 = vsub.f32 %v210_v23, %v466_v21  ;;  %v2573_v45 = vsub.f32 %v211_v36, %v467_v14 }
  0x99   :  { %v2567_v62 = vmul.f32 %v5482_v8, %v5482_v8  ;;  %v224_v2 = vld [vmem:[#allocation2 + $0x508] sm:$0xff]  ;;  %v226_v35 = vld [vmem:[#allocation2 + $0x518] sm:$0xff]  ;;  %v469_v9 = vld [vmem:[#allocation4 + $0x4b0] sm:$0xff]  ;;  %5487 = vst [vmem:[#allocation129_spill] sm:$0xff] %v2577_v12 }
  0x9a   :  { %v468_v31 = vld [vmem:[#allocation4 + $0x4a8] sm:$0xff]  ;;  %v470_v22 = vld [vmem:[#allocation4 + $0x4b8] sm:$0xff]  ;;  %5484 = vst [vmem:[#allocation126_spill] sm:$0xff] %v2569_v17  ;;  %5485 = vst [vmem:[#allocation127_spill] sm:$0xff] %v2571_v3  ;;  %v2581_v54 = vsub.f32 %v213_v39, %v469_v9 }
  0x9b   :  { %5483 = vst [vmem:[#allocation25_spill] sm:$0xff] %v2567_v62  ;;  %5486 = vst [vmem:[#allocation128_spill] sm:$0xff] %v2573_v45  ;;  %v227_v0 = vld [vmem:[#allocation2 + $0x520] sm:$0xff]  ;;  %v228_v24 = vld [vmem:[#allocation2 + $0x528] sm:$0xff]  ;;  %v2579_v53 = vsub.f32 %v212_v56, %v468_v31  ;;  %v2583_v43 = vsub.f32 %v214_v52, %v470_v22 }
  0x9c   :  { %v229_v27 = vld [vmem:[#allocation2 + $0x530] sm:$0xff]  ;;  %v471_v10 = vld [vmem:[#allocation4 + $0x4c0] sm:$0xff]  ;;  %v472_v8 = vld [vmem:[#allocation4 + $0x4c8] sm:$0xff]  ;;  %5489 = vst [vmem:[#allocation131_spill] sm:$0xff] %v2581_v54 }
  0x9d   :  { %v473_v62 = vld [vmem:[#allocation4 + $0x4d0] sm:$0xff]  ;;  %5488 = vst [vmem:[#allocation130_spill] sm:$0xff] %v2579_v53  ;;  %5490 = vst [vmem:[#allocation132_spill] sm:$0xff] %v2583_v43  ;;  %v5491_v23 = vld [vmem:[#allocation27_spill] sm:$0xff]  ;;  %v2589_v3 = vsub.f32 %v215_v46, %v471_v10  ;;  %v2591_v17 = vsub.f32 %v216_v4, %v472_v8  ;;  %v2607_v4 = vmul.f32 %v2249_v34, %v2249_v34 }
  0x9e   :  { %v2587_v36 = vmul.f32 %v5491_v23, %v5491_v23  ;;  %v230_v14 = vld [vmem:[#allocation2 + $0x538] sm:$0xff]  ;;  %v231_v21 = vld [vmem:[#allocation2 + $0x540] sm:$0xff]  ;;  %v232_v25 = vld [vmem:[#allocation2 + $0x548] sm:$0xff]  ;;  %v2593_v56 = vsub.f32 %v217_v13, %v473_v62 }
  0x9f   :  { %v474_v57 = vld [vmem:[#allocation4 + $0x4d8] sm:$0xff]  ;;  %v475_v12 = vld [vmem:[#allocation4 + $0x4e0] sm:$0xff]  ;;  %v476_v45 = vld [vmem:[#allocation4 + $0x4e8] sm:$0xff]  ;;  %5493 = vst [vmem:[#allocation133_spill] sm:$0xff] %v2591_v17 }
  0xa0   :  { %5492 = vst [vmem:[#allocation27_spill] sm:$0xff] %v2587_v36  ;;  %5494 = vst [vmem:[#allocation134_spill] sm:$0xff] %v2593_v56  ;;  %v5495_v39 = vld [vmem:[#allocation28_spill] sm:$0xff]  ;;  %v233_v22 = vld [vmem:[#allocation2 + $0x550] sm:$0xff]  ;;  %v2599_v54 = vsub.f32 %v218_v16, %v474_v57  ;;  %v2601_v53 = vsub.f32 %v219_v37, %v475_v12  ;;  %v2603_v46 = vsub.f32 %v220_v32, %v476_v45 }
  0xa1   :  { %v2597_v52 = vmul.f32 %v5495_v39, %v5495_v39  ;;  %v234_v9 = vld [vmem:[#allocation2 + $0x558] sm:$0xff]  ;;  %v235_v31 = vld [vmem:[#allocation2 + $0x560] sm:$0xff]  ;;  %v477_v23 = vld [vmem:[#allocation4 + $0x4f0] sm:$0xff]  ;;  %5500 = vst [vmem:[#allocation138_spill] sm:$0xff] %v2607_v4 }
  0xa2   :  { %v478_v36 = vld [vmem:[#allocation4 + $0x4f8] sm:$0xff]  ;;  %v479_v43 = vld [vmem:[#allocation4 + $0x500] sm:$0xff]  ;;  %5497 = vst [vmem:[#allocation135_spill] sm:$0xff] %v2599_v54  ;;  %5498 = vst [vmem:[#allocation136_spill] sm:$0xff] %v2601_v53  ;;  %v2609_v56 = vsub.f32 %v221_v58, %v477_v23 }
  0xa3   :  { %5496 = vst [vmem:[#allocation28_spill] sm:$0xff] %v2597_v52  ;;  %5499 = vst [vmem:[#allocation137_spill] sm:$0xff] %v2603_v46  ;;  %v236_v13 = vld [vmem:[#allocation2 + $0x568] sm:$0xff]  ;;  %v237_v62 = vld [vmem:[#allocation2 + $0x570] sm:$0xff]  ;;  %v2611_v17 = vsub.f32 %v222_v33, %v478_v36  ;;  %v2613_v16 = vsub.f32 %v223_v42, %v479_v43 }
  0xa4   :  { %v238_v10 = vld [vmem:[#allocation2 + $0x578] sm:$0xff]  ;;  %v480_v8 = vld [vmem:[#allocation4 + $0x508] sm:$0xff]  ;;  %v481_v39 = vld [vmem:[#allocation4 + $0x510] sm:$0xff]  ;;  %5501 = vst [vmem:[#allocation139_spill] sm:$0xff] %v2609_v56 }
  0xa5   :  { %v482_v52 = vld [vmem:[#allocation4 + $0x518] sm:$0xff]  ;;  %5502 = vst [vmem:[#allocation140_spill] sm:$0xff] %v2611_v17  ;;  %5503 = vst [vmem:[#allocation141_spill] sm:$0xff] %v2613_v16  ;;  %v5504_v37 = vld [vmem:[#allocation30_spill] sm:$0xff]  ;;  %v2619_v53 = vsub.f32 %v224_v2, %v480_v8  ;;  %v2621_v54 = vsub.f32 %v225_v63, %v481_v39  ;;  %v2637_v63 = vmul.f32 %v2259_v44, %v2259_v44 }
  0xa6   :  { %v2617_v32 = vmul.f32 %v5504_v37, %v5504_v37  ;;  %v239_v45 = vld [vmem:[#allocation2 + $0x580] sm:$0xff]  ;;  %v240_v12 = vld [vmem:[#allocation2 + $0x588] sm:$0xff]  ;;  %v241_v34 = vld [vmem:[#allocation2 + $0x590] sm:$0xff]  ;;  %v2623_v58 = vsub.f32 %v226_v35, %v482_v52 }
  0xa7   :  { %v483_v57 = vld [vmem:[#allocation4 + $0x520] sm:$0xff]  ;;  %v484_v4 = vld [vmem:[#allocation4 + $0x528] sm:$0xff]  ;;  %v485_v46 = vld [vmem:[#allocation4 + $0x530] sm:$0xff]  ;;  %5506 = vst [vmem:[#allocation142_spill] sm:$0xff] %v2621_v54 }
  0xa8   :  { %5505 = vst [vmem:[#allocation30_spill] sm:$0xff] %v2617_v32  ;;  %5507 = vst [vmem:[#allocation143_spill] sm:$0xff] %v2623_v58  ;;  %v5508_v33 = vld [vmem:[#allocation31_spill] sm:$0xff]  ;;  %v243_v36 = vld [vmem:[#allocation2 + $0x5a0] sm:$0xff]  ;;  %v2629_v17 = vsub.f32 %v227_v0, %v483_v57  ;;  %v2631_v56 = vsub.f32 %v228_v24, %v484_v4  ;;  %v2633_v2 = vsub.f32 %v229_v27, %v485_v46 }
  0xa9   :  { %v2627_v42 = vmul.f32 %v5508_v33, %v5508_v33  ;;  %v242_v43 = vld [vmem:[#allocation2 + $0x598] sm:$0xff]  ;;  %v244_v23 = vld [vmem:[#allocation2 + $0x5a8] sm:$0xff]  ;;  %v487_v32 = vld [vmem:[#allocation4 + $0x540] sm:$0xff]  ;;  %5513 = vst [vmem:[#allocation147_spill] sm:$0xff] %v2637_v63 }
  0xaa   :  { %v486_v37 = vld [vmem:[#allocation4 + $0x538] sm:$0xff]  ;;  %v488_v16 = vld [vmem:[#allocation4 + $0x548] sm:$0xff]  ;;  %5510 = vst [vmem:[#allocation144_spill] sm:$0xff] %v2629_v17  ;;  %5511 = vst [vmem:[#allocation145_spill] sm:$0xff] %v2631_v56  ;;  %v2641_v54 = vsub.f32 %v231_v21, %v487_v32 }
  0xab   :  { %5509 = vst [vmem:[#allocation31_spill] sm:$0xff] %v2627_v42  ;;  %5512 = vst [vmem:[#allocation146_spill] sm:$0xff] %v2633_v2  ;;  %v245_v35 = vld [vmem:[#allocation2 + $0x5b0] sm:$0xff]  ;;  %v246_v52 = vld [vmem:[#allocation2 + $0x5b8] sm:$0xff]  ;;  %v2639_v58 = vsub.f32 %v230_v14, %v486_v37  ;;  %v2643_v0 = vsub.f32 %v232_v25, %v488_v16 }
  0xac   :  { %v247_v8 = vld [vmem:[#allocation2 + $0x5c0] sm:$0xff]  ;;  %v489_v39 = vld [vmem:[#allocation4 + $0x550] sm:$0xff]  ;;  %v490_v33 = vld [vmem:[#allocation4 + $0x558] sm:$0xff]  ;;  %5515 = vst [vmem:[#allocation149_spill] sm:$0xff] %v2641_v54 }
  0xad   :  { %v491_v42 = vld [vmem:[#allocation4 + $0x560] sm:$0xff]  ;;  %5514 = vst [vmem:[#allocation148_spill] sm:$0xff] %v2639_v58  ;;  %5516 = vst [vmem:[#allocation150_spill] sm:$0xff] %v2643_v0  ;;  %v5517_v24 = vld [vmem:[#allocation33_spill] sm:$0xff]  ;;  %v2649_v56 = vsub.f32 %v233_v22, %v489_v39  ;;  %v2651_v17 = vsub.f32 %v234_v9, %v490_v33  ;;  %v2667_v9 = vmul.f32 %v2269_v55, %v2269_v55 }
  0xae   :  { %v2647_v27 = vmul.f32 %v5517_v24, %v5517_v24  ;;  %v248_v46 = vld [vmem:[#allocation2 + $0x5c8] sm:$0xff]  ;;  %v249_v4 = vld [vmem:[#allocation2 + $0x5d0] sm:$0xff]  ;;  %v250_v44 = vld [vmem:[#allocation2 + $0x5d8] sm:$0xff]  ;;  %v2653_v14 = vsub.f32 %v235_v31, %v491_v42 }
  0xaf   :  { %v492_v57 = vld [vmem:[#allocation4 + $0x568] sm:$0xff]  ;;  %v493_v63 = vld [vmem:[#allocation4 + $0x570] sm:$0xff]  ;;  %v494_v2 = vld [vmem:[#allocation4 + $0x578] sm:$0xff]  ;;  %5519 = vst [vmem:[#allocation151_spill] sm:$0xff] %v2651_v17 }
  0xb0   :  { %5518 = vst [vmem:[#allocation33_spill] sm:$0xff] %v2647_v27  ;;  %5520 = vst [vmem:[#allocation152_spill] sm:$0xff] %v2653_v14  ;;  %v5521_v21 = vld [vmem:[#allocation34_spill] sm:$0xff]  ;;  %v251_v16 = vld [vmem:[#allocation2 + $0x5e0] sm:$0xff]  ;;  %v2659_v54 = vsub.f32 %v236_v13, %v492_v57  ;;  %v2661_v58 = vsub.f32 %v237_v62, %v493_v63  ;;  %v2663_v22 = vsub.f32 %v238_v10, %v494_v2 }
  0xb1   :  { %v2657_v25 = vmul.f32 %v5521_v21, %v5521_v21  ;;  %v252_v32 = vld [vmem:[#allocation2 + $0x5e8] sm:$0xff]  ;;  %v253_v37 = vld [vmem:[#allocation2 + $0x5f0] sm:$0xff]  ;;  %v495_v24 = vld [vmem:[#allocation4 + $0x580] sm:$0xff]  ;;  %5526 = vst [vmem:[#allocation156_spill] sm:$0xff] %v2667_v9 }
  0xb2   :  { %v496_v27 = vld [vmem:[#allocation4 + $0x588] sm:$0xff]  ;;  %v497_v0 = vld [vmem:[#allocation4 + $0x590] sm:$0xff]  ;;  %5523 = vst [vmem:[#allocation153_spill] sm:$0xff] %v2659_v54  ;;  %5524 = vst [vmem:[#allocation154_spill] sm:$0xff] %v2661_v58  ;;  %v2669_v14 = vsub.f32 %v239_v45, %v495_v24 }
  0xb3   :  { %5522 = vst [vmem:[#allocation34_spill] sm:$0xff] %v2657_v25  ;;  %5525 = vst [vmem:[#allocation155_spill] sm:$0xff] %v2663_v22  ;;  %v254_v31 = vld [vmem:[#allocation2 + $0x5f8] sm:$0xff]  ;;  %v255_v42 = vld [vmem:[#allocation2 + $0x600] sm:$0xff]  ;;  %v2671_v17 = vsub.f32 %v240_v12, %v496_v27  ;;  %v2673_v13 = vsub.f32 %v241_v34, %v497_v0 }
  0xb4   :  { %v256_v39 = vld [vmem:[#allocation2 + $0x608] sm:$0xff]  ;;  %v498_v33 = vld [vmem:[#allocation4 + $0x598] sm:$0xff]  ;;  %v499_v21 = vld [vmem:[#allocation4 + $0x5a0] sm:$0xff]  ;;  %5527 = vst [vmem:[#allocation157_spill] sm:$0xff] %v2669_v14 }
  0xb5   :  { %v500_v25 = vld [vmem:[#allocation4 + $0x5a8] sm:$0xff]  ;;  %5528 = vst [vmem:[#allocation158_spill] sm:$0xff] %v2671_v17  ;;  %5529 = vst [vmem:[#allocation159_spill] sm:$0xff] %v2673_v13  ;;  %v5530_v62 = vld [vmem:[#allocation36_spill] sm:$0xff]  ;;  %v2679_v58 = vsub.f32 %v242_v43, %v498_v33  ;;  %v2681_v54 = vsub.f32 %v243_v36, %v499_v21  ;;  %v2697_v36 = vmul.f32 %v2279_v1, %v2279_v1 }
  0xb6   :  { %v2677_v10 = vmul.f32 %v5530_v62, %v5530_v62  ;;  %v257_v2 = vld [vmem:[#allocation2 + $0x610] sm:$0xff]  ;;  %v258_v63 = vld [vmem:[#allocation2 + $0x618] sm:$0xff]  ;;  %v259_v55 = vld [vmem:[#allocation2 + $0x620] sm:$0xff]  ;;  %v2683_v45 = vsub.f32 %v244_v23, %v500_v25 }
  0xb7   :  { %v501_v57 = vld [vmem:[#allocation4 + $0x5b0] sm:$0xff]  ;;  %v502_v9 = vld [vmem:[#allocation4 + $0x5b8] sm:$0xff]  ;;  %v503_v22 = vld [vmem:[#allocation4 + $0x5c0] sm:$0xff]  ;;  %5532 = vst [vmem:[#allocation160_spill] sm:$0xff] %v2681_v54 }
  0xb8   :  { %5531 = vst [vmem:[#allocation36_spill] sm:$0xff] %v2677_v10  ;;  %5533 = vst [vmem:[#allocation161_spill] sm:$0xff] %v2683_v45  ;;  %v5534_v12 = vld [vmem:[#allocation37_spill] sm:$0xff]  ;;  %v261_v27 = vld [vmem:[#allocation2 + $0x630] sm:$0xff]  ;;  %v2689_v17 = vsub.f32 %v245_v35, %v501_v57  ;;  %v2691_v14 = vsub.f32 %v246_v52, %v502_v9  ;;  %v2693_v43 = vsub.f32 %v247_v8, %v503_v22 }
  0xb9   :  { %v2687_v34 = vmul.f32 %v5534_v12, %v5534_v12  ;;  %v260_v0 = vld [vmem:[#allocation2 + $0x628] sm:$0xff]  ;;  %v262_v24 = vld [vmem:[#allocation2 + $0x638] sm:$0xff]  ;;  %v505_v10 = vld [vmem:[#allocation4 + $0x5d0] sm:$0xff]  ;;  %5539 = vst [vmem:[#allocation165_spill] sm:$0xff] %v2697_v36 }
  0xba   :  { %v504_v62 = vld [vmem:[#allocation4 + $0x5c8] sm:$0xff]  ;;  %v506_v13 = vld [vmem:[#allocation4 + $0x5d8] sm:$0xff]  ;;  %5536 = vst [vmem:[#allocation162_spill] sm:$0xff] %v2689_v17  ;;  %5537 = vst [vmem:[#allocation163_spill] sm:$0xff] %v2691_v14  ;;  %v2701_v54 = vsub.f32 %v249_v4, %v505_v10 }
  0xbb   :  { %5535 = vst [vmem:[#allocation37_spill] sm:$0xff] %v2687_v34  ;;  %5538 = vst [vmem:[#allocation164_spill] sm:$0xff] %v2693_v43  ;;  %v263_v23 = vld [vmem:[#allocation2 + $0x640] sm:$0xff]  ;;  %v264_v25 = vld [vmem:[#allocation2 + $0x648] sm:$0xff]  ;;  %v2699_v45 = vsub.f32 %v248_v46, %v504_v62  ;;  %v2703_v35 = vsub.f32 %v250_v44, %v506_v13 }
  0xbc   :  { %v265_v33 = vld [vmem:[#allocation2 + $0x650] sm:$0xff]  ;;  %v507_v21 = vld [vmem:[#allocation4 + $0x5e0] sm:$0xff]  ;;  %v508_v12 = vld [vmem:[#allocation4 + $0x5e8] sm:$0xff]  ;;  %5541 = vst [vmem:[#allocation167_spill] sm:$0xff] %v2701_v54 }
  0xbd   :  { %v509_v34 = vld [vmem:[#allocation4 + $0x5f0] sm:$0xff]  ;;  %5540 = vst [vmem:[#allocation166_spill] sm:$0xff] %v2699_v45  ;;  %5542 = vst [vmem:[#allocation168_spill] sm:$0xff] %v2703_v35  ;;  %v5543_v52 = vld [vmem:[#allocation39_spill] sm:$0xff]  ;;  %v2709_v14 = vsub.f32 %v251_v16, %v507_v21  ;;  %v2711_v17 = vsub.f32 %v252_v32, %v508_v12  ;;  %v2727_v32 = vmul.f32 %v2289_v11, %v2289_v11 }
  0xbe   :  { %v2707_v8 = vmul.f32 %v5543_v52, %v5543_v52  ;;  %v266_v22 = vld [vmem:[#allocation2 + $0x658] sm:$0xff]  ;;  %v267_v9 = vld [vmem:[#allocation2 + $0x660] sm:$0xff]  ;;  %v268_v1 = vld [vmem:[#allocation2 + $0x668] sm:$0xff]  ;;  %v2713_v46 = vsub.f32 %v253_v37, %v509_v34 }
  0xbf   :  { %v510_v57 = vld [vmem:[#allocation4 + $0x5f8] sm:$0xff]  ;;  %v511_v36 = vld [vmem:[#allocation4 + $0x600] sm:$0xff]  ;;  %v512_v43 = vld [vmem:[#allocation4 + $0x608] sm:$0xff]  ;;  %5545 = vst [vmem:[#allocation169_spill] sm:$0xff] %v2711_v17 }
  0xc0   :  { %5544 = vst [vmem:[#allocation39_spill] sm:$0xff] %v2707_v8  ;;  %5546 = vst [vmem:[#allocation170_spill] sm:$0xff] %v2713_v46  ;;  %v5547_v4 = vld [vmem:[#allocation40_spill] sm:$0xff]  ;;  %v269_v13 = vld [vmem:[#allocation2 + $0x670] sm:$0xff]  ;;  %v2719_v54 = vsub.f32 %v254_v31, %v510_v57  ;;  %v2721_v45 = vsub.f32 %v255_v42, %v511_v36  ;;  %v2723_v16 = vsub.f32 %v256_v39, %v512_v43 }
  0xc1   :  { %v2717_v44 = vmul.f32 %v5547_v4, %v5547_v4  ;;  %v270_v10 = vld [vmem:[#allocation2 + $0x678] sm:$0xff]  ;;  %v271_v62 = vld [vmem:[#allocation2 + $0x680] sm:$0xff]  ;;  %v513_v52 = vld [vmem:[#allocation4 + $0x610] sm:$0xff]  ;;  %5552 = vst [vmem:[#allocation174_spill] sm:$0xff] %v2727_v32 }
  0xc2   :  { %v514_v8 = vld [vmem:[#allocation4 + $0x618] sm:$0xff]  ;;  %v515_v35 = vld [vmem:[#allocation4 + $0x620] sm:$0xff]  ;;  %5549 = vst [vmem:[#allocation171_spill] sm:$0xff] %v2719_v54  ;;  %5550 = vst [vmem:[#allocation172_spill] sm:$0xff] %v2721_v45  ;;  %v2729_v46 = vsub.f32 %v257_v2, %v513_v52 }
  0xc3   :  { %5548 = vst [vmem:[#allocation40_spill] sm:$0xff] %v2717_v44  ;;  %5551 = vst [vmem:[#allocation173_spill] sm:$0xff] %v2723_v16  ;;  %v272_v37 = vld [vmem:[#allocation2 + $0x688] sm:$0xff]  ;;  %v273_v34 = vld [vmem:[#allocation2 + $0x690] sm:$0xff]  ;;  %v2731_v17 = vsub.f32 %v258_v63, %v514_v8  ;;  %v2733_v31 = vsub.f32 %v259_v55, %v515_v35 }
  0xc4   :  { %v274_v21 = vld [vmem:[#allocation2 + $0x698] sm:$0xff]  ;;  %v516_v12 = vld [vmem:[#allocation4 + $0x628] sm:$0xff]  ;;  %v517_v4 = vld [vmem:[#allocation4 + $0x630] sm:$0xff]  ;;  %5553 = vst [vmem:[#allocation175_spill] sm:$0xff] %v2729_v46 }
  0xc5   :  { %v518_v44 = vld [vmem:[#allocation4 + $0x638] sm:$0xff]  ;;  %5554 = vst [vmem:[#allocation176_spill] sm:$0xff] %v2731_v17  ;;  %5555 = vst [vmem:[#allocation177_spill] sm:$0xff] %v2733_v31  ;;  %v5556_v42 = vld [vmem:[#allocation42_spill] sm:$0xff]  ;;  %v2739_v45 = vsub.f32 %v260_v0, %v516_v12  ;;  %v2741_v54 = vsub.f32 %v261_v27, %v517_v4  ;;  %v2757_v27 = vmul.f32 %v2299_v18, %v2299_v18 }
  0xc6   :  { %v2737_v39 = vmul.f32 %v5556_v42, %v5556_v42  ;;  %v275_v43 = vld [vmem:[#allocation2 + $0x6a0] sm:$0xff]  ;;  %v276_v36 = vld [vmem:[#allocation2 + $0x6a8] sm:$0xff]  ;;  %v277_v11 = vld [vmem:[#allocation2 + $0x6b0] sm:$0xff]  ;;  %v2743_v2 = vsub.f32 %v262_v24, %v518_v44 }
  0xc7   :  { %v519_v57 = vld [vmem:[#allocation4 + $0x640] sm:$0xff]  ;;  %v520_v32 = vld [vmem:[#allocation4 + $0x648] sm:$0xff]  ;;  %v521_v16 = vld [vmem:[#allocation4 + $0x650] sm:$0xff]  ;;  %5558 = vst [vmem:[#allocation178_spill] sm:$0xff] %v2741_v54 }
  0xc8   :  { %5557 = vst [vmem:[#allocation42_spill] sm:$0xff] %v2737_v39  ;;  %5559 = vst [vmem:[#allocation179_spill] sm:$0xff] %v2743_v2  ;;  %v5560_v63 = vld [vmem:[#allocation43_spill] sm:$0xff]  ;;  %v279_v8 = vld [vmem:[#allocation2 + $0x6c0] sm:$0xff]  ;;  %v2749_v17 = vsub.f32 %v263_v23, %v519_v57  ;;  %v2751_v46 = vsub.f32 %v264_v25, %v520_v32  ;;  %v2753_v0 = vsub.f32 %v265_v33, %v521_v16 }
  0xc9   :  { %v2747_v55 = vmul.f32 %v5560_v63, %v5560_v63  ;;  %v278_v35 = vld [vmem:[#allocation2 + $0x6b8] sm:$0xff]  ;;  %v280_v52 = vld [vmem:[#allocation2 + $0x6c8] sm:$0xff]  ;;  %v523_v39 = vld [vmem:[#allocation4 + $0x660] sm:$0xff]  ;;  %5565 = vst [vmem:[#allocation183_spill] sm:$0xff] %v2757_v27 }
  0xca   :  { %v522_v42 = vld [vmem:[#allocation4 + $0x658] sm:$0xff]  ;;  %v524_v31 = vld [vmem:[#allocation4 + $0x668] sm:$0xff]  ;;  %5562 = vst [vmem:[#allocation180_spill] sm:$0xff] %v2749_v17  ;;  %5563 = vst [vmem:[#allocation181_spill] sm:$0xff] %v2751_v46  ;;  %v2761_v54 = vsub.f32 %v267_v9, %v523_v39 }
  0xcb   :  { %5561 = vst [vmem:[#allocation43_spill] sm:$0xff] %v2747_v55  ;;  %5564 = vst [vmem:[#allocation182_spill] sm:$0xff] %v2753_v0  ;;  %v281_v24 = vld [vmem:[#allocation2 + $0x6d0] sm:$0xff]  ;;  %v282_v44 = vld [vmem:[#allocation2 + $0x6d8] sm:$0xff]  ;;  %v2759_v2 = vsub.f32 %v266_v22, %v522_v42  ;;  %v2763_v23 = vsub.f32 %v268_v1, %v524_v31 }
  0xcc   :  { %v283_v12 = vld [vmem:[#allocation2 + $0x6e0] sm:$0xff]  ;;  %v525_v4 = vld [vmem:[#allocation4 + $0x670] sm:$0xff]  ;;  %v526_v63 = vld [vmem:[#allocation4 + $0x678] sm:$0xff]  ;;  %5567 = vst [vmem:[#allocation185_spill] sm:$0xff] %v2761_v54 }
  0xcd   :  { %v527_v55 = vld [vmem:[#allocation4 + $0x680] sm:$0xff]  ;;  %5566 = vst [vmem:[#allocation184_spill] sm:$0xff] %v2759_v2  ;;  %5568 = vst [vmem:[#allocation186_spill] sm:$0xff] %v2763_v23  ;;  %v5569_v25 = vld [vmem:[#allocation45_spill] sm:$0xff]  ;;  %v2769_v46 = vsub.f32 %v269_v13, %v525_v4  ;;  %v2771_v17 = vsub.f32 %v270_v10, %v526_v63  ;;  %v2787_v10 = vmul.f32 %v2309_v26, %v2309_v26 }
  0xce   :  { %v2767_v33 = vmul.f32 %v5569_v25, %v5569_v25  ;;  %v284_v16 = vld [vmem:[#allocation2 + $0x6e8] sm:$0xff]  ;;  %v285_v32 = vld [vmem:[#allocation2 + $0x6f0] sm:$0xff]  ;;  %v286_v18 = vld [vmem:[#allocation2 + $0x6f8] sm:$0xff]  ;;  %v2773_v22 = vsub.f32 %v271_v62, %v527_v55 }
  0xcf   :  { %v528_v57 = vld [vmem:[#allocation4 + $0x688] sm:$0xff]  ;;  %v529_v27 = vld [vmem:[#allocation4 + $0x690] sm:$0xff]  ;;  %v530_v0 = vld [vmem:[#allocation4 + $0x698] sm:$0xff]  ;;  %5571 = vst [vmem:[#allocation187_spill] sm:$0xff] %v2771_v17 }
  0xd0   :  { %5570 = vst [vmem:[#allocation45_spill] sm:$0xff] %v2767_v33  ;;  %5572 = vst [vmem:[#allocation188_spill] sm:$0xff] %v2773_v22  ;;  %v5573_v9 = vld [vmem:[#allocation46_spill] sm:$0xff]  ;;  %v287_v31 = vld [vmem:[#allocation2 + $0x700] sm:$0xff]  ;;  %v2779_v54 = vsub.f32 %v272_v37, %v528_v57  ;;  %v2781_v2 = vsub.f32 %v273_v34, %v529_v27  ;;  %v2783_v13 = vsub.f32 %v274_v21, %v530_v0 }
  0xd1   :  { %v2777_v1 = vmul.f32 %v5573_v9, %v5573_v9  ;;  %v288_v39 = vld [vmem:[#allocation2 + $0x708] sm:$0xff]  ;;  %v289_v42 = vld [vmem:[#allocation2 + $0x710] sm:$0xff]  ;;  %v531_v25 = vld [vmem:[#allocation4 + $0x6a0] sm:$0xff]  ;;  %5578 = vst [vmem:[#allocation192_spill] sm:$0xff] %v2787_v10 }
  0xd2   :  { %v532_v33 = vld [vmem:[#allocation4 + $0x6a8] sm:$0xff]  ;;  %v533_v23 = vld [vmem:[#allocation4 + $0x6b0] sm:$0xff]  ;;  %5575 = vst [vmem:[#allocation189_spill] sm:$0xff] %v2779_v54  ;;  %5576 = vst [vmem:[#allocation190_spill] sm:$0xff] %v2781_v2  ;;  %v2789_v22 = vsub.f32 %v275_v43, %v531_v25 }
  0xd3   :  { %5574 = vst [vmem:[#allocation46_spill] sm:$0xff] %v2777_v1  ;;  %5577 = vst [vmem:[#allocation191_spill] sm:$0xff] %v2783_v13  ;;  %v290_v62 = vld [vmem:[#allocation2 + $0x718] sm:$0xff]  ;;  %v291_v55 = vld [vmem:[#allocation2 + $0x720] sm:$0xff]  ;;  %v2791_v17 = vsub.f32 %v276_v36, %v532_v33  ;;  %v2793_v37 = vsub.f32 %v277_v11, %v533_v23 }
  0xd4   :  { %v292_v4 = vld [vmem:[#allocation2 + $0x728] sm:$0xff]  ;;  %v534_v63 = vld [vmem:[#allocation4 + $0x6b8] sm:$0xff]  ;;  %v535_v9 = vld [vmem:[#allocation4 + $0x6c0] sm:$0xff]  ;;  %5579 = vst [vmem:[#allocation193_spill] sm:$0xff] %v2789_v22 }
  0xd5   :  { %v536_v1 = vld [vmem:[#allocation4 + $0x6c8] sm:$0xff]  ;;  %5580 = vst [vmem:[#allocation194_spill] sm:$0xff] %v2791_v17  ;;  %5581 = vst [vmem:[#allocation195_spill] sm:$0xff] %v2793_v37  ;;  %v5582_v34 = vld [vmem:[#allocation48_spill] sm:$0xff]  ;;  %v2799_v2 = vsub.f32 %v278_v35, %v534_v63  ;;  %v2801_v54 = vsub.f32 %v279_v8, %v535_v9  ;;  %v2817_v8 = vmul.f32 %v2319_v48, %v2319_v48 }
  0xd6   :  { %v2797_v21 = vmul.f32 %v5582_v34, %v5582_v34  ;;  %v293_v0 = vld [vmem:[#allocation2 + $0x730] sm:$0xff]  ;;  %v294_v27 = vld [vmem:[#allocation2 + $0x738] sm:$0xff]  ;;  %v295_v26 = vld [vmem:[#allocation2 + $0x740] sm:$0xff]  ;;  %v2803_v43 = vsub.f32 %v280_v52, %v536_v1 }
  0xd7   :  { %v537_v57 = vld [vmem:[#allocation4 + $0x6d0] sm:$0xff]  ;;  %v538_v10 = vld [vmem:[#allocation4 + $0x6d8] sm:$0xff]  ;;  %v539_v13 = vld [vmem:[#allocation4 + $0x6e0] sm:$0xff]  ;;  %5584 = vst [vmem:[#allocation196_spill] sm:$0xff] %v2801_v54 }
  0xd8   :  { %5583 = vst [vmem:[#allocation48_spill] sm:$0xff] %v2797_v21  ;;  %5585 = vst [vmem:[#allocation197_spill] sm:$0xff] %v2803_v43  ;;  %v5586_v36 = vld [vmem:[#allocation49_spill] sm:$0xff]  ;;  %v297_v33 = vld [vmem:[#allocation2 + $0x750] sm:$0xff]  ;;  %v2809_v17 = vsub.f32 %v281_v24, %v537_v57  ;;  %v2811_v22 = vsub.f32 %v282_v44, %v538_v10  ;;  %v2813_v35 = vsub.f32 %v283_v12, %v539_v13 }
  0xd9   :  { %v2807_v11 = vmul.f32 %v5586_v36, %v5586_v36  ;;  %v296_v23 = vld [vmem:[#allocation2 + $0x748] sm:$0xff]  ;;  %v298_v25 = vld [vmem:[#allocation2 + $0x758] sm:$0xff]  ;;  %v541_v21 = vld [vmem:[#allocation4 + $0x6f0] sm:$0xff]  ;;  %5591 = vst [vmem:[#allocation201_spill] sm:$0xff] %v2817_v8 }
  0xda   :  { %v540_v34 = vld [vmem:[#allocation4 + $0x6e8] sm:$0xff]  ;;  %v542_v37 = vld [vmem:[#allocation4 + $0x6f8] sm:$0xff]  ;;  %5588 = vst [vmem:[#allocation198_spill] sm:$0xff] %v2809_v17  ;;  %5589 = vst [vmem:[#allocation199_spill] sm:$0xff] %v2811_v22  ;;  %v2821_v54 = vsub.f32 %v285_v32, %v541_v21 }
  0xdb   :  { %5587 = vst [vmem:[#allocation49_spill] sm:$0xff] %v2807_v11  ;;  %5590 = vst [vmem:[#allocation200_spill] sm:$0xff] %v2813_v35  ;;  %v299_v52 = vld [vmem:[#allocation2 + $0x760] sm:$0xff]  ;;  %v300_v1 = vld [vmem:[#allocation2 + $0x768] sm:$0xff]  ;;  %v2819_v43 = vsub.f32 %v284_v16, %v540_v34  ;;  %v2823_v24 = vsub.f32 %v286_v18, %v542_v37 }
  0xdc   :  { %v301_v63 = vld [vmem:[#allocation2 + $0x770] sm:$0xff]  ;;  %v543_v9 = vld [vmem:[#allocation4 + $0x700] sm:$0xff]  ;;  %v544_v36 = vld [vmem:[#allocation4 + $0x708] sm:$0xff]  ;;  %5593 = vst [vmem:[#allocation203_spill] sm:$0xff] %v2821_v54 }
  0xdd   :  { %v545_v11 = vld [vmem:[#allocation4 + $0x710] sm:$0xff]  ;;  %5592 = vst [vmem:[#allocation202_spill] sm:$0xff] %v2819_v43  ;;  %5594 = vst [vmem:[#allocation204_spill] sm:$0xff] %v2823_v24  ;;  %v5595_v44 = vld [vmem:[#allocation51_spill] sm:$0xff]  ;;  %v2829_v22 = vsub.f32 %v287_v31, %v543_v9  ;;  %v2831_v17 = vsub.f32 %v288_v39, %v544_v36  ;;  %v2847_v39 = vmul.f32 %v2329_v40, %v2329_v40 }
  0xde   :  { %v2827_v12 = vmul.f32 %v5595_v44, %v5595_v44  ;;  %v302_v13 = vld [vmem:[#allocation2 + $0x778] sm:$0xff]  ;;  %v303_v10 = vld [vmem:[#allocation2 + $0x780] sm:$0xff]  ;;  %v304_v48 = vld [vmem:[#allocation2 + $0x788] sm:$0xff]  ;;  %v2833_v16 = vsub.f32 %v289_v42, %v545_v11 }
  0xdf   :  { %v546_v57 = vld [vmem:[#allocation4 + $0x718] sm:$0xff]  ;;  %v547_v8 = vld [vmem:[#allocation4 + $0x720] sm:$0xff]  ;;  %v548_v35 = vld [vmem:[#allocation4 + $0x728] sm:$0xff]  ;;  %5597 = vst [vmem:[#allocation205_spill] sm:$0xff] %v2831_v17 }
  0xe0   :  { %5596 = vst [vmem:[#allocation51_spill] sm:$0xff] %v2827_v12  ;;  %5598 = vst [vmem:[#allocation206_spill] sm:$0xff] %v2833_v16  ;;  %v5599_v32 = vld [vmem:[#allocation52_spill] sm:$0xff]  ;;  %v305_v37 = vld [vmem:[#allocation2 + $0x790] sm:$0xff]  ;;  %v2839_v54 = vsub.f32 %v290_v62, %v546_v57  ;;  %v2841_v43 = vsub.f32 %v291_v55, %v547_v8  ;;  %v2843_v31 = vsub.f32 %v292_v4, %v548_v35 }
  0xe1   :  { %v2837_v18 = vmul.f32 %v5599_v32, %v5599_v32  ;;  %v306_v21 = vld [vmem:[#allocation2 + $0x798] sm:$0xff]  ;;  %v307_v34 = vld [vmem:[#allocation2 + $0x7a0] sm:$0xff]  ;;  %v549_v44 = vld [vmem:[#allocation4 + $0x730] sm:$0xff]  ;;  %5604 = vst [vmem:[#allocation210_spill] sm:$0xff] %v2847_v39 }
  0xe2   :  { %v550_v12 = vld [vmem:[#allocation4 + $0x738] sm:$0xff]  ;;  %v551_v24 = vld [vmem:[#allocation4 + $0x740] sm:$0xff]  ;;  %5601 = vst [vmem:[#allocation207_spill] sm:$0xff] %v2839_v54  ;;  %5602 = vst [vmem:[#allocation208_spill] sm:$0xff] %v2841_v43  ;;  %v2849_v16 = vsub.f32 %v293_v0, %v549_v44 }
  0xe3   :  { %5600 = vst [vmem:[#allocation52_spill] sm:$0xff] %v2837_v18  ;;  %5603 = vst [vmem:[#allocation209_spill] sm:$0xff] %v2843_v31  ;;  %v308_v42 = vld [vmem:[#allocation2 + $0x7a8] sm:$0xff]  ;;  %v309_v11 = vld [vmem:[#allocation2 + $0x7b0] sm:$0xff]  ;;  %v2851_v17 = vsub.f32 %v294_v27, %v550_v12  ;;  %v2853_v62 = vsub.f32 %v295_v26, %v551_v24 }
  0xe4   :  { %v310_v9 = vld [vmem:[#allocation2 + $0x7b8] sm:$0xff]  ;;  %v552_v36 = vld [vmem:[#allocation4 + $0x748] sm:$0xff]  ;;  %v553_v32 = vld [vmem:[#allocation4 + $0x750] sm:$0xff]  ;;  %5605 = vst [vmem:[#allocation211_spill] sm:$0xff] %v2849_v16 }
  0xe5   :  { %v554_v18 = vld [vmem:[#allocation4 + $0x758] sm:$0xff]  ;;  %5606 = vst [vmem:[#allocation212_spill] sm:$0xff] %v2851_v17  ;;  %5607 = vst [vmem:[#allocation213_spill] sm:$0xff] %v2853_v62  ;;  %v5608_v55 = vld [vmem:[#allocation54_spill] sm:$0xff]  ;;  %v2859_v43 = vsub.f32 %v296_v23, %v552_v36  ;;  %v2861_v54 = vsub.f32 %v297_v33, %v553_v32  ;;  %v2877_v33 = vmul.f32 %v2339_v41, %v2339_v41 }
  0xe6   :  { %v2857_v4 = vmul.f32 %v5608_v55, %v5608_v55  ;;  %v311_v35 = vld [vmem:[#allocation2 + $0x7c0] sm:$0xff]  ;;  %v312_v8 = vld [vmem:[#allocation2 + $0x7c8] sm:$0xff]  ;;  %v313_v40 = vld [vmem:[#allocation2 + $0x7d0] sm:$0xff]  ;;  %v2863_v0 = vsub.f32 %v298_v25, %v554_v18 }
  0xe7   :  { %v555_v57 = vld [vmem:[#allocation4 + $0x760] sm:$0xff]  ;;  %v556_v39 = vld [vmem:[#allocation4 + $0x768] sm:$0xff]  ;;  %v557_v31 = vld [vmem:[#allocation4 + $0x770] sm:$0xff]  ;;  %5610 = vst [vmem:[#allocation214_spill] sm:$0xff] %v2861_v54 }
  0xe8   :  { %5609 = vst [vmem:[#allocation54_spill] sm:$0xff] %v2857_v4  ;;  %5611 = vst [vmem:[#allocation215_spill] sm:$0xff] %v2863_v0  ;;  %v5612_v27 = vld [vmem:[#allocation55_spill] sm:$0xff]  ;;  %v315_v12 = vld [vmem:[#allocation2 + $0x7e0] sm:$0xff]  ;;  %v2869_v17 = vsub.f32 %v299_v52, %v555_v57  ;;  %v2871_v16 = vsub.f32 %v300_v1, %v556_v39  ;;  %v2873_v23 = vsub.f32 %v301_v63, %v557_v31 }
  0xe9   :  { %v2867_v26 = vmul.f32 %v5612_v27, %v5612_v27  ;;  %v314_v24 = vld [vmem:[#allocation2 + $0x7d8] sm:$0xff]  ;;  %v316_v44 = vld [vmem:[#allocation2 + $0x7e8] sm:$0xff]  ;;  %v559_v4 = vld [vmem:[#allocation4 + $0x780] sm:$0xff]  ;;  %5615 = vst [vmem:[#allocation217_spill] sm:$0xff] %v2877_v33 }
  0xea   :  { %v558_v55 = vld [vmem:[#allocation4 + $0x778] sm:$0xff]  ;;  %v560_v62 = vld [vmem:[#allocation4 + $0x788] sm:$0xff]  ;;  %5614 = vst [vmem:[#allocation216_spill] sm:$0xff] %v2873_v23  ;;  %v317_v25 = vld [vmem:[#allocation2 + $0x7f0] sm:$0xff]  ;;  %v2881_v0 = vsub.f32 %v303_v10, %v559_v4 }
  0xeb   :  { %5613 = vst [vmem:[#allocation55_spill] sm:$0xff] %v2867_v26  ;;  %v318_v18 = vld [vmem:[#allocation2 + $0x7f8] sm:$0xff]  ;;  %v561_v36 = vld [vmem:[#allocation4 + $0x790] sm:$0xff]  ;;  %v563_v27 = vld [vmem:[#allocation4 + $0x7a0] sm:$0xff]  ;;  %v2879_v26 = vsub.f32 %v302_v13, %v558_v55  ;;  %v2883_v54 = vsub.f32 %v304_v48, %v560_v62 }
  0xec   :  { %v562_v32 = vld [vmem:[#allocation4 + $0x798] sm:$0xff]  ;;  %v5616_v52 = vld [vmem:[#allocation57_spill] sm:$0xff]  ;;  %v565_v31 = vld [vmem:[#allocation4 + $0x7b0] sm:$0xff]  ;;  %v2889_v41 = vsub.f32 %v305_v37, %v561_v36  ;;  %v2893_v33 = vsub.f32 %v307_v34, %v563_v27  ;;  %v2907_v37 = vmul.f32 %v2349_v49, %v2349_v49 }
  0xed   :  { %v2887_v1 = vmul.f32 %v5616_v52, %v5616_v52  ;;  %v564_v63 = vld [vmem:[#allocation4 + $0x7a8] sm:$0xff]  ;;  %v566_v39 = vld [vmem:[#allocation4 + $0x7b8] sm:$0xff]  ;;  %v2891_v57 = vsub.f32 %v306_v21, %v562_v32  ;;  %v5617_v23 = vld [vmem:[#allocation58_spill] sm:$0xff]  ;;  %v2901_v55 = vsub.f32 %v309_v11, %v565_v31 }
  0xee   :  { %v2897_v13 = vmul.f32 %v5617_v23, %v5617_v23  ;;  %v567_v10 = vld [vmem:[#allocation4 + $0x7c0] sm:$0xff]  ;;  %v568_v48 = vld [vmem:[#allocation4 + $0x7c8] sm:$0xff]  ;;  %v569_v62 = vld [vmem:[#allocation4 + $0x7d0] sm:$0xff]  ;;  %v2899_v4 = vsub.f32 %v308_v42, %v564_v63  ;;  %v2903_v52 = vsub.f32 %v310_v9, %v566_v39 }
  0xef   :  { %v570_v21 = vld [vmem:[#allocation4 + $0x7d8] sm:$0xff]  ;;  %v571_v34 = vld [vmem:[#allocation4 + $0x7e0] sm:$0xff]  ;;  %v572_v36 = vld [vmem:[#allocation4 + $0x7e8] sm:$0xff]  ;;  %v2909_v32 = vsub.f32 %v311_v35, %v567_v10  ;;  %v2911_v23 = vsub.f32 %v312_v8, %v568_v48  ;;  %v2913_v27 = vsub.f32 %v313_v40, %v569_v62  ;;  %v2947_v48 = vmul.f32 %v2369_v51, %v2369_v51 }
  0xf0   :  { %5618 = vst [vmem:[#allocation57_spill] sm:$0xff] %v2897_v13  ;;  %v5619_v13 = vld [vmem:[#allocation60_spill] sm:$0xff]  ;;  %v573_v11 = vld [vmem:[#allocation4 + $0x7f0] sm:$0xff]  ;;  %v574_v9 = vld [vmem:[#allocation4 + $0x7f8] sm:$0xff]  ;;  %v2919_v63 = vsub.f32 %v314_v24, %v570_v21  ;;  %v2921_v31 = vsub.f32 %v315_v12, %v571_v34  ;;  %v2923_v49 = vsub.f32 %v316_v44, %v572_v36  ;;  %v2959_v21 = vmul.f32 %v2379_v59, %v2379_v59 }
  0xf1   :  { %v2917_v42 = vmul.f32 %v5619_v13, %v5619_v13  ;;  %v5620_v39 = vld [vmem:[#allocation61_spill] sm:$0xff]  ;;  %v2929_v8 = vsub.f32 %v317_v25, %v573_v11  ;;  %v2931_v40 = vsub.f32 %v318_v18, %v574_v9  ;;  %v2935_v13 = vmul.f32 %v2359_v50, %v2359_v50  ;;  %v5621_v10 = vld [vmem:[#allocation63_spill] sm:$0xff]  ;;  %v5622_v12 = vld [vmem:[#allocation64_spill] sm:$0xff] }
  0xf2   :  { %v2927_v35 = vmul.f32 %v5620_v39, %v5620_v39  ;;  %v2939_v24 = vmul.f32 %v5621_v10, %v5621_v10  ;;  %v2943_v44 = vmul.f32 %v5622_v12, %v5622_v12  ;;  %v5623_v25 = vld [vmem:[#allocation66_spill] sm:$0xff]  ;;  %v5624_v62 = vld [vmem:[#allocation67_spill] sm:$0xff]  ;;  %v5625_v34 = vld [vmem:[#allocation69_spill] sm:$0xff]  ;;  %v2971_v9 = vmul.f32 %v2389_v60, %v2389_v60 }
  0xf3   :  { %v2951_v18 = vmul.f32 %v5623_v25, %v5623_v25  ;;  %v2955_v50 = vmul.f32 %v5624_v62, %v5624_v62  ;;  %v2963_v36 = vmul.f32 %v5625_v34, %v5625_v34  ;;  %v5626_v11 = vld [vmem:[#allocation70_spill] sm:$0xff]  ;;  %v5627_v39 = vld [vmem:[#allocation72_spill] sm:$0xff]  ;;  %v5629_v12 = vld [vmem:[#allocation73_spill] sm:$0xff]  ;;  %v2983_v25 = vmul.f32 %v2399_v61, %v2399_v61 }
  0xf4   :  { %v2967_v51 = vmul.f32 %v5626_v11, %v5626_v11  ;;  %v2975_v10 = vmul.f32 %v5627_v39, %v5627_v39  ;;  %v2979_v59 = vmul.f32 %v5629_v12, %v5629_v12  ;;  %v5632_v62 = vld [vmem:[#allocation75_spill] sm:$0xff]  ;;  %v5633_v11 = vld [vmem:[#allocation76_spill] sm:$0xff]  ;;  %v2995_v39 = vmul.f32 %v2409_v5, %v2409_v5 }
  0xf5   :  { %5631 = vst [vmem:[#allocation61_spill] sm:$0xff] %v2983_v25  ;;  %v2987_v34 = vmul.f32 %v5632_v62, %v5632_v62  ;;  %v2991_v60 = vmul.f32 %v5633_v11, %v5633_v11  ;;  %v3007_v62 = vmul.f32 %v2419_v6, %v2419_v6  ;;  %v5639_v25 = vld [vmem:[#allocation81_spill] sm:$0xff] }
  0xf6   :  { %5628 = vst [vmem:[#allocation58_spill] sm:$0xff] %v2975_v10  ;;  %5630 = vst [vmem:[#allocation60_spill] sm:$0xff] %v2979_v59  ;;  %v5635_v10 = vld [vmem:[#allocation78_spill] sm:$0xff]  ;;  %v5637_v59 = vld [vmem:[#allocation79_spill] sm:$0xff]  ;;  %v3011_v11 = vmul.f32 %v5639_v25, %v5639_v25  ;;  %v3031_v25 = vmul.f32 %v2439_v15, %v2439_v15 }
  0xf7   :  { %5634 = vst [vmem:[#allocation63_spill] sm:$0xff] %v2991_v60  ;;  %v2999_v12 = vmul.f32 %v5635_v10, %v5635_v10  ;;  %v3003_v61 = vmul.f32 %v5637_v59, %v5637_v59  ;;  %v5641_v60 = vld [vmem:[#allocation82_spill] sm:$0xff]  ;;  %v3019_v10 = vmul.f32 %v2429_v7, %v2429_v7 }
  0xf8   :  { %5640 = vst [vmem:[#allocation67_spill] sm:$0xff] %v3011_v11  ;;  %v3015_v5 = vmul.f32 %v5641_v60, %v5641_v60  ;;  %v5647_v11 = vld [vmem:[#allocation87_spill] sm:$0xff] }
  0xf9   :  { %5636 = vst [vmem:[#allocation64_spill] sm:$0xff] %v2999_v12  ;;  %5638 = vst [vmem:[#allocation66_spill] sm:$0xff] %v3003_v61  ;;  %v5643_v12 = vld [vmem:[#allocation84_spill] sm:$0xff]  ;;  %v5645_v61 = vld [vmem:[#allocation85_spill] sm:$0xff]  ;;  %v3035_v60 = vmul.f32 %v5647_v11, %v5647_v11  ;;  %v3055_v11 = vmul.f32 %v2459_v20, %v2459_v20 }
  0xfa   :  { %5642 = vst [vmem:[#allocation69_spill] sm:$0xff] %v3015_v5  ;;  %v3023_v59 = vmul.f32 %v5643_v12, %v5643_v12  ;;  %v3027_v6 = vmul.f32 %v5645_v61, %v5645_v61  ;;  %v5649_v5 = vld [vmem:[#allocation88_spill] sm:$0xff]  ;;  %v3043_v12 = vmul.f32 %v2449_v19, %v2449_v19 }
  0xfb   :  { %5648 = vst [vmem:[#allocation73_spill] sm:$0xff] %v3035_v60  ;;  %v3039_v7 = vmul.f32 %v5649_v5, %v5649_v5  ;;  %v5655_v60 = vld [vmem:[#allocation93_spill] sm:$0xff] }
  0xfc   :  { %5644 = vst [vmem:[#allocation70_spill] sm:$0xff] %v3023_v59  ;;  %5646 = vst [vmem:[#allocation72_spill] sm:$0xff] %v3027_v6  ;;  %v5652_v59 = vld [vmem:[#allocation90_spill] sm:$0xff]  ;;  %v5654_v6 = vld [vmem:[#allocation91_spill] sm:$0xff]  ;;  %v3059_v5 = vmul.f32 %v5655_v60, %v5655_v60  ;;  %v3079_v60 = vmul.f32 %v2479_v29, %v2479_v29 }
  0xfd   :  { %5650 = vst [vmem:[#allocation75_spill] sm:$0xff] %v3039_v7  ;;  %5651 = vst [vmem:[#allocation76_spill] sm:$0xff] %v3043_v12  ;;  %v3047_v61 = vmul.f32 %v5652_v59, %v5652_v59  ;;  %v3051_v15 = vmul.f32 %v5654_v6, %v5654_v6  ;;  %v5657_v7 = vld [vmem:[#allocation94_spill] sm:$0xff]  ;;  %v3067_v59 = vmul.f32 %v2469_v28, %v2469_v28  ;;  %v5662_v12 = vld [vmem:[#allocation97_spill] sm:$0xff] }
  0xfe   :  { %5656 = vst [vmem:[#allocation79_spill] sm:$0xff] %v3059_v5  ;;  %v3063_v19 = vmul.f32 %v5657_v7, %v5657_v7  ;;  %v3075_v20 = vmul.f32 %v5662_v12, %v5662_v12  ;;  %5664 = vst [vmem:[#allocation87_spill] sm:$0xff] %v3079_v60  ;;  %v5665_v5 = vld [vmem:[#allocation99_spill] sm:$0xff]  ;;  %v5675_v60 = vld [vmem:[#allocation106_spill] sm:$0xff] }
  0xff   :  { %5653 = vst [vmem:[#allocation78_spill] sm:$0xff] %v3047_v61  ;;  %5659 = vst [vmem:[#allocation82_spill] sm:$0xff] %v3067_v59  ;;  %v5660_v61 = vld [vmem:[#allocation96_spill] sm:$0xff]  ;;  %v3083_v7 = vmul.f32 %v5665_v5, %v5665_v5  ;;  %v5668_v59 = vld [vmem:[#allocation102_spill] sm:$0xff]  ;;  %v3103_v5 = vmul.f32 %v2499_v38, %v2499_v38 }
 0x100   :  { %5658 = vst [vmem:[#allocation81_spill] sm:$0xff] %v3063_v19  ;;  %v3071_v6 = vmul.f32 %v5660_v61, %v5660_v61  ;;  %5663 = vst [vmem:[#allocation85_spill] sm:$0xff] %v3075_v20  ;;  %v5666_v19 = vld [vmem:[#allocation100_spill] sm:$0xff]  ;;  %v3091_v61 = vmul.f32 %v5668_v59, %v5668_v59 }
 0x101   :  { %v3087_v28 = vmul.f32 %v5666_v19, %v5666_v19  ;;  %v5672_v20 = vld [vmem:[#allocation104_spill] sm:$0xff]  ;;  %5674 = vst [vmem:[#allocation94_spill] sm:$0xff] %v3103_v5  ;;  %v3107_v19 = vmul.f32 %v5675_v60, %v5675_v60 }
 0x102   :  { %5661 = vst [vmem:[#allocation84_spill] sm:$0xff] %v3071_v6  ;;  %5669 = vst [vmem:[#allocation90_spill] sm:$0xff] %v3091_v61  ;;  %v5670_v6 = vld [vmem:[#allocation103_spill] sm:$0xff]  ;;  %v3099_v29 = vmul.f32 %v5672_v20, %v5672_v20  ;;  %v5679_v61 = vld [vmem:[#allocation108_spill] sm:$0xff] }
 0x103   :  { %5667 = vst [vmem:[#allocation88_spill] sm:$0xff] %v3087_v28  ;;  %v3095_v12 = vmul.f32 %v5670_v6, %v5670_v6  ;;  %5676 = vst [vmem:[#allocation96_spill] sm:$0xff] %v3107_v19  ;;  %v5677_v28 = vld [vmem:[#allocation107_spill] sm:$0xff]  ;;  %v3115_v6 = vmul.f32 %v5679_v61, %v5679_v61  ;;  %v5684_v5 = vld [vmem:[#allocation112_spill] sm:$0xff] }
 0x104   :  { %5673 = vst [vmem:[#allocation93_spill] sm:$0xff] %v3099_v29  ;;  %v3111_v59 = vmul.f32 %v5677_v28, %v5677_v28  ;;  %v5682_v29 = vld [vmem:[#allocation110_spill] sm:$0xff]  ;;  %v3127_v60 = vmul.f32 %v5684_v5, %v5684_v5  ;;  %v5686_v19 = vld [vmem:[#allocation113_spill] sm:$0xff] }
 0x105   :  { %5671 = vst [vmem:[#allocation91_spill] sm:$0xff] %v3095_v12  ;;  %v5680_v12 = vld [vmem:[#allocation109_spill] sm:$0xff]  ;;  %v3123_v38 = vmul.f32 %v5682_v29, %v5682_v29  ;;  %v3131_v28 = vmul.f32 %v5686_v19, %v5686_v19 }
 0x106   :  { %5678 = vst [vmem:[#allocation97_spill] sm:$0xff] %v3111_v59  ;;  %v3119_v20 = vmul.f32 %v5680_v12, %v5680_v12  ;;  %5685 = vst [vmem:[#allocation102_spill] sm:$0xff] %v3127_v60  ;;  %v5688_v59 = vld [vmem:[#allocation114_spill] sm:$0xff]  ;;  %v3139_v12 = vmul.f32 %v2529_v30, %v2529_v30  ;;  %v5695_v60 = vld [vmem:[#allocation117_spill] sm:$0xff] }
 0x107   :  { %5683 = vst [vmem:[#allocation100_spill] sm:$0xff] %v3123_v38  ;;  %5687 = vst [vmem:[#allocation103_spill] sm:$0xff] %v3131_v28  ;;  %v3135_v61 = vmul.f32 %v5688_v59, %v5688_v59  ;;  %v5693_v38 = vld [vmem:[#allocation116_spill] sm:$0xff]  ;;  %v3151_v19 = vmul.f32 %v5695_v60, %v5695_v60  ;;  %v5696_v28 = vld [vmem:[#allocation118_spill] sm:$0xff] }
 0x108   :  { %5681 = vst [vmem:[#allocation99_spill] sm:$0xff] %v3119_v20  ;;  %5690 = vst [vmem:[#allocation106_spill] sm:$0xff] %v3139_v12  ;;  %v5691_v20 = vld [vmem:[#allocation115_spill] sm:$0xff]  ;;  %v3147_v5 = vmul.f32 %v5693_v38, %v5693_v38  ;;  %v3155_v59 = vmul.f32 %v5696_v28, %v5696_v28  ;;  %v5700_v12 = vld [vmem:[#allocation121_spill] sm:$0xff]  ;;  %v3175_v28 = vmul.f32 %v2559_v47, %v2559_v47 }
 0x109   :  { %5689 = vst [vmem:[#allocation104_spill] sm:$0xff] %v3135_v61  ;;  %v3143_v29 = vmul.f32 %v5691_v20, %v5691_v20  ;;  %v5698_v61 = vld [vmem:[#allocation119_spill] sm:$0xff]  ;;  %v3163_v20 = vmul.f32 %v5700_v12, %v5700_v12 }
 0x10a   :  { %5694 = vst [vmem:[#allocation108_spill] sm:$0xff] %v3147_v5  ;;  %5697 = vst [vmem:[#allocation109_spill] sm:$0xff] %v3155_v59  ;;  %v3159_v30 = vmul.f32 %v5698_v61, %v5698_v61  ;;  %v5704_v5 = vld [vmem:[#allocation123_spill] sm:$0xff]  ;;  %v5707_v59 = vld [vmem:[#allocation124_spill] sm:$0xff] }
 0x10b   :  { %5692 = vst [vmem:[#allocation107_spill] sm:$0xff] %v3143_v29  ;;  %5701 = vst [vmem:[#allocation112_spill] sm:$0xff] %v3163_v20  ;;  %v5702_v29 = vld [vmem:[#allocation122_spill] sm:$0xff]  ;;  %v3171_v60 = vmul.f32 %v5704_v5, %v5704_v5  ;;  %v3179_v61 = vmul.f32 %v5707_v59, %v5707_v59 }
 0x10c   :  { %5699 = vst [vmem:[#allocation110_spill] sm:$0xff] %v3159_v30  ;;  %v3167_v38 = vmul.f32 %v5702_v29, %v5702_v29  ;;  %5706 = vst [vmem:[#allocation115_spill] sm:$0xff] %v3175_v28  ;;  %v5709_v30 = vld [vmem:[#allocation125_spill] sm:$0xff]  ;;  %v5711_v20 = vld [vmem:[#allocation126_spill] sm:$0xff] }
 0x10d   :  { %5705 = vst [vmem:[#allocation114_spill] sm:$0xff] %v3171_v60  ;;  %5708 = vst [vmem:[#allocation116_spill] sm:$0xff] %v3179_v61  ;;  %v3183_v12 = vmul.f32 %v5709_v30, %v5709_v30  ;;  %v3187_v29 = vmul.f32 %v5711_v20, %v5711_v20  ;;  %v5714_v60 = vld [vmem:[#allocation128_spill] sm:$0xff]  ;;  %v5716_v28 = vld [vmem:[#allocation130_spill] sm:$0xff] }
 0x10e   :  { %5703 = vst [vmem:[#allocation113_spill] sm:$0xff] %v3167_v38  ;;  %v5712_v38 = vld [vmem:[#allocation127_spill] sm:$0xff]  ;;  %v3195_v47 = vmul.f32 %v5714_v60, %v5714_v60  ;;  %v3199_v59 = vmul.f32 %v5716_v28, %v5716_v28 }
 0x10f   :  { %5710 = vst [vmem:[#allocation117_spill] sm:$0xff] %v3183_v12  ;;  %v3191_v5 = vmul.f32 %v5712_v38, %v5712_v38  ;;  %v5718_v61 = vld [vmem:[#allocation131_spill] sm:$0xff]  ;;  %v5720_v12 = vld [vmem:[#allocation132_spill] sm:$0xff]  ;;  %v3211_v38 = vmul.f32 %v2589_v3, %v2589_v3 }
 0x110   :  { %5715 = vst [vmem:[#allocation119_spill] sm:$0xff] %v3195_v47  ;;  %5717 = vst [vmem:[#allocation121_spill] sm:$0xff] %v3199_v59  ;;  %v3203_v30 = vmul.f32 %v5718_v61, %v5718_v61  ;;  %v3207_v20 = vmul.f32 %v5720_v12, %v5720_v12  ;;  %v5725_v47 = vld [vmem:[#allocation134_spill] sm:$0xff]  ;;  %v5727_v59 = vld [vmem:[#allocation135_spill] sm:$0xff] }
 0x111   :  { %5713 = vst [vmem:[#allocation118_spill] sm:$0xff] %v3191_v5  ;;  %5722 = vst [vmem:[#allocation124_spill] sm:$0xff] %v3211_v38  ;;  %v5723_v5 = vld [vmem:[#allocation133_spill] sm:$0xff]  ;;  %v3219_v28 = vmul.f32 %v5725_v47, %v5725_v47  ;;  %v3223_v61 = vmul.f32 %v5727_v59, %v5727_v59  ;;  %v5732_v38 = vld [vmem:[#allocation139_spill] sm:$0xff] }
 0x112   :  { %5719 = vst [vmem:[#allocation122_spill] sm:$0xff] %v3203_v30  ;;  %5721 = vst [vmem:[#allocation123_spill] sm:$0xff] %v3207_v20  ;;  %v3215_v60 = vmul.f32 %v5723_v5, %v5723_v5  ;;  %v5728_v30 = vld [vmem:[#allocation136_spill] sm:$0xff]  ;;  %v5730_v20 = vld [vmem:[#allocation137_spill] sm:$0xff]  ;;  %v3235_v5 = vmul.f32 %v5732_v38, %v5732_v38 }
 0x113   :  { %5726 = vst [vmem:[#allocation126_spill] sm:$0xff] %v3219_v28  ;;  %v3227_v12 = vmul.f32 %v5728_v30, %v5728_v30  ;;  %v3231_v3 = vmul.f32 %v5730_v20, %v5730_v20  ;;  %v5736_v28 = vld [vmem:[#allocation141_spill] sm:$0xff]  ;;  %v3247_v30 = vmul.f32 %v2619_v53, %v2619_v53 }
 0x114   :  { %5724 = vst [vmem:[#allocation125_spill] sm:$0xff] %v3215_v60  ;;  %5733 = vst [vmem:[#allocation130_spill] sm:$0xff] %v3235_v5  ;;  %v5734_v60 = vld [vmem:[#allocation140_spill] sm:$0xff]  ;;  %v3243_v59 = vmul.f32 %v5736_v28, %v5736_v28 }
 0x115   :  { %5729 = vst [vmem:[#allocation127_spill] sm:$0xff] %v3227_v12  ;;  %5731 = vst [vmem:[#allocation128_spill] sm:$0xff] %v3231_v3  ;;  %v3239_v47 = vmul.f32 %v5734_v60, %v5734_v60  ;;  %v5739_v12 = vld [vmem:[#allocation142_spill] sm:$0xff]  ;;  %v5741_v3 = vld [vmem:[#allocation143_spill] sm:$0xff] }
 0x116   :  { %5737 = vst [vmem:[#allocation132_spill] sm:$0xff] %v3243_v59  ;;  %5738 = vst [vmem:[#allocation133_spill] sm:$0xff] %v3247_v30  ;;  %v3251_v20 = vmul.f32 %v5739_v12, %v5739_v12  ;;  %v3255_v38 = vmul.f32 %v5741_v3, %v5741_v3  ;;  %v5743_v5 = vld [vmem:[#allocation144_spill] sm:$0xff]  ;;  %v5746_v59 = vld [vmem:[#allocation146_spill] sm:$0xff] }
 0x117   :  { %5735 = vst [vmem:[#allocation131_spill] sm:$0xff] %v3239_v47  ;;  %v3259_v60 = vmul.f32 %v5743_v5, %v5743_v5  ;;  %v5744_v47 = vld [vmem:[#allocation145_spill] sm:$0xff]  ;;  %v3267_v53 = vmul.f32 %v5746_v59, %v5746_v59  ;;  %v5748_v30 = vld [vmem:[#allocation148_spill] sm:$0xff] }
 0x118   :  { %5740 = vst [vmem:[#allocation134_spill] sm:$0xff] %v3251_v20  ;;  %5742 = vst [vmem:[#allocation135_spill] sm:$0xff] %v3255_v38  ;;  %v3263_v28 = vmul.f32 %v5744_v47, %v5744_v47  ;;  %v3271_v12 = vmul.f32 %v5748_v30, %v5748_v30  ;;  %v5750_v20 = vld [vmem:[#allocation149_spill] sm:$0xff]  ;;  %v5752_v38 = vld [vmem:[#allocation150_spill] sm:$0xff]  ;;  %v3283_v47 = vmul.f32 %v2649_v56, %v2649_v56 }
 0x119   :  { %5747 = vst [vmem:[#allocation137_spill] sm:$0xff] %v3267_v53  ;;  %v3275_v3 = vmul.f32 %v5750_v20, %v5750_v20  ;;  %v3279_v5 = vmul.f32 %v5752_v38, %v5752_v38  ;;  %v5757_v53 = vld [vmem:[#allocation152_spill] sm:$0xff] }
 0x11a   :  { %5745 = vst [vmem:[#allocation136_spill] sm:$0xff] %v3263_v28  ;;  %5749 = vst [vmem:[#allocation139_spill] sm:$0xff] %v3271_v12  ;;  %v5755_v28 = vld [vmem:[#allocation151_spill] sm:$0xff]  ;;  %v3291_v30 = vmul.f32 %v5757_v53, %v5757_v53  ;;  %v5759_v12 = vld [vmem:[#allocation153_spill] sm:$0xff] }
 0x11b   :  { %5751 = vst [vmem:[#allocation140_spill] sm:$0xff] %v3275_v3  ;;  %5753 = vst [vmem:[#allocation141_spill] sm:$0xff] %v3279_v5  ;;  %v3287_v59 = vmul.f32 %v5755_v28, %v5755_v28  ;;  %v3295_v20 = vmul.f32 %v5759_v12, %v5759_v12  ;;  %v5761_v3 = vld [vmem:[#allocation154_spill] sm:$0xff]  ;;  %v5763_v5 = vld [vmem:[#allocation155_spill] sm:$0xff] }
 0x11c   :  { %5754 = vst [vmem:[#allocation142_spill] sm:$0xff] %v3283_v47  ;;  %5758 = vst [vmem:[#allocation144_spill] sm:$0xff] %v3291_v30  ;;  %v3299_v38 = vmul.f32 %v5761_v3, %v5761_v3  ;;  %v3303_v56 = vmul.f32 %v5763_v5, %v5763_v5  ;;  %v5765_v47 = vld [vmem:[#allocation157_spill] sm:$0xff]  ;;  %v5768_v30 = vld [vmem:[#allocation159_spill] sm:$0xff]  ;;  %v3319_v3 = vmul.f32 %v2679_v58, %v2679_v58 }
 0x11d   :  { %5756 = vst [vmem:[#allocation143_spill] sm:$0xff] %v3287_v59  ;;  %5760 = vst [vmem:[#allocation145_spill] sm:$0xff] %v3295_v20  ;;  %v3307_v28 = vmul.f32 %v5765_v47, %v5765_v47  ;;  %v5766_v59 = vld [vmem:[#allocation158_spill] sm:$0xff]  ;;  %v3315_v12 = vmul.f32 %v5768_v30, %v5768_v30 }
 0x11e   :  { %5762 = vst [vmem:[#allocation146_spill] sm:$0xff] %v3299_v38  ;;  %5764 = vst [vmem:[#allocation148_spill] sm:$0xff] %v3303_v56  ;;  %v3311_v53 = vmul.f32 %v5766_v59, %v5766_v59  ;;  %v5771_v38 = vld [vmem:[#allocation160_spill] sm:$0xff]  ;;  %v5773_v56 = vld [vmem:[#allocation161_spill] sm:$0xff] }
 0x11f   :  { %5769 = vst [vmem:[#allocation150_spill] sm:$0xff] %v3315_v12  ;;  %5770 = vst [vmem:[#allocation151_spill] sm:$0xff] %v3319_v3  ;;  %v3323_v5 = vmul.f32 %v5771_v38, %v5771_v38  ;;  %v3327_v47 = vmul.f32 %v5773_v56, %v5773_v56  ;;  %v5775_v20 = vld [vmem:[#allocation162_spill] sm:$0xff]  ;;  %v5779_v12 = vld [vmem:[#allocation164_spill] sm:$0xff] }
 0x120   :  { %5767 = vst [vmem:[#allocation149_spill] sm:$0xff] %v3311_v53  ;;  %v3331_v59 = vmul.f32 %v5775_v20, %v5775_v20  ;;  %v5777_v53 = vld [vmem:[#allocation163_spill] sm:$0xff]  ;;  %v3339_v58 = vmul.f32 %v5779_v12, %v5779_v12  ;;  %v5780_v3 = vld [vmem:[#allocation166_spill] sm:$0xff] }
 0x121   :  { %5772 = vst [vmem:[#allocation152_spill] sm:$0xff] %v3323_v5  ;;  %5774 = vst [vmem:[#allocation153_spill] sm:$0xff] %v3327_v47  ;;  %v3335_v30 = vmul.f32 %v5777_v53, %v5777_v53  ;;  %v3343_v38 = vmul.f32 %v5780_v3, %v5780_v3  ;;  %v5782_v5 = vld [vmem:[#allocation167_spill] sm:$0xff]  ;;  %v5784_v47 = vld [vmem:[#allocation168_spill] sm:$0xff]  ;;  %v3355_v53 = vmul.f32 %v2709_v14, %v2709_v14 }
 0x122   :  { %5776 = vst [vmem:[#allocation154_spill] sm:$0xff] %v3331_v59  ;;  %v3347_v56 = vmul.f32 %v5782_v5, %v5782_v5  ;;  %v3351_v20 = vmul.f32 %v5784_v47, %v5784_v47  ;;  %v5789_v59 = vld [vmem:[#allocation170_spill] sm:$0xff] }
 0x123   :  { %5778 = vst [vmem:[#allocation155_spill] sm:$0xff] %v3335_v30  ;;  %5781 = vst [vmem:[#allocation157_spill] sm:$0xff] %v3343_v38  ;;  %v5787_v30 = vld [vmem:[#allocation169_spill] sm:$0xff]  ;;  %v3363_v3 = vmul.f32 %v5789_v59, %v5789_v59  ;;  %v5791_v38 = vld [vmem:[#allocation171_spill] sm:$0xff] }
 0x124   :  { %5783 = vst [vmem:[#allocation158_spill] sm:$0xff] %v3347_v56  ;;  %5785 = vst [vmem:[#allocation159_spill] sm:$0xff] %v3351_v20  ;;  %v3359_v12 = vmul.f32 %v5787_v30, %v5787_v30  ;;  %v3367_v5 = vmul.f32 %v5791_v38, %v5791_v38  ;;  %v5793_v56 = vld [vmem:[#allocation172_spill] sm:$0xff]  ;;  %v5794_v20 = vld [vmem:[#allocation173_spill] sm:$0xff] }
 0x125   :  { %5786 = vst [vmem:[#allocation160_spill] sm:$0xff] %v3355_v53  ;;  %5790 = vst [vmem:[#allocation162_spill] sm:$0xff] %v3363_v3  ;;  %v3371_v47 = vmul.f32 %v5793_v56, %v5793_v56  ;;  %v3375_v14 = vmul.f32 %v5794_v20, %v5794_v20  ;;  %v5796_v53 = vld [vmem:[#allocation175_spill] sm:$0xff]  ;;  %v5800_v3 = vld [vmem:[#allocation177_spill] sm:$0xff]  ;;  %v3391_v56 = vmul.f32 %v2739_v45, %v2739_v45 }
 0x126   :  { %5788 = vst [vmem:[#allocation161_spill] sm:$0xff] %v3359_v12  ;;  %5792 = vst [vmem:[#allocation163_spill] sm:$0xff] %v3367_v5  ;;  %v3379_v30 = vmul.f32 %v5796_v53, %v5796_v53  ;;  %v5798_v12 = vld [vmem:[#allocation176_spill] sm:$0xff]  ;;  %v3387_v38 = vmul.f32 %v5800_v3, %v5800_v3  ;;  %v5803_v5 = vld [vmem:[#allocation178_spill] sm:$0xff] }
 0x127   :  { %5795 = vst [vmem:[#allocation164_spill] sm:$0xff] %v3375_v14  ;;  %v3383_v59 = vmul.f32 %v5798_v12, %v5798_v12  ;;  %5802 = vst [vmem:[#allocation169_spill] sm:$0xff] %v3391_v56  ;;  %v3395_v20 = vmul.f32 %v5803_v5, %v5803_v5  ;;  %v5805_v14 = vld [vmem:[#allocation179_spill] sm:$0xff]  ;;  %v5812_v56 = vld [vmem:[#allocation184_spill] sm:$0xff] }
 0x128   :  { %5797 = vst [vmem:[#allocation166_spill] sm:$0xff] %v3379_v30  ;;  %5801 = vst [vmem:[#allocation168_spill] sm:$0xff] %v3387_v38  ;;  %v3399_v53 = vmul.f32 %v5805_v14, %v5805_v14  ;;  %v5807_v30 = vld [vmem:[#allocation180_spill] sm:$0xff]  ;;  %v5810_v38 = vld [vmem:[#allocation182_spill] sm:$0xff]  ;;  %v3415_v5 = vmul.f32 %v5812_v56, %v5812_v56 }
 0x129   :  { %5799 = vst [vmem:[#allocation167_spill] sm:$0xff] %v3383_v59  ;;  %5804 = vst [vmem:[#allocation170_spill] sm:$0xff] %v3395_v20  ;;  %v3403_v12 = vmul.f32 %v5807_v30, %v5807_v30  ;;  %v5808_v59 = vld [vmem:[#allocation181_spill] sm:$0xff]  ;;  %v3411_v45 = vmul.f32 %v5810_v38, %v5810_v38 }
 0x12a   :  { %5806 = vst [vmem:[#allocation171_spill] sm:$0xff] %v3399_v53  ;;  %v3407_v3 = vmul.f32 %v5808_v59, %v5808_v59  ;;  %5813 = vst [vmem:[#allocation175_spill] sm:$0xff] %v3415_v5  ;;  %v5814_v20 = vld [vmem:[#allocation185_spill] sm:$0xff]  ;;  %v5816_v53 = vld [vmem:[#allocation186_spill] sm:$0xff]  ;;  %v3427_v59 = vmul.f32 %v2769_v46, %v2769_v46 }
 0x12b   :  { %5811 = vst [vmem:[#allocation173_spill] sm:$0xff] %v3411_v45  ;;  %v3419_v14 = vmul.f32 %v5814_v20, %v5814_v20  ;;  %v3423_v30 = vmul.f32 %v5816_v53, %v5816_v53  ;;  %v5821_v45 = vld [vmem:[#allocation188_spill] sm:$0xff]  ;;  %v5823_v5 = vld [vmem:[#allocation189_spill] sm:$0xff] }
 0x12c   :  { %5809 = vst [vmem:[#allocation172_spill] sm:$0xff] %v3407_v3  ;;  %5818 = vst [vmem:[#allocation178_spill] sm:$0xff] %v3427_v59  ;;  %v5819_v3 = vld [vmem:[#allocation187_spill] sm:$0xff]  ;;  %v3435_v56 = vmul.f32 %v5821_v45, %v5821_v45  ;;  %v3439_v20 = vmul.f32 %v5823_v5, %v5823_v5  ;;  %v5828_v59 = vld [vmem:[#allocation193_spill] sm:$0xff] }
 0x12d   :  { %5815 = vst [vmem:[#allocation176_spill] sm:$0xff] %v3419_v14  ;;  %5817 = vst [vmem:[#allocation177_spill] sm:$0xff] %v3423_v30  ;;  %v3431_v38 = vmul.f32 %v5819_v3, %v5819_v3  ;;  %v5824_v14 = vld [vmem:[#allocation190_spill] sm:$0xff]  ;;  %v5826_v30 = vld [vmem:[#allocation191_spill] sm:$0xff]  ;;  %v3451_v3 = vmul.f32 %v5828_v59, %v5828_v59 }
 0x12e   :  { %5822 = vst [vmem:[#allocation180_spill] sm:$0xff] %v3435_v56  ;;  %v3443_v53 = vmul.f32 %v5824_v14, %v5824_v14  ;;  %v3447_v46 = vmul.f32 %v5826_v30, %v5826_v30  ;;  %v5832_v56 = vld [vmem:[#allocation195_spill] sm:$0xff]  ;;  %v3463_v14 = vmul.f32 %v2799_v2, %v2799_v2 }
 0x12f   :  { %5820 = vst [vmem:[#allocation179_spill] sm:$0xff] %v3431_v38  ;;  %5829 = vst [vmem:[#allocation184_spill] sm:$0xff] %v3451_v3  ;;  %v5830_v38 = vld [vmem:[#allocation194_spill] sm:$0xff]  ;;  %v3459_v5 = vmul.f32 %v5832_v56, %v5832_v56 }
 0x130   :  { %5825 = vst [vmem:[#allocation181_spill] sm:$0xff] %v3443_v53  ;;  %5827 = vst [vmem:[#allocation182_spill] sm:$0xff] %v3447_v46  ;;  %v3455_v45 = vmul.f32 %v5830_v38, %v5830_v38  ;;  %v5835_v53 = vld [vmem:[#allocation196_spill] sm:$0xff]  ;;  %v5837_v46 = vld [vmem:[#allocation197_spill] sm:$0xff] }
 0x131   :  { %5833 = vst [vmem:[#allocation186_spill] sm:$0xff] %v3459_v5  ;;  %5834 = vst [vmem:[#allocation187_spill] sm:$0xff] %v3463_v14  ;;  %v3467_v30 = vmul.f32 %v5835_v53, %v5835_v53  ;;  %v3471_v59 = vmul.f32 %v5837_v46, %v5837_v46  ;;  %v5839_v3 = vld [vmem:[#allocation198_spill] sm:$0xff]  ;;  %v5842_v5 = vld [vmem:[#allocation200_spill] sm:$0xff] }
 0x132   :  { %5831 = vst [vmem:[#allocation185_spill] sm:$0xff] %v3455_v45  ;;  %v3475_v38 = vmul.f32 %v5839_v3, %v5839_v3  ;;  %v5840_v45 = vld [vmem:[#allocation199_spill] sm:$0xff]  ;;  %v3483_v2 = vmul.f32 %v5842_v5, %v5842_v5  ;;  %v5844_v14 = vld [vmem:[#allocation202_spill] sm:$0xff] }
 0x133   :  { %5836 = vst [vmem:[#allocation188_spill] sm:$0xff] %v3467_v30  ;;  %5838 = vst [vmem:[#allocation189_spill] sm:$0xff] %v3471_v59  ;;  %v3479_v56 = vmul.f32 %v5840_v45, %v5840_v45  ;;  %v3487_v53 = vmul.f32 %v5844_v14, %v5844_v14  ;;  %v5846_v30 = vld [vmem:[#allocation203_spill] sm:$0xff]  ;;  %v5848_v59 = vld [vmem:[#allocation204_spill] sm:$0xff]  ;;  %v3499_v45 = vmul.f32 %v2829_v22, %v2829_v22 }
 0x134   :  { %5843 = vst [vmem:[#allocation191_spill] sm:$0xff] %v3483_v2  ;;  %v3491_v46 = vmul.f32 %v5846_v30, %v5846_v30  ;;  %v3495_v3 = vmul.f32 %v5848_v59, %v5848_v59  ;;  %v5853_v2 = vld [vmem:[#allocation206_spill] sm:$0xff] }
 0x135   :  { %5841 = vst [vmem:[#allocation190_spill] sm:$0xff] %v3479_v56  ;;  %5845 = vst [vmem:[#allocation193_spill] sm:$0xff] %v3487_v53  ;;  %v5851_v56 = vld [vmem:[#allocation205_spill] sm:$0xff]  ;;  %v3507_v14 = vmul.f32 %v5853_v2, %v5853_v2  ;;  %v5855_v53 = vld [vmem:[#allocation207_spill] sm:$0xff] }
 0x136   :  { %5847 = vst [vmem:[#allocation194_spill] sm:$0xff] %v3491_v46  ;;  %5849 = vst [vmem:[#allocation195_spill] sm:$0xff] %v3495_v3  ;;  %v3503_v5 = vmul.f32 %v5851_v56, %v5851_v56  ;;  %v3511_v30 = vmul.f32 %v5855_v53, %v5855_v53  ;;  %v5856_v46 = vld [vmem:[#allocation208_spill] sm:$0xff]  ;;  %v5858_v3 = vld [vmem:[#allocation209_spill] sm:$0xff] }
 0x137   :  { %5850 = vst [vmem:[#allocation196_spill] sm:$0xff] %v3499_v45  ;;  %5854 = vst [vmem:[#allocation198_spill] sm:$0xff] %v3507_v14  ;;  %v3515_v59 = vmul.f32 %v5856_v46, %v5856_v46  ;;  %v3519_v22 = vmul.f32 %v5858_v3, %v5858_v3  ;;  %v5860_v45 = vld [vmem:[#allocation211_spill] sm:$0xff]  ;;  %v5864_v14 = vld [vmem:[#allocation213_spill] sm:$0xff]  ;;  %v3535_v46 = vmul.f32 %v2859_v43, %v2859_v43 }
 0x138   :  { %5852 = vst [vmem:[#allocation197_spill] sm:$0xff] %v3503_v5  ;;  %v3523_v56 = vmul.f32 %v5860_v45, %v5860_v45  ;;  %v5862_v5 = vld [vmem:[#allocation212_spill] sm:$0xff]  ;;  %v3531_v53 = vmul.f32 %v5864_v14, %v5864_v14  ;;  %v3551_v14 = vmul.f32 %v2871_v16, %v2871_v16  ;;  %v3571_v16 = vmul.f32 %v2889_v41, %v2889_v41 }
 0x139   :  { %5857 = vst [vmem:[#allocation199_spill] sm:$0xff] %v3515_v59  ;;  %5859 = vst [vmem:[#allocation200_spill] sm:$0xff] %v3519_v22  ;;  %v3527_v2 = vmul.f32 %v5862_v5, %v5862_v5  ;;  %v5866_v59 = vld [vmem:[#allocation214_spill] sm:$0xff]  ;;  %v5868_v22 = vld [vmem:[#allocation215_spill] sm:$0xff]  ;;  %v3547_v5 = vmul.f32 %v2869_v17, %v2869_v17  ;;  %v3567_v17 = vmul.f32 %v2883_v54, %v2883_v54 }
 0x13a   :  { %5861 = vst [vmem:[#allocation202_spill] sm:$0xff] %v3523_v56  ;;  %5865 = vst [vmem:[#allocation204_spill] sm:$0xff] %v3535_v46  ;;  %v3539_v3 = vmul.f32 %v5866_v59, %v5866_v59  ;;  %v3543_v45 = vmul.f32 %v5868_v22, %v5868_v22  ;;  %v3559_v59 = vmul.f32 %v2879_v26, %v2879_v26  ;;  %v5917_v56 = vld [vmem:[#allocation65_spill] sm:$0xff] }
 0x13b   :  { %5863 = vst [vmem:[#allocation203_spill] sm:$0xff] %v3527_v2  ;;  %5870 = vst [vmem:[#allocation207_spill] sm:$0xff] %v3547_v5  ;;  %v5872_v2 = vld [vmem:[#allocation216_spill] sm:$0xff]  ;;  %v3563_v22 = vmul.f32 %v2881_v0, %v2881_v0  ;;  %v3579_v26 = vmul.f32 %v2893_v33, %v2893_v33  ;;  %v3583_v0 = vmul.f32 %v2899_v4, %v2899_v4 }
 0x13c   :  { %5867 = vst [vmem:[#allocation205_spill] sm:$0xff] %v3539_v3  ;;  %5869 = vst [vmem:[#allocation206_spill] sm:$0xff] %v3543_v45  ;;  %v3555_v43 = vmul.f32 %v5872_v2, %v5872_v2  ;;  %v3575_v2 = vmul.f32 %v2891_v57, %v2891_v57  ;;  %v3587_v54 = vmul.f32 %v2901_v55, %v2901_v55  ;;  %v5910_v5 = vld [vmem:[#allocation44_spill] sm:$0xff]  ;;  %v5914_v3 = vld [vmem:[#allocation53_spill] sm:$0xff] }
 0x13d   :  { %5871 = vst [vmem:[#allocation208_spill] sm:$0xff] %v3551_v14  ;;  %5874 = vst [vmem:[#allocation211_spill] sm:$0xff] %v3559_v59  ;;  %v3591_v41 = vmul.f32 %v2903_v52, %v2903_v52  ;;  %v3595_v57 = vmul.f32 %v2909_v32, %v2909_v32  ;;  %v3599_v33 = vmul.f32 %v2911_v23, %v2911_v23  ;;  %v5904_v59 = vld [vmem:[#allocation14_spill] sm:$0xff]  ;;  %v5907_v14 = vld [vmem:[#allocation32_spill] sm:$0xff] }
 0x13e   :  { %5873 = vst [vmem:[#allocation209_spill] sm:$0xff] %v3555_v43  ;;  %5875 = vst [vmem:[#allocation212_spill] sm:$0xff] %v3563_v22  ;;  %v3603_v4 = vmul.f32 %v2913_v27, %v2913_v27  ;;  %v3607_v55 = vmul.f32 %v2919_v63, %v2919_v63  ;;  %v3611_v52 = vmul.f32 %v2921_v31, %v2921_v31  ;;  %v5895_v31 = vld [vmem:[#allocation10_spill] sm:$0xff]  ;;  %v5905_v43 = vld [vmem:[#allocation29_spill] sm:$0xff] }
 0x13f   :  { %5876 = vst [vmem:[#allocation213_spill] sm:$0xff] %v3567_v17  ;;  %5877 = vst [vmem:[#allocation214_spill] sm:$0xff] %v3571_v16  ;;  %v3615_v32 = vmul.f32 %v2923_v49, %v2923_v49  ;;  %v3619_v23 = vmul.f32 %v2929_v8, %v2929_v8  ;;  %v3623_v27 = vmul.f32 %v2931_v40, %v2931_v40  ;;  %v5898_v49 = vld [vmem:[#allocation20_spill] sm:$0xff]  ;;  %v5902_v17 = vld [vmem:[#allocation13_spill] sm:$0xff] }
 0x140   :  { %5878 = vst [vmem:[#allocation215_spill] sm:$0xff] %v3575_v2  ;;  %5879 = vst [vmem:[#allocation216_spill] sm:$0xff] %v3579_v26  ;;  %v5899_v26 = vld [vmem:[#allocation12_spill] sm:$0xff]  ;;  %v5900_v2 = vld [vmem:[#allocation23_spill] sm:$0xff] }
 0x141   :  { %5880 = vst [vmem:[#allocation218_spill] sm:$0xff] %v3583_v0  ;;  %5881 = vst [vmem:[#allocation219_spill] sm:$0xff] %v3587_v54  ;;  %v1219_v8 = vadd.f32 %v5900_v2, %v5899_v26  ;;  %v5903_v40 = vld [vmem:[#allocation26_spill] sm:$0xff]  ;;  %v5912_v2 = vld [vmem:[#allocation59_spill] sm:$0xff] }
 0x142   :  { %5882 = vst [vmem:[#allocation220_spill] sm:$0xff] %v3591_v41  ;;  %5883 = vst [vmem:[#allocation221_spill] sm:$0xff] %v3595_v57  ;;  %v5894_v41 = vld [vmem:[#allocation17_spill] sm:$0xff]  ;;  %v5897_v57 = vld [vmem:[#allocation11_spill] sm:$0xff] }
 0x143   :  { %5884 = vst [vmem:[#allocation222_spill] sm:$0xff] %v3599_v33  ;;  %5885 = vst [vmem:[#allocation223_spill] sm:$0xff] %v3603_v4  ;;  %v5891_v4 = vld [vmem:[#allocation8_spill] sm:$0xff] }
 0x144   :  { %5886 = vst [vmem:[#allocation224_spill] sm:$0xff] %v3607_v55  ;;  %5887 = vst [vmem:[#allocation225_spill] sm:$0xff] %v3611_v52  ;;  %v5892_v33 = vld [vmem:[#allocation16_spill] sm:$0xff]  ;;  %v5893_v55 = vld [vmem:[#allocation9_spill] sm:$0xff] }
 0x145   :  { %5888 = vst [vmem:[#allocation226_spill] sm:$0xff] %v3615_v32  ;;  %5889 = vst [vmem:[#allocation227_spill] sm:$0xff] %v3619_v23  ;;  %v1095_v63 = vadd.f32 %v5892_v33, %v5891_v4  ;;  %v1126_v54 = vadd.f32 %v5894_v41, %v5893_v55  ;;  %v5896_v52 = vld [vmem:[#allocation18_spill] sm:$0xff]  ;;  %v1188_v32 = vadd.f32 %v5898_v49, %v5897_v57  ;;  %v5901_v23 = vld [vmem:[#allocation35_spill] sm:$0xff] }
 0x146   :  { %5890 = vst [vmem:[#allocation228_spill] sm:$0xff] %v3623_v27  ;;  %v1157_v0 = vadd.f32 %v5896_v52, %v5895_v31  ;;  %v1250_v27 = vadd.f32 %v5903_v40, %v5902_v17  ;;  %v1281_v33 = vadd.f32 %v5905_v43, %v5904_v59  ;;  %v5906_v4 = vld [vmem:[#allocation15_spill] sm:$0xff]  ;;  %v5908_v55 = vld [vmem:[#allocation38_spill] sm:$0xff]  ;;  %v5909_v52 = vld [vmem:[#allocation41_spill] sm:$0xff] }
 0x147   :  { %v1096_v16 = vadd.f32 %v1095_v63, %v5901_v23  ;;  %v1312_v41 = vadd.f32 %v5907_v14, %v5906_v4  ;;  %v1127_v22 = vadd.f32 %v1126_v54, %v5908_v55  ;;  %v1189_v57 = vadd.f32 %v1188_v32, %v5910_v5  ;;  %v5911_v49 = vld [vmem:[#allocation47_spill] sm:$0xff]  ;;  %v5913_v23 = vld [vmem:[#allocation50_spill] sm:$0xff]  ;;  %v5915_v40 = vld [vmem:[#allocation56_spill] sm:$0xff] }
 0x148   :  { %v1158_v31 = vadd.f32 %v1157_v0, %v5909_v52  ;;  %v1220_v45 = vadd.f32 %v1219_v8, %v5911_v49  ;;  %v1251_v63 = vadd.f32 %v1250_v27, %v5913_v23  ;;  %v1282_v17 = vadd.f32 %v1281_v33, %v5914_v3  ;;  %v5916_v43 = vld [vmem:[#allocation62_spill] sm:$0xff]  ;;  %v5918_v4 = vld [vmem:[#allocation68_spill] sm:$0xff]  ;;  %v5919_v55 = vld [vmem:[#allocation71_spill] sm:$0xff] }
 0x149   :  { %v1097_v26 = vadd.f32 %v1096_v16, %v5912_v2  ;;  %v1313_v46 = vadd.f32 %v1312_v41, %v5915_v40  ;;  %v1128_v59 = vadd.f32 %v1127_v22, %v5916_v43  ;;  %v1190_v54 = vadd.f32 %v1189_v57, %v5918_v4  ;;  %v5920_v52 = vld [vmem:[#allocation83_spill] sm:$0xff]  ;;  %v5921_v32 = vld [vmem:[#allocation74_spill] sm:$0xff]  ;;  %v5922_v49 = vld [vmem:[#allocation77_spill] sm:$0xff] }
 0x14a   :  { %v1159_v14 = vadd.f32 %v1158_v31, %v5917_v56  ;;  %v1221_v0 = vadd.f32 %v1220_v45, %v5919_v55  ;;  %v1252_v8 = vadd.f32 %v1251_v63, %v5921_v32  ;;  %v1283_v16 = vadd.f32 %v1282_v17, %v5922_v49  ;;  %v5923_v2 = vld [vmem:[#allocation80_spill] sm:$0xff]  ;;  %v5924_v23 = vld [vmem:[#allocation86_spill] sm:$0xff]  ;;  %v5925_v33 = vld [vmem:[#allocation89_spill] sm:$0xff] }
 0x14b   :  { %v1098_v5 = vadd.f32 %v1097_v26, %v5920_v52  ;;  %v1314_v27 = vadd.f32 %v1313_v46, %v5923_v2  ;;  %v1129_v3 = vadd.f32 %v1128_v59, %v5924_v23  ;;  %v5926_v40 = vld [vmem:[#allocation92_spill] sm:$0xff]  ;;  %v5927_v43 = vld [vmem:[#allocation95_spill] sm:$0xff]  ;;  %v5929_v4 = vld [vmem:[#allocation98_spill] sm:$0xff] }
 0x14c   :  { %v1160_v41 = vadd.f32 %v1159_v14, %v5925_v33  ;;  %v1191_v22 = vadd.f32 %v1190_v54, %v5926_v40  ;;  %v1222_v56 = vadd.f32 %v1221_v0, %v5927_v43  ;;  %v5928_v31 = vld [vmem:[#allocation19_spill] sm:$0xff]  ;;  %v1253_v45 = vadd.f32 %v1252_v8, %v5929_v4  ;;  %v5930_v55 = vld [vmem:[#allocation101_spill] sm:$0xff]  ;;  %v5934_v2 = vld [vmem:[#allocation22_spill] sm:$0xff] }
 0x14d   :  { %v1099_v57 = vadd.f32 %v1098_v5, %v5928_v31  ;;  %v1284_v26 = vadd.f32 %v1283_v16, %v5930_v55  ;;  %v5931_v52 = vld [vmem:[#allocation105_spill] sm:$0xff]  ;;  %v5932_v32 = vld [vmem:[#allocation111_spill] sm:$0xff]  ;;  %v5935_v23 = vld [vmem:[#allocation120_spill] sm:$0xff] }
 0x14e   :  { %v1315_v63 = vadd.f32 %v1314_v27, %v5931_v52  ;;  %v1130_v17 = vadd.f32 %v1129_v3, %v5932_v32  ;;  %v5933_v49 = vld [vmem:[#allocation21_spill] sm:$0xff]  ;;  %v1192_v59 = vadd.f32 %v1191_v22, %v5934_v2  ;;  %v1223_v14 = vadd.f32 %v1222_v56, %v5935_v23  ;;  %v5936_v33 = vld [vmem:[#allocation27_spill] sm:$0xff]  ;;  %v5937_v40 = vld [vmem:[#allocation24_spill] sm:$0xff] }
 0x14f   :  { %v1161_v46 = vadd.f32 %v1160_v41, %v5933_v49  ;;  %v1100_v54 = vadd.f32 %v1099_v57, %v5936_v33  ;;  %v1254_v0 = vadd.f32 %v1253_v45, %v5937_v40  ;;  %v5938_v43 = vld [vmem:[#allocation25_spill] sm:$0xff]  ;;  %v5940_v4 = vld [vmem:[#allocation28_spill] sm:$0xff]  ;;  %v5941_v55 = vld [vmem:[#allocation138_spill] sm:$0xff] }
 0x150   :  { %v1285_v5 = vadd.f32 %v1284_v26, %v5938_v43  ;;  %v5939_v31 = vld [vmem:[#allocation129_spill] sm:$0xff]  ;;  %v1131_v16 = vadd.f32 %v1130_v17, %v5940_v4  ;;  %v5942_v52 = vld [vmem:[#allocation30_spill] sm:$0xff]  ;;  %v5943_v32 = vld [vmem:[#allocation31_spill] sm:$0xff] }
 0x151   :  { %v1316_v8 = vadd.f32 %v1315_v63, %v5939_v31  ;;  %v1162_v27 = vadd.f32 %v1161_v46, %v5941_v55  ;;  %v1193_v3 = vadd.f32 %v1192_v59, %v5942_v52  ;;  %v1224_v41 = vadd.f32 %v1223_v14, %v5943_v32  ;;  %v5944_v49 = vld [vmem:[#allocation156_spill] sm:$0xff]  ;;  %v5945_v2 = vld [vmem:[#allocation147_spill] sm:$0xff]  ;;  %v5946_v23 = vld [vmem:[#allocation33_spill] sm:$0xff] }
 0x152   :  { %v1101_v22 = vadd.f32 %v1100_v54, %v5944_v49  ;;  %v1255_v56 = vadd.f32 %v1254_v0, %v5945_v2  ;;  %v1286_v57 = vadd.f32 %v1285_v5, %v5946_v23  ;;  %v5947_v33 = vld [vmem:[#allocation34_spill] sm:$0xff]  ;;  %v5948_v40 = vld [vmem:[#allocation36_spill] sm:$0xff]  ;;  %v5949_v43 = vld [vmem:[#allocation37_spill] sm:$0xff] }
 0x153   :  { %v1317_v45 = vadd.f32 %v1316_v8, %v5947_v33  ;;  %v1132_v26 = vadd.f32 %v1131_v16, %v5948_v40  ;;  %v1163_v63 = vadd.f32 %v1162_v27, %v5949_v43  ;;  %v5950_v31 = vld [vmem:[#allocation165_spill] sm:$0xff]  ;;  %v5951_v4 = vld [vmem:[#allocation39_spill] sm:$0xff]  ;;  %v5953_v52 = vld [vmem:[#allocation40_spill] sm:$0xff] }
 0x154   :  { %v1194_v17 = vadd.f32 %v1193_v3, %v5950_v31  ;;  %v1225_v46 = vadd.f32 %v1224_v41, %v5951_v4  ;;  %v5952_v55 = vld [vmem:[#allocation43_spill] sm:$0xff]  ;;  %v1256_v14 = vadd.f32 %v1255_v56, %v5953_v52  ;;  %v5954_v32 = vld [vmem:[#allocation174_spill] sm:$0xff]  ;;  %v5957_v23 = vld [vmem:[#allocation45_spill] sm:$0xff] }
 0x155   :  { %v1102_v59 = vadd.f32 %v1101_v22, %v5952_v55  ;;  %v1287_v54 = vadd.f32 %v1286_v57, %v5954_v32  ;;  %v5955_v49 = vld [vmem:[#allocation42_spill] sm:$0xff]  ;;  %v5956_v2 = vld [vmem:[#allocation183_spill] sm:$0xff]  ;;  %v1164_v8 = vadd.f32 %v1163_v63, %v5957_v23  ;;  %v5959_v40 = vld [vmem:[#allocation192_spill] sm:$0xff] }
 0x156   :  { %v1318_v0 = vadd.f32 %v1317_v45, %v5955_v49  ;;  %v1133_v5 = vadd.f32 %v1132_v26, %v5956_v2  ;;  %v5958_v33 = vld [vmem:[#allocation46_spill] sm:$0xff]  ;;  %v1226_v27 = vadd.f32 %v1225_v46, %v5959_v40  ;;  %v5960_v43 = vld [vmem:[#allocation51_spill] sm:$0xff]  ;;  %v5961_v31 = vld [vmem:[#allocation48_spill] sm:$0xff] }
 0x157   :  { %v1195_v16 = vadd.f32 %v1194_v17, %v5958_v33  ;;  %v1103_v3 = vadd.f32 %v1102_v59, %v5960_v43  ;;  %v1257_v41 = vadd.f32 %v1256_v14, %v5961_v31  ;;  %v5962_v4 = vld [vmem:[#allocation49_spill] sm:$0xff]  ;;  %v5964_v52 = vld [vmem:[#allocation52_spill] sm:$0xff]  ;;  %v5965_v32 = vld [vmem:[#allocation210_spill] sm:$0xff] }
 0x158   :  { %v1288_v22 = vadd.f32 %v1287_v54, %v5962_v4  ;;  %v5963_v55 = vld [vmem:[#allocation201_spill] sm:$0xff]  ;;  %v1134_v57 = vadd.f32 %v1133_v5, %v5964_v52  ;;  %v1165_v45 = vadd.f32 %v1164_v8, %v5965_v32  ;;  %v5966_v49 = vld [vmem:[#allocation54_spill] sm:$0xff]  ;;  %v5967_v2 = vld [vmem:[#allocation55_spill] sm:$0xff] }
 0x159   :  { %v1319_v56 = vadd.f32 %v1318_v0, %v5963_v55  ;;  %v1196_v26 = vadd.f32 %v1195_v16, %v5966_v49  ;;  %v1227_v63 = vadd.f32 %v1226_v27, %v5967_v2  ;;  %v1104_v17 = vadd.f32 %v1103_v3, %v2907_v37  ;;  %v5968_v23 = vld [vmem:[#allocation217_spill] sm:$0xff]  ;;  %v5970_v3 = vld [vmem:[#allocation58_spill] sm:$0xff]  ;;  %v5971_v31 = vld [vmem:[#allocation60_spill] sm:$0xff] }
 0x15a   :  { %v1258_v46 = vadd.f32 %v1257_v41, %v5968_v23  ;;  %v1289_v59 = vadd.f32 %v1288_v22, %v2887_v1  ;;  %v5969_v33 = vld [vmem:[#allocation57_spill] sm:$0xff]  ;;  %v1135_v54 = vadd.f32 %v1134_v57, %v2917_v42  ;;  %v1166_v0 = vadd.f32 %v1165_v45, %v2927_v35  ;;  %v5973_v4 = vld [vmem:[#allocation63_spill] sm:$0xff]  ;;  %v5974_v22 = vld [vmem:[#allocation64_spill] sm:$0xff] }
 0x15b   :  { %v1320_v14 = vadd.f32 %v1319_v56, %v5969_v33  ;;  %v1197_v5 = vadd.f32 %v1196_v26, %v2935_v13  ;;  %v1228_v8 = vadd.f32 %v1227_v63, %v2939_v24  ;;  %v1105_v16 = vadd.f32 %v1104_v17, %v2955_v50  ;;  %v5972_v41 = vld [vmem:[#allocation61_spill] sm:$0xff]  ;;  %v5975_v55 = vld [vmem:[#allocation66_spill] sm:$0xff]  ;;  %v5976_v56 = vld [vmem:[#allocation67_spill] sm:$0xff] }
 0x15c   :  { %v1259_v40 = vadd.f32 %v1258_v46, %v2943_v44  ;;  %v1290_v37 = vadd.f32 %v1289_v59, %v2947_v48  ;;  %v1136_v1 = vadd.f32 %v1135_v54, %v2959_v21  ;;  %v1167_v43 = vadd.f32 %v1166_v0, %v2963_v36  ;;  %v5977_v52 = vld [vmem:[#allocation69_spill] sm:$0xff]  ;;  %v5978_v32 = vld [vmem:[#allocation70_spill] sm:$0xff]  ;;  %v5979_v49 = vld [vmem:[#allocation72_spill] sm:$0xff] }
 0x15d   :  { %v1321_v27 = vadd.f32 %v1320_v14, %v2951_v18  ;;  %v1198_v42 = vadd.f32 %v1197_v5, %v2967_v51  ;;  %v1229_v35 = vadd.f32 %v1228_v8, %v2971_v9  ;;  %v1106_v13 = vadd.f32 %v1105_v16, %v2987_v34  ;;  %v5980_v63 = vld [vmem:[#allocation73_spill] sm:$0xff]  ;;  %v5981_v23 = vld [vmem:[#allocation75_spill] sm:$0xff]  ;;  %v5982_v59 = vld [vmem:[#allocation76_spill] sm:$0xff] }
 0x15e   :  { %v1260_v24 = vadd.f32 %v1259_v40, %v5970_v3  ;;  %v1291_v50 = vadd.f32 %v1290_v37, %v5971_v31  ;;  %v1137_v48 = vadd.f32 %v1136_v1, %v5973_v4  ;;  %v1168_v18 = vadd.f32 %v1167_v43, %v2995_v39  ;;  %v5983_v33 = vld [vmem:[#allocation78_spill] sm:$0xff]  ;;  %v5984_v54 = vld [vmem:[#allocation79_spill] sm:$0xff]  ;;  %v5985_v5 = vld [vmem:[#allocation81_spill] sm:$0xff] }
 0x15f   :  { %v1322_v44 = vadd.f32 %v1321_v27, %v5972_v41  ;;  %v1199_v21 = vadd.f32 %v1198_v42, %v5974_v22  ;;  %v1230_v36 = vadd.f32 %v1229_v35, %v5975_v55  ;;  %v1107_v51 = vadd.f32 %v1106_v13, %v3019_v10  ;;  %v5986_v16 = vld [vmem:[#allocation82_spill] sm:$0xff]  ;;  %v5987_v37 = vld [vmem:[#allocation84_spill] sm:$0xff]  ;;  %v5988_v1 = vld [vmem:[#allocation85_spill] sm:$0xff] }
 0x160   :  { %v1261_v9 = vadd.f32 %v1260_v24, %v3007_v62  ;;  %v1292_v34 = vadd.f32 %v1291_v50, %v5976_v56  ;;  %v1138_v45 = vadd.f32 %v1137_v48, %v5978_v32  ;;  %v1169_v26 = vadd.f32 %v1168_v18, %v5979_v49  ;;  %v5989_v43 = vld [vmem:[#allocation87_spill] sm:$0xff]  ;;  %v5990_v35 = vld [vmem:[#allocation88_spill] sm:$0xff]  ;;  %v5991_v3 = vld [vmem:[#allocation90_spill] sm:$0xff] }
 0x161   :  { %v1323_v57 = vadd.f32 %v1322_v44, %v5977_v52  ;;  %v1200_v2 = vadd.f32 %v1199_v21, %v3031_v25  ;;  %v1231_v39 = vadd.f32 %v1230_v36, %v5980_v63  ;;  %v1108_v17 = vadd.f32 %v1107_v51, %v3051_v15  ;;  %v5992_v31 = vld [vmem:[#allocation91_spill] sm:$0xff]  ;;  %v5993_v50 = vld [vmem:[#allocation93_spill] sm:$0xff]  ;;  %v5994_v4 = vld [vmem:[#allocation94_spill] sm:$0xff] }
 0x162   :  { %v1262_v46 = vadd.f32 %v1261_v9, %v5981_v23  ;;  %v1293_v10 = vadd.f32 %v1292_v34, %v5982_v59  ;;  %v1139_v14 = vadd.f32 %v1138_v45, %v3055_v11  ;;  %v1170_v0 = vadd.f32 %v1169_v26, %v5984_v54  ;;  %v5995_v18 = vld [vmem:[#allocation96_spill] sm:$0xff]  ;;  %v5996_v22 = vld [vmem:[#allocation97_spill] sm:$0xff]  ;;  %v5997_v55 = vld [vmem:[#allocation99_spill] sm:$0xff] }
 0x163   :  { %v1324_v62 = vadd.f32 %v1323_v57, %v5983_v33  ;;  %v1201_v8 = vadd.f32 %v1200_v2, %v5985_v5  ;;  %v1232_v40 = vadd.f32 %v1231_v39, %v5986_v16  ;;  %v1109_v25 = vadd.f32 %v1108_v17, %v3083_v7  ;;  %v5998_v51 = vld [vmem:[#allocation100_spill] sm:$0xff]  ;;  %v5999_v56 = vld [vmem:[#allocation102_spill] sm:$0xff]  ;;  %v6000_v52 = vld [vmem:[#allocation103_spill] sm:$0xff] }
 0x164   :  { %v1263_v27 = vadd.f32 %v1262_v46, %v5987_v37  ;;  %v1294_v15 = vadd.f32 %v1293_v10, %v5988_v1  ;;  %v1140_v13 = vadd.f32 %v1139_v14, %v5990_v35  ;;  %v1171_v24 = vadd.f32 %v1170_v0, %v5991_v3  ;;  %v6001_v32 = vld [vmem:[#allocation108_spill] sm:$0xff]  ;;  %v6003_v2 = vld [vmem:[#allocation106_spill] sm:$0xff]  ;;  %v6004_v63 = vld [vmem:[#allocation107_spill] sm:$0xff] }
 0x165   :  { %v1325_v42 = vadd.f32 %v1324_v62, %v5989_v43  ;;  %v1202_v11 = vadd.f32 %v1201_v8, %v5992_v31  ;;  %v1233_v41 = vadd.f32 %v1232_v40, %v5993_v50  ;;  %v1110_v44 = vadd.f32 %v1109_v25, %v3115_v6  ;;  %v6002_v49 = vld [vmem:[#allocation104_spill] sm:$0xff]  ;;  %v6005_v23 = vld [vmem:[#allocation109_spill] sm:$0xff]  ;;  %v6006_v59 = vld [vmem:[#allocation110_spill] sm:$0xff] }
 0x166   :  { %v1264_v48 = vadd.f32 %v1263_v27, %v5994_v4  ;;  %v1295_v7 = vadd.f32 %v1294_v15, %v5995_v18  ;;  %v1141_v36 = vadd.f32 %v1140_v13, %v5997_v55  ;;  %v1172_v9 = vadd.f32 %v1171_v24, %v5998_v51  ;;  %v6007_v33 = vld [vmem:[#allocation112_spill] sm:$0xff]  ;;  %v6009_v0 = vld [vmem:[#allocation113_spill] sm:$0xff]  ;;  %v6010_v8 = vld [vmem:[#allocation114_spill] sm:$0xff] }
 0x167   :  { %v1326_v21 = vadd.f32 %v1325_v42, %v5996_v22  ;;  %v1203_v34 = vadd.f32 %v1202_v11, %v5999_v56  ;;  %v1234_v57 = vadd.f32 %v1233_v41, %v6000_v52  ;;  %v1111_v45 = vadd.f32 %v1110_v44, %v6001_v32  ;;  %v6008_v14 = vld [vmem:[#allocation116_spill] sm:$0xff]  ;;  %v6011_v40 = vld [vmem:[#allocation115_spill] sm:$0xff]  ;;  %v6012_v37 = vld [vmem:[#allocation117_spill] sm:$0xff] }
 0x168   :  { %v1265_v26 = vadd.f32 %v1264_v48, %v6002_v49  ;;  %v1296_v6 = vadd.f32 %v1295_v7, %v6003_v2  ;;  %v1142_v17 = vadd.f32 %v1141_v36, %v3151_v19  ;;  %v1173_v46 = vadd.f32 %v1172_v9, %v6005_v23  ;;  %v6013_v15 = vld [vmem:[#allocation118_spill] sm:$0xff]  ;;  %v6014_v43 = vld [vmem:[#allocation119_spill] sm:$0xff]  ;;  %v6015_v35 = vld [vmem:[#allocation124_spill] sm:$0xff] }
 0x169   :  { %v1327_v39 = vadd.f32 %v1326_v21, %v6004_v63  ;;  %v1204_v10 = vadd.f32 %v1203_v34, %v6006_v59  ;;  %v1235_v62 = vadd.f32 %v1234_v57, %v6007_v33  ;;  %v1112_v54 = vadd.f32 %v1111_v45, %v6008_v14  ;;  %v6016_v3 = vld [vmem:[#allocation121_spill] sm:$0xff]  ;;  %v6017_v31 = vld [vmem:[#allocation122_spill] sm:$0xff]  ;;  %v6018_v50 = vld [vmem:[#allocation123_spill] sm:$0xff] }
 0x16a   :  { %v1266_v5 = vadd.f32 %v1265_v26, %v6009_v0  ;;  %v1297_v16 = vadd.f32 %v1296_v6, %v6010_v8  ;;  %v1143_v27 = vadd.f32 %v1142_v17, %v6012_v37  ;;  %v1174_v1 = vadd.f32 %v1173_v46, %v3187_v29  ;;  %v6019_v44 = vld [vmem:[#allocation125_spill] sm:$0xff]  ;;  %v6020_v48 = vld [vmem:[#allocation126_spill] sm:$0xff]  ;;  %v6021_v22 = vld [vmem:[#allocation127_spill] sm:$0xff] }
 0x16b   :  { %v1328_v25 = vadd.f32 %v1327_v39, %v6011_v40  ;;  %v1205_v19 = vadd.f32 %v1204_v10, %v6013_v15  ;;  %v1236_v42 = vadd.f32 %v1235_v62, %v6014_v43  ;;  %v1113_v13 = vadd.f32 %v1112_v54, %v6015_v35  ;;  %v6022_v21 = vld [vmem:[#allocation132_spill] sm:$0xff]  ;;  %v6024_v9 = vld [vmem:[#allocation130_spill] sm:$0xff]  ;;  %v6025_v34 = vld [vmem:[#allocation131_spill] sm:$0xff] }
 0x16c   :  { %v1267_v24 = vadd.f32 %v1266_v5, %v6016_v3  ;;  %v1298_v11 = vadd.f32 %v1297_v16, %v6017_v31  ;;  %v1144_v4 = vadd.f32 %v1143_v27, %v6019_v44  ;;  %v1175_v18 = vadd.f32 %v1174_v1, %v6020_v48  ;;  %v6023_v36 = vld [vmem:[#allocation128_spill] sm:$0xff]  ;;  %v6026_v57 = vld [vmem:[#allocation133_spill] sm:$0xff]  ;;  %v6027_v45 = vld [vmem:[#allocation134_spill] sm:$0xff] }
 0x16d   :  { %v1329_v41 = vadd.f32 %v1328_v25, %v6018_v50  ;;  %v1206_v7 = vadd.f32 %v1205_v19, %v3223_v61  ;;  %v1237_v29 = vadd.f32 %v1236_v42, %v6021_v22  ;;  %v1114_v55 = vadd.f32 %v1113_v13, %v6022_v21  ;;  %v6028_v26 = vld [vmem:[#allocation135_spill] sm:$0xff]  ;;  %v6029_v63 = vld [vmem:[#allocation140_spill] sm:$0xff]  ;;  %v6031_v23 = vld [vmem:[#allocation137_spill] sm:$0xff] }
 0x16e   :  { %v1268_v51 = vadd.f32 %v1267_v24, %v6023_v36  ;;  %v1299_v56 = vadd.f32 %v1298_v11, %v6024_v9  ;;  %v1145_v32 = vadd.f32 %v1144_v4, %v6026_v57  ;;  %v1176_v49 = vadd.f32 %v1175_v18, %v6027_v45  ;;  %v6030_v39 = vld [vmem:[#allocation136_spill] sm:$0xff]  ;;  %v6032_v59 = vld [vmem:[#allocation139_spill] sm:$0xff]  ;;  %v6033_v33 = vld [vmem:[#allocation141_spill] sm:$0xff] }
 0x16f   :  { %v1330_v52 = vadd.f32 %v1329_v41, %v6025_v34  ;;  %v1207_v2 = vadd.f32 %v1206_v7, %v6028_v26  ;;  %v1238_v6 = vadd.f32 %v1237_v29, %v3259_v60  ;;  %v1115_v61 = vadd.f32 %v1114_v55, %v6029_v63  ;;  %v6034_v14 = vld [vmem:[#allocation142_spill] sm:$0xff]  ;;  %v6035_v0 = vld [vmem:[#allocation143_spill] sm:$0xff]  ;;  %v6036_v8 = vld [vmem:[#allocation144_spill] sm:$0xff] }
 0x170   :  { %v1269_v17 = vadd.f32 %v1268_v51, %v6030_v39  ;;  %v1300_v46 = vadd.f32 %v1299_v56, %v6031_v23  ;;  %v1146_v62 = vadd.f32 %v1145_v32, %v6033_v33  ;;  %v1177_v54 = vadd.f32 %v1176_v49, %v6034_v14  ;;  %v6037_v25 = vld [vmem:[#allocation145_spill] sm:$0xff]  ;;  %v6038_v37 = vld [vmem:[#allocation146_spill] sm:$0xff]  ;;  %v6039_v1 = vld [vmem:[#allocation148_spill] sm:$0xff] }
 0x171   :  { %v1331_v10 = vadd.f32 %v1330_v52, %v6032_v59  ;;  %v1208_v5 = vadd.f32 %v1207_v2, %v6035_v0  ;;  %v1239_v16 = vadd.f32 %v1238_v6, %v6036_v8  ;;  %v1116_v40 = vadd.f32 %v1115_v61, %v3307_v28  ;;  %v6040_v19 = vld [vmem:[#allocation149_spill] sm:$0xff]  ;;  %v6041_v42 = vld [vmem:[#allocation150_spill] sm:$0xff]  ;;  %v6042_v13 = vld [vmem:[#allocation151_spill] sm:$0xff] }
 0x172   :  { %v1270_v60 = vadd.f32 %v1269_v17, %v6037_v25  ;;  %v1301_v27 = vadd.f32 %v1300_v46, %v6038_v37  ;;  %v1147_v43 = vadd.f32 %v1146_v62, %v6040_v19  ;;  %v1178_v35 = vadd.f32 %v1177_v54, %v6041_v42  ;;  %v6043_v24 = vld [vmem:[#allocation152_spill] sm:$0xff]  ;;  %v6044_v50 = vld [vmem:[#allocation153_spill] sm:$0xff]  ;;  %v6045_v44 = vld [vmem:[#allocation154_spill] sm:$0xff] }
 0x173   :  { %v1332_v15 = vadd.f32 %v1331_v10, %v6039_v1  ;;  %v1209_v3 = vadd.f32 %v1208_v5, %v6042_v13  ;;  %v1240_v31 = vadd.f32 %v1239_v16, %v6043_v24  ;;  %v1117_v11 = vadd.f32 %v1116_v40, %v3339_v58  ;;  %v6046_v4 = vld [vmem:[#allocation155_spill] sm:$0xff]  ;;  %v6047_v18 = vld [vmem:[#allocation157_spill] sm:$0xff]  ;;  %v6048_v22 = vld [vmem:[#allocation158_spill] sm:$0xff] }
 0x174   :  { %v1271_v41 = vadd.f32 %v1270_v60, %v6044_v50  ;;  %v1302_v28 = vadd.f32 %v1301_v27, %v6045_v44  ;;  %v1148_v7 = vadd.f32 %v1147_v43, %v6047_v18  ;;  %v1179_v29 = vadd.f32 %v1178_v35, %v6048_v22  ;;  %v6049_v21 = vld [vmem:[#allocation159_spill] sm:$0xff]  ;;  %v6050_v36 = vld [vmem:[#allocation160_spill] sm:$0xff]  ;;  %v6051_v56 = vld [vmem:[#allocation161_spill] sm:$0xff] }
 0x175   :  { %v1333_v48 = vadd.f32 %v1332_v15, %v6046_v4  ;;  %v1210_v55 = vadd.f32 %v1209_v3, %v6049_v21  ;;  %v1241_v51 = vadd.f32 %v1240_v31, %v6050_v36  ;;  %v1118_v9 = vadd.f32 %v1117_v11, %v3371_v47  ;;  %v6052_v52 = vld [vmem:[#allocation162_spill] sm:$0xff]  ;;  %v6053_v57 = vld [vmem:[#allocation163_spill] sm:$0xff]  ;;  %v6054_v45 = vld [vmem:[#allocation164_spill] sm:$0xff] }
 0x176   :  { %v1272_v34 = vadd.f32 %v1271_v41, %v6051_v56  ;;  %v1303_v58 = vadd.f32 %v1302_v28, %v6052_v52  ;;  %v1149_v49 = vadd.f32 %v1148_v7, %v6054_v45  ;;  %v6055_v26 = vld [vmem:[#allocation166_spill] sm:$0xff]  ;;  %v6056_v6 = vld [vmem:[#allocation167_spill] sm:$0xff]  ;;  %v6057_v61 = vld [vmem:[#allocation168_spill] sm:$0xff] }
 0x177   :  { %v1334_v32 = vadd.f32 %v1333_v48, %v6053_v57  ;;  %v1180_v2 = vadd.f32 %v1179_v29, %v6055_v26  ;;  %v1211_v63 = vadd.f32 %v1210_v55, %v6056_v6  ;;  %v1242_v39 = vadd.f32 %v1241_v51, %v6057_v61  ;;  %v6058_v23 = vld [vmem:[#allocation169_spill] sm:$0xff]  ;;  %v6059_v59 = vld [vmem:[#allocation170_spill] sm:$0xff]  ;;  %v6060_v10 = vld [vmem:[#allocation171_spill] sm:$0xff] }
 0x178   :  { %v1119_v17 = vadd.f32 %v1118_v9, %v3403_v12  ;;  %v1273_v46 = vadd.f32 %v1272_v34, %v6058_v23  ;;  %v1304_v47 = vadd.f32 %v1303_v58, %v6059_v59  ;;  %v6061_v62 = vld [vmem:[#allocation172_spill] sm:$0xff]  ;;  %v6062_v54 = vld [vmem:[#allocation173_spill] sm:$0xff]  ;;  %v6063_v5 = vld [vmem:[#allocation175_spill] sm:$0xff] }
 0x179   :  { %v1335_v33 = vadd.f32 %v1334_v32, %v6060_v10  ;;  %v1150_v14 = vadd.f32 %v1149_v49, %v6061_v62  ;;  %v1181_v0 = vadd.f32 %v1180_v2, %v6062_v54  ;;  %v1212_v8 = vadd.f32 %v1211_v63, %v6063_v5  ;;  %v6064_v16 = vld [vmem:[#allocation176_spill] sm:$0xff]  ;;  %v6066_v37 = vld [vmem:[#allocation177_spill] sm:$0xff]  ;;  %v6067_v1 = vld [vmem:[#allocation178_spill] sm:$0xff] }
 0x17a   :  { %v1243_v40 = vadd.f32 %v1242_v39, %v6064_v16  ;;  %v6065_v25 = vld [vmem:[#allocation180_spill] sm:$0xff]  ;;  %v1274_v27 = vadd.f32 %v1273_v46, %v6066_v37  ;;  %v1305_v12 = vadd.f32 %v1304_v47, %v6067_v1  ;;  %v6068_v15 = vld [vmem:[#allocation179_spill] sm:$0xff]  ;;  %v6069_v42 = vld [vmem:[#allocation181_spill] sm:$0xff] }
 0x17b   :  { %v1120_v60 = vadd.f32 %v1119_v17, %v6065_v25  ;;  %v1336_v19 = vadd.f32 %v1335_v33, %v6068_v15  ;;  %v1151_v43 = vadd.f32 %v1150_v14, %v3439_v20  ;;  %v1182_v35 = vadd.f32 %v1181_v0, %v6069_v42  ;;  %v6070_v13 = vld [vmem:[#allocation182_spill] sm:$0xff]  ;;  %v6071_v24 = vld [vmem:[#allocation184_spill] sm:$0xff]  ;;  %v6073_v41 = vld [vmem:[#allocation185_spill] sm:$0xff] }
 0x17c   :  { %v1213_v3 = vadd.f32 %v1212_v8, %v6070_v13  ;;  %v1244_v31 = vadd.f32 %v1243_v40, %v6071_v24  ;;  %v6072_v11 = vld [vmem:[#allocation188_spill] sm:$0xff]  ;;  %v1275_v44 = vadd.f32 %v1274_v27, %v6073_v41  ;;  %v6074_v28 = vld [vmem:[#allocation186_spill] sm:$0xff]  ;;  %v6075_v48 = vld [vmem:[#allocation187_spill] sm:$0xff] }
 0x17d   :  { %v1121_v50 = vadd.f32 %v1120_v60, %v6072_v11  ;;  %v1306_v4 = vadd.f32 %v1305_v12, %v6074_v28  ;;  %v1337_v18 = vadd.f32 %v1336_v19, %v6075_v48  ;;  %v6076_v7 = vld [vmem:[#allocation189_spill] sm:$0xff]  ;;  %v1183_v29 = vadd.f32 %v1182_v35, %v3475_v38  ;;  %v6077_v21 = vld [vmem:[#allocation190_spill] sm:$0xff]  ;;  %v6078_v55 = vld [vmem:[#allocation191_spill] sm:$0xff] }
 0x17e   :  { %v1152_v22 = vadd.f32 %v1151_v43, %v6076_v7  ;;  %v1214_v20 = vadd.f32 %v1213_v3, %v6077_v21  ;;  %v1245_v36 = vadd.f32 %v1244_v31, %v6078_v55  ;;  %v6079_v51 = vld [vmem:[#allocation196_spill] sm:$0xff]  ;;  %v6080_v56 = vld [vmem:[#allocation193_spill] sm:$0xff]  ;;  %v6081_v52 = vld [vmem:[#allocation194_spill] sm:$0xff] }
 0x17f   :  { %v1122_v9 = vadd.f32 %v1121_v50, %v6079_v51  ;;  %v1276_v34 = vadd.f32 %v1275_v44, %v6080_v56  ;;  %v1307_v58 = vadd.f32 %v1306_v4, %v6081_v52  ;;  %v6082_v57 = vld [vmem:[#allocation195_spill] sm:$0xff]  ;;  %v6083_v45 = vld [vmem:[#allocation197_spill] sm:$0xff]  ;;  %v6084_v26 = vld [vmem:[#allocation198_spill] sm:$0xff] }
 0x180   :  { %v1338_v32 = vadd.f32 %v1337_v18, %v6082_v57  ;;  %v1153_v49 = vadd.f32 %v1152_v22, %v6083_v45  ;;  %v1184_v2 = vadd.f32 %v1183_v29, %v6084_v26  ;;  %v1215_v6 = vadd.f32 %v1214_v20, %v3511_v30  ;;  %v6085_v63 = vld [vmem:[#allocation199_spill] sm:$0xff]  ;;  %v6086_v39 = vld [vmem:[#allocation200_spill] sm:$0xff]  ;;  %v6087_v23 = vld [vmem:[#allocation202_spill] sm:$0xff] }
 0x181   :  { %v1246_v38 = vadd.f32 %v1245_v36, %v6085_v63  ;;  %v1123_v61 = vadd.f32 %v1122_v9, %v3531_v53  ;;  %v1277_v17 = vadd.f32 %v1276_v34, %v6086_v39  ;;  %v1308_v46 = vadd.f32 %v1307_v58, %v6087_v23  ;;  %v6088_v59 = vld [vmem:[#allocation203_spill] sm:$0xff]  ;;  %v6089_v10 = vld [vmem:[#allocation204_spill] sm:$0xff]  ;;  %v6090_v62 = vld [vmem:[#allocation205_spill] sm:$0xff] }
 0x182   :  { %v1339_v47 = vadd.f32 %v1338_v32, %v6088_v59  ;;  %v1154_v33 = vadd.f32 %v1153_v49, %v6089_v10  ;;  %v1185_v14 = vadd.f32 %v1184_v2, %v6090_v62  ;;  %v6091_v54 = vld [vmem:[#allocation206_spill] sm:$0xff]  ;;  %v6092_v5 = vld [vmem:[#allocation207_spill] sm:$0xff]  ;;  %v6093_v16 = vld [vmem:[#allocation212_spill] sm:$0xff] }
 0x183   :  { %v1216_v0 = vadd.f32 %v1215_v6, %v6091_v54  ;;  %v1247_v8 = vadd.f32 %v1246_v38, %v6092_v5  ;;  %v1124_v30 = vadd.f32 %v1123_v61, %v6093_v16  ;;  %v6094_v40 = vld [vmem:[#allocation208_spill] sm:$0xff]  ;;  %v6095_v60 = vld [vmem:[#allocation209_spill] sm:$0xff]  ;;  %v6096_v37 = vld [vmem:[#allocation211_spill] sm:$0xff] }
 0x184   :  { %v1278_v25 = vadd.f32 %v1277_v17, %v6094_v40  ;;  %v1309_v53 = vadd.f32 %v1308_v46, %v6095_v60  ;;  %v1340_v27 = vadd.f32 %v1339_v47, %v6096_v37  ;;  %v6097_v1 = vld [vmem:[#allocation213_spill] sm:$0xff]  ;;  %v6098_v15 = vld [vmem:[#allocation214_spill] sm:$0xff]  ;;  %v6099_v43 = vld [vmem:[#allocation215_spill] sm:$0xff] }
 0x185   :  { %v1155_v12 = vadd.f32 %v1154_v33, %v6097_v1  ;;  %v1186_v19 = vadd.f32 %v1185_v14, %v6098_v15  ;;  %v1217_v42 = vadd.f32 %v1216_v0, %v6099_v43  ;;  %v6100_v35 = vld [vmem:[#allocation216_spill] sm:$0xff]  ;;  %v6101_v31 = vld [vmem:[#allocation221_spill] sm:$0xff]  ;;  %v6102_v50 = vld [vmem:[#allocation218_spill] sm:$0xff] }
 0x186   :  { %v1248_v13 = vadd.f32 %v1247_v8, %v6100_v35  ;;  %v1359_v3 = vld [vmem:[#allocation2 + $0x800] sm:$0xff]  ;;  %v1125_v11 = vadd.f32 %v1124_v30, %v6101_v31  ;;  %v1279_v41 = vadd.f32 %v1278_v25, %v6102_v50  ;;  %v6103_v44 = vld [vmem:[#allocation219_spill] sm:$0xff]  ;;  %v1360_v18 = vld [vmem:[#allocation2 + $0x808] sm:$0xff] }
 0x187   :  { %v1487_v24 = vld [vmem:[#allocation4 + $0x800] sm:$0xff]  ;;  %v1310_v28 = vadd.f32 %v1309_v53, %v6103_v44  ;;  %v1361_v7 = vld [vmem:[#allocation2 + $0x810] sm:$0xff]  ;;  %v1362_v22 = vld [vmem:[#allocation2 + $0x818] sm:$0xff] }
 0x188   :  { %v6104_v4 = vld [vmem:[#allocation220_spill] sm:$0xff]  ;;  %v1488_v21 = vld [vmem:[#allocation4 + $0x808] sm:$0xff]  ;;  %v1489_v20 = vld [vmem:[#allocation4 + $0x810] sm:$0xff]  ;;  %1351 = vst [vmem:[%s5355_s2] sm:$0xff] %v1125_v11  ;;  %v3932_v31 = vsub.f32 %v1359_v3, %v1487_v24 }
 0x189   :  { %v1341_v48 = vadd.f32 %v1340_v27, %v6104_v4  ;;  %v1363_v29 = vld [vmem:[#allocation2 + $0x820] sm:$0xff]  ;;  %v1490_v55 = vld [vmem:[#allocation4 + $0x818] sm:$0xff]  ;;  %v6105_v51 = vld [vmem:[#allocation222_spill] sm:$0xff] }
 0x18a   :  { %v1491_v36 = vld [vmem:[#allocation4 + $0x820] sm:$0xff]  ;;  %v1156_v9 = vadd.f32 %v1155_v12, %v6105_v51  ;;  %v6106_v56 = vld [vmem:[#allocation223_spill] sm:$0xff]  ;;  %v6108_v57 = vld [vmem:[#allocation225_spill] sm:$0xff]  ;;  %v3964_v51 = vsub.f32 %v1361_v7, %v1489_v20 }
 0x18b   :  { %v1187_v34 = vadd.f32 %v1186_v19, %v6106_v56  ;;  %v6107_v52 = vld [vmem:[#allocation224_spill] sm:$0xff]  ;;  %v1249_v32 = vadd.f32 %v1248_v13, %v6108_v57  ;;  %v3878_v45 = vld [vmem:[#allocation2 + $0x828] sm:$0xff]  ;;  %v3880_v49 = vld [vmem:[#allocation2 + $0x830] sm:$0xff]  ;;  %v3968_v56 = vsub.f32 %v1363_v29, %v1491_v36 }
 0x18c   :  { %v1218_v58 = vadd.f32 %v1217_v42, %v6107_v52  ;;  %v3882_v26 = vld [vmem:[#allocation2 + $0x838] sm:$0xff]  ;;  %v3884_v2 = vld [vmem:[#allocation2 + $0x840] sm:$0xff]  ;;  %v1492_v6 = vld [vmem:[#allocation4 + $0x828] sm:$0xff]  ;;  %1352 = vst [vmem:[%s5355_s2 + $0x8] sm:$0xff] %v1156_v9  ;;  %v3966_v9 = vsub.f32 %v1362_v22, %v1490_v55 }
 0x18d   :  { %v1493_v63 = vld [vmem:[#allocation4 + $0x830] sm:$0xff]  ;;  %v1494_v38 = vld [vmem:[#allocation4 + $0x838] sm:$0xff]  ;;  %v1495_v61 = vld [vmem:[#allocation4 + $0x840] sm:$0xff]  ;;  %1353 = vst [vmem:[%s5355_s2 + $0x10] sm:$0xff] %v1187_v34  ;;  %v3996_v34 = vsub.f32 %v3878_v45, %v1492_v6 }
 0x18e   :  { %v6109_v39 = vld [vmem:[#allocation226_spill] sm:$0xff]  ;;  %v6110_v23 = vld [vmem:[#allocation227_spill] sm:$0xff]  ;;  %v6111_v59 = vld [vmem:[#allocation228_spill] sm:$0xff]  ;;  %1354 = vst [vmem:[%s5355_s2 + $0x18] sm:$0xff] %v1218_v58  ;;  %v3999_v52 = vsub.f32 %v3880_v49, %v1493_v63  ;;  %v4002_v58 = vsub.f32 %v3882_v26, %v1494_v38  ;;  %v4005_v57 = vsub.f32 %v3884_v2, %v1495_v61 }
 0x18f   :  { %v1280_v17 = vadd.f32 %v1279_v41, %v6109_v39  ;;  %v1311_v46 = vadd.f32 %v1310_v28, %v6110_v23  ;;  %v1342_v47 = vadd.f32 %v1341_v48, %v6111_v59  ;;  %v3889_v10 = vld [vmem:[#allocation2 + $0x848] sm:$0xff]  ;;  %v3891_v33 = vld [vmem:[#allocation2 + $0x850] sm:$0xff]  ;;  %v3893_v62 = vld [vmem:[#allocation2 + $0x858] sm:$0xff]  ;;  %1355 = vst [vmem:[%s5355_s2 + $0x20] sm:$0xff] %v1249_v32  ;;  %v3962_v48 = vsub.f32 %v1360_v18, %v1488_v21 }
 0x190   :  { %v3895_v14 = vld [vmem:[#allocation2 + $0x860] sm:$0xff]  ;;  %v1496_v54 = vld [vmem:[#allocation4 + $0x848] sm:$0xff]  ;;  %v1497_v0 = vld [vmem:[#allocation4 + $0x850] sm:$0xff]  ;;  %6112 = vst [vmem:[#allocation8_spill] sm:$0xff] %v3999_v52 }
 0x191   :  { %v1498_v5 = vld [vmem:[#allocation4 + $0x858] sm:$0xff]  ;;  %v1499_v8 = vld [vmem:[#allocation4 + $0x860] sm:$0xff]  ;;  %v3897_v16 = vld [vmem:[#allocation2 + $0x868] sm:$0xff]  ;;  %1356 = vst [vmem:[%s5355_s2 + $0x28] sm:$0xff] %v1280_v17  ;;  %v4024_v26 = vsub.f32 %v3889_v10, %v1496_v54  ;;  %v4027_v2 = vsub.f32 %v3891_v33, %v1497_v0 }
 0x192   :  { %v3899_v30 = vld [vmem:[#allocation2 + $0x870] sm:$0xff]  ;;  %v3901_v40 = vld [vmem:[#allocation2 + $0x878] sm:$0xff]  ;;  %v3903_v25 = vld [vmem:[#allocation2 + $0x880] sm:$0xff]  ;;  %1357 = vst [vmem:[%s5355_s2 + $0x30] sm:$0xff] %v1311_v46  ;;  %v4030_v63 = vsub.f32 %v3893_v62, %v1498_v5  ;;  %v4033_v38 = vsub.f32 %v3895_v14, %v1499_v8 }
 0x193   :  { %v3905_v60 = vld [vmem:[#allocation4 + $0x868] sm:$0xff]  ;;  %v3907_v53 = vld [vmem:[#allocation4 + $0x870] sm:$0xff]  ;;  %v3909_v37 = vld [vmem:[#allocation4 + $0x878] sm:$0xff]  ;;  %1358 = vst [vmem:[%s5355_s2 + $0x38] sm:$0xff] %v1342_v47 }
 0x194   :  { %v3911_v27 = vld [vmem:[#allocation4 + $0x880] sm:$0xff]  ;;  %v3916_v1 = vld [vmem:[#allocation2 + $0x888] sm:$0xff]  ;;  %v3918_v12 = vld [vmem:[#allocation2 + $0x890] sm:$0xff]  ;;  %6113 = vst [vmem:[#allocation16_spill] sm:$0xff] %v4002_v58  ;;  %v4053_v62 = vsub.f32 %v3897_v16, %v3905_v60  ;;  %v4057_v14 = vsub.f32 %v3899_v30, %v3907_v53  ;;  %v4061_v0 = vsub.f32 %v3901_v40, %v3909_v37 }
 0x195   :  { %v3920_v15 = vld [vmem:[#allocation2 + $0x898] sm:$0xff]  ;;  %v3922_v19 = vld [vmem:[#allocation2 + $0x8a0] sm:$0xff]  ;;  %v3924_v43 = vld [vmem:[#allocation4 + $0x888] sm:$0xff]  ;;  %6114 = vst [vmem:[#allocation9_spill] sm:$0xff] %v4005_v57  ;;  %v4065_v5 = vsub.f32 %v3903_v25, %v3911_v27 }
 0x196   :  { %v3926_v42 = vld [vmem:[#allocation4 + $0x890] sm:$0xff]  ;;  %v3928_v35 = vld [vmem:[#allocation4 + $0x898] sm:$0xff]  ;;  %v3930_v13 = vld [vmem:[#allocation4 + $0x8a0] sm:$0xff]  ;;  %6115 = vst [vmem:[#allocation17_spill] sm:$0xff] %v4024_v26  ;;  %v4085_v25 = vsub.f32 %v3916_v1, %v3924_v43 }
 0x197   :  { %v3946_v11 = vld [vmem:[#allocation2 + $0x8a8] sm:$0xff]  ;;  %v3948_v3 = vld [vmem:[#allocation2 + $0x8b0] sm:$0xff]  ;;  %v3950_v24 = vld [vmem:[#allocation2 + $0x8b8] sm:$0xff]  ;;  %6116 = vst [vmem:[#allocation10_spill] sm:$0xff] %v4027_v2  ;;  %v4089_v37 = vsub.f32 %v3918_v12, %v3926_v42  ;;  %v4093_v27 = vsub.f32 %v3920_v15, %v3928_v35 }
 0x198   :  { %v3952_v50 = vld [vmem:[#allocation2 + $0x8c0] sm:$0xff]  ;;  %v3954_v41 = vld [vmem:[#allocation4 + $0x8a8] sm:$0xff]  ;;  %v3956_v44 = vld [vmem:[#allocation4 + $0x8b0] sm:$0xff]  ;;  %6117 = vst [vmem:[#allocation18_spill] sm:$0xff] %v4030_v63 }
 0x199   :  { %v3958_v28 = vld [vmem:[#allocation4 + $0x8b8] sm:$0xff]  ;;  %v3960_v4 = vld [vmem:[#allocation4 + $0x8c0] sm:$0xff]  ;;  %v3979_v18 = vld [vmem:[#allocation2 + $0x8c8] sm:$0xff]  ;;  %6118 = vst [vmem:[#allocation11_spill] sm:$0xff] %v4033_v38  ;;  %v4121_v35 = vsub.f32 %v3948_v3, %v3956_v44 }
 0x19a   :  { %v3981_v7 = vld [vmem:[#allocation2 + $0x8d0] sm:$0xff]  ;;  %v3983_v22 = vld [vmem:[#allocation2 + $0x8d8] sm:$0xff]  ;;  %v3985_v29 = vld [vmem:[#allocation2 + $0x8e0] sm:$0xff]  ;;  %6119 = vst [vmem:[#allocation20_spill] sm:$0xff] %v4053_v62 }
 0x19b   :  { %v3987_v21 = vld [vmem:[#allocation4 + $0x8c8] sm:$0xff]  ;;  %v3989_v20 = vld [vmem:[#allocation4 + $0x8d0] sm:$0xff]  ;;  %v3991_v55 = vld [vmem:[#allocation4 + $0x8d8] sm:$0xff]  ;;  %6120 = vst [vmem:[#allocation12_spill] sm:$0xff] %v4057_v14 }
 0x19c   :  { %v3993_v36 = vld [vmem:[#allocation4 + $0x8e0] sm:$0xff]  ;;  %v4007_v32 = vld [vmem:[#allocation2 + $0x8e8] sm:$0xff]  ;;  %v4009_v39 = vld [vmem:[#allocation2 + $0x8f0] sm:$0xff]  ;;  %6121 = vst [vmem:[#allocation23_spill] sm:$0xff] %v4061_v0 }
 0x19d   :  { %v4011_v17 = vld [vmem:[#allocation2 + $0x8f8] sm:$0xff]  ;;  %v4013_v23 = vld [vmem:[#allocation2 + $0x900] sm:$0xff]  ;;  %v4015_v46 = vld [vmem:[#allocation4 + $0x8e8] sm:$0xff]  ;;  %6122 = vst [vmem:[#allocation35_spill] sm:$0xff] %v4065_v5  ;;  %v4097_v5 = vsub.f32 %v3922_v19, %v3930_v13  ;;  %v4117_v19 = vsub.f32 %v3946_v11, %v3954_v41  ;;  %v4125_v13 = vsub.f32 %v3950_v24, %v3958_v28  ;;  %v4153_v28 = vsub.f32 %v3981_v7, %v3989_v20 }
 0x19e   :  { %v4017_v45 = vld [vmem:[#allocation4 + $0x8f0] sm:$0xff]  ;;  %v4019_v49 = vld [vmem:[#allocation4 + $0x8f8] sm:$0xff]  ;;  %v4021_v6 = vld [vmem:[#allocation4 + $0x900] sm:$0xff]  ;;  %6123 = vst [vmem:[#allocation13_spill] sm:$0xff] %v4085_v25 }
 0x19f   :  { %v4035_v61 = vld [vmem:[#allocation2 + $0x908] sm:$0xff]  ;;  %v4037_v59 = vld [vmem:[#allocation2 + $0x910] sm:$0xff]  ;;  %v4039_v47 = vld [vmem:[#allocation2 + $0x918] sm:$0xff]  ;;  %6124 = vst [vmem:[#allocation26_spill] sm:$0xff] %v4089_v37 }
 0x1a0   :  { %v4041_v57 = vld [vmem:[#allocation2 + $0x920] sm:$0xff]  ;;  %v4043_v58 = vld [vmem:[#allocation4 + $0x908] sm:$0xff]  ;;  %v4045_v10 = vld [vmem:[#allocation4 + $0x910] sm:$0xff]  ;;  %6125 = vst [vmem:[#allocation14_spill] sm:$0xff] %v4093_v27 }
 0x1a1   :  { %v4047_v33 = vld [vmem:[#allocation4 + $0x918] sm:$0xff]  ;;  %v4049_v54 = vld [vmem:[#allocation4 + $0x920] sm:$0xff]  ;;  %v4067_v8 = vld [vmem:[#allocation2 + $0x928] sm:$0xff]  ;;  %6126 = vst [vmem:[#allocation29_spill] sm:$0xff] %v4097_v5  ;;  %v4129_v5 = vsub.f32 %v3952_v50, %v3960_v4  ;;  %v4149_v50 = vsub.f32 %v3979_v18, %v3987_v21  ;;  %v4157_v4 = vsub.f32 %v3983_v22, %v3991_v55  ;;  %v4185_v55 = vsub.f32 %v4009_v39, %v4017_v45 }
 0x1a2   :  { %v4069_v38 = vld [vmem:[#allocation2 + $0x930] sm:$0xff]  ;;  %v4071_v63 = vld [vmem:[#allocation2 + $0x938] sm:$0xff]  ;;  %v4073_v16 = vld [vmem:[#allocation2 + $0x940] sm:$0xff]  ;;  %6127 = vst [vmem:[#allocation15_spill] sm:$0xff] %v4117_v19 }
 0x1a3   :  { %v4075_v60 = vld [vmem:[#allocation4 + $0x928] sm:$0xff]  ;;  %v4077_v30 = vld [vmem:[#allocation4 + $0x930] sm:$0xff]  ;;  %v4079_v53 = vld [vmem:[#allocation4 + $0x938] sm:$0xff]  ;;  %6128 = vst [vmem:[#allocation32_spill] sm:$0xff] %v4121_v35 }
 0x1a4   :  { %v4081_v40 = vld [vmem:[#allocation4 + $0x940] sm:$0xff]  ;;  %v4099_v0 = vld [vmem:[#allocation2 + $0x948] sm:$0xff]  ;;  %v4101_v14 = vld [vmem:[#allocation2 + $0x950] sm:$0xff]  ;;  %6129 = vst [vmem:[#allocation38_spill] sm:$0xff] %v4125_v13 }
 0x1a5   :  { %v4103_v62 = vld [vmem:[#allocation2 + $0x958] sm:$0xff]  ;;  %v4105_v1 = vld [vmem:[#allocation2 + $0x960] sm:$0xff]  ;;  %v4107_v43 = vld [vmem:[#allocation4 + $0x948] sm:$0xff]  ;;  %6130 = vst [vmem:[#allocation41_spill] sm:$0xff] %v4129_v5  ;;  %v4161_v5 = vsub.f32 %v3985_v29, %v3993_v36  ;;  %v4181_v29 = vsub.f32 %v4007_v32, %v4015_v46  ;;  %v4189_v36 = vsub.f32 %v4011_v17, %v4019_v49  ;;  %v4217_v49 = vsub.f32 %v4037_v59, %v4045_v10 }
 0x1a6   :  { %v4109_v12 = vld [vmem:[#allocation4 + $0x950] sm:$0xff]  ;;  %v4111_v42 = vld [vmem:[#allocation4 + $0x958] sm:$0xff]  ;;  %v4113_v15 = vld [vmem:[#allocation4 + $0x960] sm:$0xff]  ;;  %6131 = vst [vmem:[#allocation44_spill] sm:$0xff] %v4149_v50 }
 0x1a7   :  { %v4131_v27 = vld [vmem:[#allocation2 + $0x968] sm:$0xff]  ;;  %v4133_v37 = vld [vmem:[#allocation2 + $0x970] sm:$0xff]  ;;  %v4135_v25 = vld [vmem:[#allocation2 + $0x978] sm:$0xff]  ;;  %6132 = vst [vmem:[#allocation47_spill] sm:$0xff] %v4153_v28 }
 0x1a8   :  { %v4137_v11 = vld [vmem:[#allocation2 + $0x980] sm:$0xff]  ;;  %v4139_v41 = vld [vmem:[#allocation4 + $0x968] sm:$0xff]  ;;  %v4141_v3 = vld [vmem:[#allocation4 + $0x970] sm:$0xff]  ;;  %6133 = vst [vmem:[#allocation59_spill] sm:$0xff] %v4157_v4 }
 0x1a9   :  { %v4143_v44 = vld [vmem:[#allocation4 + $0x978] sm:$0xff]  ;;  %v4145_v24 = vld [vmem:[#allocation4 + $0x980] sm:$0xff]  ;;  %6134 = vst [vmem:[#allocation50_spill] sm:$0xff] %v4161_v5  ;;  %v4163_v13 = vld [vmem:[#allocation2 + $0x988] sm:$0xff]  ;;  %v4193_v5 = vsub.f32 %v4013_v23, %v4021_v6  ;;  %v4213_v23 = vsub.f32 %v4035_v61, %v4043_v58  ;;  %v4221_v6 = vsub.f32 %v4039_v47, %v4047_v33  ;;  %v4249_v33 = vsub.f32 %v4069_v38, %v4077_v30 }
 0x1aa   :  { %v4165_v35 = vld [vmem:[#allocation2 + $0x990] sm:$0xff]  ;;  %v4167_v19 = vld [vmem:[#allocation2 + $0x998] sm:$0xff]  ;;  %v4169_v18 = vld [vmem:[#allocation2 + $0x9a0] sm:$0xff]  ;;  %6135 = vst [vmem:[#allocation53_spill] sm:$0xff] %v4181_v29 }
 0x1ab   :  { %v4171_v21 = vld [vmem:[#allocation4 + $0x988] sm:$0xff]  ;;  %v4173_v7 = vld [vmem:[#allocation4 + $0x990] sm:$0xff]  ;;  %v4175_v20 = vld [vmem:[#allocation4 + $0x998] sm:$0xff]  ;;  %6136 = vst [vmem:[#allocation56_spill] sm:$0xff] %v4185_v55 }
 0x1ac   :  { %v4177_v22 = vld [vmem:[#allocation4 + $0x9a0] sm:$0xff]  ;;  %6137 = vst [vmem:[#allocation62_spill] sm:$0xff] %v4189_v36  ;;  %6138 = vst [vmem:[#allocation65_spill] sm:$0xff] %v4193_v5  ;;  %v4195_v4 = vld [vmem:[#allocation2 + $0x9a8] sm:$0xff]  ;;  %v4225_v5 = vsub.f32 %v4041_v57, %v4049_v54  ;;  %v4245_v57 = vsub.f32 %v4067_v8, %v4075_v60  ;;  %v4253_v54 = vsub.f32 %v4071_v63, %v4079_v53 }
 0x1ad   :  { %v4197_v28 = vld [vmem:[#allocation2 + $0x9b0] sm:$0xff]  ;;  %v4199_v50 = vld [vmem:[#allocation2 + $0x9b8] sm:$0xff]  ;;  %v4201_v32 = vld [vmem:[#allocation2 + $0x9c0] sm:$0xff]  ;;  %6139 = vst [vmem:[#allocation68_spill] sm:$0xff] %v4213_v23  ;;  %v4281_v53 = vsub.f32 %v4101_v14, %v4109_v12 }
 0x1ae   :  { %v4203_v46 = vld [vmem:[#allocation4 + $0x9a8] sm:$0xff]  ;;  %v4205_v39 = vld [vmem:[#allocation4 + $0x9b0] sm:$0xff]  ;;  %v4207_v45 = vld [vmem:[#allocation4 + $0x9b8] sm:$0xff]  ;;  %6140 = vst [vmem:[#allocation71_spill] sm:$0xff] %v4217_v49 }
 0x1af   :  { %v4209_v17 = vld [vmem:[#allocation4 + $0x9c0] sm:$0xff]  ;;  %6141 = vst [vmem:[#allocation83_spill] sm:$0xff] %v4221_v6  ;;  %6142 = vst [vmem:[#allocation74_spill] sm:$0xff] %v4225_v5  ;;  %v4227_v36 = vld [vmem:[#allocation2 + $0x9c8] sm:$0xff]  ;;  %v4257_v5 = vsub.f32 %v4073_v16, %v4081_v40  ;;  %v4277_v16 = vsub.f32 %v4099_v0, %v4107_v43  ;;  %v4285_v40 = vsub.f32 %v4103_v62, %v4111_v42 }
 0x1b0   :  { %v4229_v55 = vld [vmem:[#allocation2 + $0x9d0] sm:$0xff]  ;;  %v4231_v29 = vld [vmem:[#allocation2 + $0x9d8] sm:$0xff]  ;;  %v4233_v58 = vld [vmem:[#allocation2 + $0x9e0] sm:$0xff]  ;;  %6143 = vst [vmem:[#allocation77_spill] sm:$0xff] %v4245_v57  ;;  %v4313_v42 = vsub.f32 %v4133_v37, %v4141_v3 }
 0x1b1   :  { %v4235_v61 = vld [vmem:[#allocation4 + $0x9c8] sm:$0xff]  ;;  %v4237_v59 = vld [vmem:[#allocation4 + $0x9d0] sm:$0xff]  ;;  %v4239_v10 = vld [vmem:[#allocation4 + $0x9d8] sm:$0xff]  ;;  %6144 = vst [vmem:[#allocation80_spill] sm:$0xff] %v4249_v33 }
 0x1b2   :  { %v4241_v47 = vld [vmem:[#allocation4 + $0x9e0] sm:$0xff]  ;;  %6145 = vst [vmem:[#allocation86_spill] sm:$0xff] %v4253_v54  ;;  %6146 = vst [vmem:[#allocation89_spill] sm:$0xff] %v4257_v5  ;;  %v4259_v6 = vld [vmem:[#allocation2 + $0x9e8] sm:$0xff]  ;;  %v4289_v5 = vsub.f32 %v4105_v1, %v4113_v15  ;;  %v4309_v1 = vsub.f32 %v4131_v27, %v4139_v41  ;;  %v4317_v15 = vsub.f32 %v4135_v25, %v4143_v44 }
 0x1b3   :  { %v4261_v49 = vld [vmem:[#allocation2 + $0x9f0] sm:$0xff]  ;;  %v4263_v23 = vld [vmem:[#allocation2 + $0x9f8] sm:$0xff]  ;;  %v4265_v8 = vld [vmem:[#allocation2 + $0xa00] sm:$0xff]  ;;  %6147 = vst [vmem:[#allocation92_spill] sm:$0xff] %v4277_v16  ;;  %v4345_v44 = vsub.f32 %v4165_v35, %v4173_v7 }
 0x1b4   :  { %v4267_v60 = vld [vmem:[#allocation4 + $0x9e8] sm:$0xff]  ;;  %v4269_v38 = vld [vmem:[#allocation4 + $0x9f0] sm:$0xff]  ;;  %v4271_v30 = vld [vmem:[#allocation4 + $0x9f8] sm:$0xff]  ;;  %6148 = vst [vmem:[#allocation95_spill] sm:$0xff] %v4281_v53 }
 0x1b5   :  { %v4273_v63 = vld [vmem:[#allocation4 + $0xa00] sm:$0xff]  ;;  %6149 = vst [vmem:[#allocation19_spill] sm:$0xff] %v4285_v40  ;;  %6150 = vst [vmem:[#allocation98_spill] sm:$0xff] %v4289_v5  ;;  %v4291_v54 = vld [vmem:[#allocation2 + $0xa08] sm:$0xff]  ;;  %v4321_v5 = vsub.f32 %v4137_v11, %v4145_v24  ;;  %v4341_v11 = vsub.f32 %v4163_v13, %v4171_v21  ;;  %v4349_v24 = vsub.f32 %v4167_v19, %v4175_v20 }
 0x1b6   :  { %v4293_v33 = vld [vmem:[#allocation2 + $0xa10] sm:$0xff]  ;;  %v4295_v57 = vld [vmem:[#allocation2 + $0xa18] sm:$0xff]  ;;  %v4297_v0 = vld [vmem:[#allocation2 + $0xa20] sm:$0xff]  ;;  %6151 = vst [vmem:[#allocation101_spill] sm:$0xff] %v4309_v1  ;;  %v4377_v20 = vsub.f32 %v4197_v28, %v4205_v39 }
 0x1b7   :  { %v4299_v43 = vld [vmem:[#allocation4 + $0xa08] sm:$0xff]  ;;  %v4301_v14 = vld [vmem:[#allocation4 + $0xa10] sm:$0xff]  ;;  %v4303_v12 = vld [vmem:[#allocation4 + $0xa18] sm:$0xff]  ;;  %6152 = vst [vmem:[#allocation105_spill] sm:$0xff] %v4313_v42 }
 0x1b8   :  { %v4305_v62 = vld [vmem:[#allocation4 + $0xa20] sm:$0xff]  ;;  %6153 = vst [vmem:[#allocation111_spill] sm:$0xff] %v4317_v15  ;;  %6154 = vst [vmem:[#allocation21_spill] sm:$0xff] %v4321_v5  ;;  %v4323_v40 = vld [vmem:[#allocation2 + $0xa28] sm:$0xff]  ;;  %v4353_v5 = vsub.f32 %v4169_v18, %v4177_v22  ;;  %v4373_v18 = vsub.f32 %v4195_v4, %v4203_v46  ;;  %v4381_v22 = vsub.f32 %v4199_v50, %v4207_v45 }
 0x1b9   :  { %v4325_v53 = vld [vmem:[#allocation2 + $0xa30] sm:$0xff]  ;;  %v4327_v16 = vld [vmem:[#allocation2 + $0xa38] sm:$0xff]  ;;  %v4329_v27 = vld [vmem:[#allocation2 + $0xa40] sm:$0xff]  ;;  %6155 = vst [vmem:[#allocation22_spill] sm:$0xff] %v4341_v11  ;;  %v4409_v45 = vsub.f32 %v4229_v55, %v4237_v59 }
 0x1ba   :  { %v4331_v41 = vld [vmem:[#allocation4 + $0xa28] sm:$0xff]  ;;  %v4333_v37 = vld [vmem:[#allocation4 + $0xa30] sm:$0xff]  ;;  %v4335_v3 = vld [vmem:[#allocation4 + $0xa38] sm:$0xff]  ;;  %6156 = vst [vmem:[#allocation120_spill] sm:$0xff] %v4345_v44 }
 0x1bb   :  { %v4337_v25 = vld [vmem:[#allocation4 + $0xa40] sm:$0xff]  ;;  %6157 = vst [vmem:[#allocation27_spill] sm:$0xff] %v4349_v24  ;;  %6158 = vst [vmem:[#allocation24_spill] sm:$0xff] %v4353_v5  ;;  %v4355_v15 = vld [vmem:[#allocation2 + $0xa48] sm:$0xff]  ;;  %v4385_v5 = vsub.f32 %v4201_v32, %v4209_v17  ;;  %v4405_v32 = vsub.f32 %v4227_v36, %v4235_v61  ;;  %v4413_v17 = vsub.f32 %v4231_v29, %v4239_v10 }
 0x1bc   :  { %v4357_v42 = vld [vmem:[#allocation2 + $0xa50] sm:$0xff]  ;;  %v4359_v1 = vld [vmem:[#allocation2 + $0xa58] sm:$0xff]  ;;  %v4361_v13 = vld [vmem:[#allocation2 + $0xa60] sm:$0xff]  ;;  %6159 = vst [vmem:[#allocation25_spill] sm:$0xff] %v4373_v18  ;;  %v4441_v10 = vsub.f32 %v4261_v49, %v4269_v38 }
 0x1bd   :  { %v4363_v21 = vld [vmem:[#allocation4 + $0xa48] sm:$0xff]  ;;  %v4365_v35 = vld [vmem:[#allocation4 + $0xa50] sm:$0xff]  ;;  %v4367_v7 = vld [vmem:[#allocation4 + $0xa58] sm:$0xff]  ;;  %6160 = vst [vmem:[#allocation129_spill] sm:$0xff] %v4377_v20 }
 0x1be   :  { %v4369_v19 = vld [vmem:[#allocation4 + $0xa60] sm:$0xff]  ;;  %6161 = vst [vmem:[#allocation28_spill] sm:$0xff] %v4381_v22  ;;  %6162 = vst [vmem:[#allocation138_spill] sm:$0xff] %v4385_v5  ;;  %v4387_v24 = vld [vmem:[#allocation2 + $0xa68] sm:$0xff]  ;;  %v4417_v5 = vsub.f32 %v4233_v58, %v4241_v47  ;;  %v4437_v58 = vsub.f32 %v4259_v6, %v4267_v60  ;;  %v4445_v47 = vsub.f32 %v4263_v23, %v4271_v30 }
 0x1bf   :  { %v4389_v44 = vld [vmem:[#allocation2 + $0xa70] sm:$0xff]  ;;  %v4391_v11 = vld [vmem:[#allocation2 + $0xa78] sm:$0xff]  ;;  %v4393_v4 = vld [vmem:[#allocation2 + $0xa80] sm:$0xff]  ;;  %6163 = vst [vmem:[#allocation30_spill] sm:$0xff] %v4405_v32  ;;  %v4461_v23 = vsub.f32 %v4291_v54, %v4299_v43  ;;  %v4469_v30 = vsub.f32 %v4295_v57, %v4303_v12  ;;  %v4485_v57 = vsub.f32 %v4323_v40, %v4331_v41  ;;  %v4493_v12 = vsub.f32 %v4327_v16, %v4335_v3 }
 0x1c0   :  { %v4395_v46 = vld [vmem:[#allocation4 + $0xa68] sm:$0xff]  ;;  %v4397_v28 = vld [vmem:[#allocation4 + $0xa70] sm:$0xff]  ;;  %v4399_v39 = vld [vmem:[#allocation4 + $0xa78] sm:$0xff]  ;;  %6164 = vst [vmem:[#allocation31_spill] sm:$0xff] %v4409_v45  ;;  %v4509_v16 = vsub.f32 %v4355_v15, %v4363_v21  ;;  %v4517_v3 = vsub.f32 %v4359_v1, %v4367_v7 }
 0x1c1   :  { %v4401_v50 = vld [vmem:[#allocation4 + $0xa80] sm:$0xff]  ;;  %6165 = vst [vmem:[#allocation156_spill] sm:$0xff] %v4413_v17  ;;  %6166 = vst [vmem:[#allocation147_spill] sm:$0xff] %v4417_v5  ;;  %v4419_v22 = vld [vmem:[#allocation2 + $0xa88] sm:$0xff]  ;;  %v4449_v5 = vsub.f32 %v4265_v8, %v4273_v63  ;;  %v4465_v8 = vsub.f32 %v4293_v33, %v4301_v14  ;;  %v4473_v63 = vsub.f32 %v4297_v0, %v4305_v62 }
 0x1c2   :  { %v4421_v20 = vld [vmem:[#allocation2 + $0xa90] sm:$0xff]  ;;  %v4423_v18 = vld [vmem:[#allocation2 + $0xa98] sm:$0xff]  ;;  %v4425_v36 = vld [vmem:[#allocation2 + $0xaa0] sm:$0xff]  ;;  %6167 = vst [vmem:[#allocation33_spill] sm:$0xff] %v4437_v58  ;;  %v4489_v0 = vsub.f32 %v4325_v53, %v4333_v37  ;;  %v4497_v62 = vsub.f32 %v4329_v27, %v4337_v25  ;;  %v4513_v27 = vsub.f32 %v4357_v42, %v4365_v35  ;;  %v4521_v25 = vsub.f32 %v4361_v13, %v4369_v19 }
 0x1c3   :  { %v4427_v61 = vld [vmem:[#allocation4 + $0xa88] sm:$0xff]  ;;  %v4429_v55 = vld [vmem:[#allocation4 + $0xa90] sm:$0xff]  ;;  %v4431_v59 = vld [vmem:[#allocation4 + $0xa98] sm:$0xff]  ;;  %6168 = vst [vmem:[#allocation34_spill] sm:$0xff] %v4441_v10  ;;  %v4533_v1 = vsub.f32 %v4387_v24, %v4395_v46  ;;  %v4537_v13 = vsub.f32 %v4389_v44, %v4397_v28  ;;  %v4541_v7 = vsub.f32 %v4391_v11, %v4399_v39  ;;  %v4545_v19 = vsub.f32 %v4393_v4, %v4401_v50 }
 0x1c4   :  { %v4433_v29 = vld [vmem:[#allocation4 + $0xaa0] sm:$0xff]  ;;  %6169 = vst [vmem:[#allocation36_spill] sm:$0xff] %v4445_v47  ;;  %6170 = vst [vmem:[#allocation37_spill] sm:$0xff] %v4449_v5  ;;  %v4451_v17 = vld [vmem:[#allocation2 + $0xaa8] sm:$0xff]  ;;  %v4549_v46 = vsub.f32 %v4419_v22, %v4427_v61  ;;  %v4553_v44 = vsub.f32 %v4421_v20, %v4429_v55  ;;  %v4557_v11 = vsub.f32 %v4423_v18, %v4431_v59 }
 0x1c5   :  { %v4453_v45 = vld [vmem:[#allocation2 + $0xab0] sm:$0xff]  ;;  %v4455_v32 = vld [vmem:[#allocation2 + $0xab8] sm:$0xff]  ;;  %v4457_v6 = vld [vmem:[#allocation2 + $0xac0] sm:$0xff]  ;;  %6171 = vst [vmem:[#allocation165_spill] sm:$0xff] %v4461_v23  ;;  %v4561_v4 = vsub.f32 %v4425_v36, %v4433_v29 }
 0x1c6   :  { %v1572_v60 = vld [vmem:[#allocation4 + $0xaa8] sm:$0xff]  ;;  %v1573_v58 = vld [vmem:[#allocation4 + $0xab0] sm:$0xff]  ;;  %v1574_v49 = vld [vmem:[#allocation4 + $0xab8] sm:$0xff]  ;;  %6172 = vst [vmem:[#allocation39_spill] sm:$0xff] %v4465_v8 }
 0x1c7   :  { %v1575_v38 = vld [vmem:[#allocation4 + $0xac0] sm:$0xff]  ;;  %6173 = vst [vmem:[#allocation43_spill] sm:$0xff] %v4469_v30  ;;  %6174 = vst [vmem:[#allocation40_spill] sm:$0xff] %v4473_v63  ;;  %v4475_v5 = vld [vmem:[#allocation2 + $0xac8] sm:$0xff]  ;;  %v4564_v61 = vsub.f32 %v4451_v17, %v1572_v60  ;;  %v4567_v20 = vsub.f32 %v4453_v45, %v1573_v58  ;;  %v4570_v18 = vsub.f32 %v4455_v32, %v1574_v49 }
 0x1c8   :  { %v4477_v47 = vld [vmem:[#allocation2 + $0xad0] sm:$0xff]  ;;  %v4479_v10 = vld [vmem:[#allocation2 + $0xad8] sm:$0xff]  ;;  %v4481_v54 = vld [vmem:[#allocation2 + $0xae0] sm:$0xff]  ;;  %6175 = vst [vmem:[#allocation174_spill] sm:$0xff] %v4485_v57  ;;  %v4573_v55 = vsub.f32 %v4457_v6, %v1575_v38 }
 0x1c9   :  { %v1576_v43 = vld [vmem:[#allocation4 + $0xac8] sm:$0xff]  ;;  %v1577_v23 = vld [vmem:[#allocation4 + $0xad0] sm:$0xff]  ;;  %v1578_v33 = vld [vmem:[#allocation4 + $0xad8] sm:$0xff]  ;;  %6176 = vst [vmem:[#allocation42_spill] sm:$0xff] %v4489_v0 }
 0x1ca   :  { %v1579_v14 = vld [vmem:[#allocation4 + $0xae0] sm:$0xff]  ;;  %6177 = vst [vmem:[#allocation183_spill] sm:$0xff] %v4493_v12  ;;  %6178 = vst [vmem:[#allocation45_spill] sm:$0xff] %v4497_v62  ;;  %v4499_v63 = vld [vmem:[#allocation2 + $0xae8] sm:$0xff]  ;;  %v4579_v17 = vsub.f32 %v4477_v47, %v1577_v23  ;;  %v4582_v45 = vsub.f32 %v4479_v10, %v1578_v33 }
 0x1cb   :  { %v4501_v30 = vld [vmem:[#allocation2 + $0xaf0] sm:$0xff]  ;;  %v4503_v8 = vld [vmem:[#allocation2 + $0xaf8] sm:$0xff]  ;;  %v4505_v40 = vld [vmem:[#allocation2 + $0xb00] sm:$0xff]  ;;  %6179 = vst [vmem:[#allocation46_spill] sm:$0xff] %v4509_v16  ;;  %v4585_v32 = vsub.f32 %v4481_v54, %v1579_v14 }
 0x1cc   :  { %v1580_v41 = vld [vmem:[#allocation4 + $0xae8] sm:$0xff]  ;;  %v1581_v57 = vld [vmem:[#allocation4 + $0xaf0] sm:$0xff]  ;;  %v1582_v53 = vld [vmem:[#allocation4 + $0xaf8] sm:$0xff]  ;;  %6180 = vst [vmem:[#allocation192_spill] sm:$0xff] %v4513_v27 }
 0x1cd   :  { %v1583_v37 = vld [vmem:[#allocation4 + $0xb00] sm:$0xff]  ;;  %6181 = vst [vmem:[#allocation51_spill] sm:$0xff] %v4517_v3  ;;  %6182 = vst [vmem:[#allocation48_spill] sm:$0xff] %v4521_v25  ;;  %v4523_v62 = vld [vmem:[#allocation2 + $0xb08] sm:$0xff]  ;;  %v4594_v47 = vsub.f32 %v4503_v8, %v1582_v53 }
 0x1ce   :  { %v4525_v12 = vld [vmem:[#allocation2 + $0xb10] sm:$0xff]  ;;  %v4527_v0 = vld [vmem:[#allocation2 + $0xb18] sm:$0xff]  ;;  %v4529_v15 = vld [vmem:[#allocation2 + $0xb20] sm:$0xff]  ;;  %6183 = vst [vmem:[#allocation49_spill] sm:$0xff] %v4533_v1  ;;  %v4576_v1 = vsub.f32 %v4475_v5, %v1576_v43  ;;  %v4591_v5 = vsub.f32 %v4501_v30, %v1581_v57  ;;  %v4597_v10 = vsub.f32 %v4505_v40, %v1583_v37 }
 0x1cf   :  { %v1584_v21 = vld [vmem:[#allocation4 + $0xb08] sm:$0xff]  ;;  %v1585_v16 = vld [vmem:[#allocation4 + $0xb10] sm:$0xff]  ;;  %v1586_v42 = vld [vmem:[#allocation4 + $0xb18] sm:$0xff]  ;;  %6184 = vst [vmem:[#allocation201_spill] sm:$0xff] %v4537_v13 }
 0x1d0   :  { %v1587_v35 = vld [vmem:[#allocation4 + $0xb20] sm:$0xff]  ;;  %6185 = vst [vmem:[#allocation52_spill] sm:$0xff] %v4541_v7  ;;  %6186 = vst [vmem:[#allocation210_spill] sm:$0xff] %v4545_v19  ;;  %v1460_v25 = vld [vmem:[#allocation2 + $0xb28] sm:$0xff]  ;;  %v4606_v30 = vsub.f32 %v4527_v0, %v1586_v42 }
 0x1d1   :  { %v1461_v3 = vld [vmem:[#allocation2 + $0xb30] sm:$0xff]  ;;  %v1462_v27 = vld [vmem:[#allocation2 + $0xb38] sm:$0xff]  ;;  %v1463_v2 = vld [vmem:[#allocation2 + $0xb40] sm:$0xff]  ;;  %6187 = vst [vmem:[#allocation54_spill] sm:$0xff] %v4549_v46  ;;  %v4609_v8 = vsub.f32 %v4529_v15, %v1587_v35 }
 0x1d2   :  { %v1588_v26 = vld [vmem:[#allocation4 + $0xb28] sm:$0xff]  ;;  %v1589_v52 = vld [vmem:[#allocation4 + $0xb30] sm:$0xff]  ;;  %v1590_v24 = vld [vmem:[#allocation4 + $0xb38] sm:$0xff]  ;;  %6188 = vst [vmem:[#allocation55_spill] sm:$0xff] %v4553_v44 }
 0x1d3   :  { %6189 = vst [vmem:[#allocation217_spill] sm:$0xff] %v4557_v11  ;;  %6190 = vst [vmem:[#allocation57_spill] sm:$0xff] %v4561_v4  ;;  %v1464_v28 = vld [vmem:[#allocation2 + $0xb48] sm:$0xff]  ;;  %v1465_v39 = vld [vmem:[#allocation2 + $0xb50] sm:$0xff] }
 0x1d4   :  { %v1466_v50 = vld [vmem:[#allocation2 + $0xb58] sm:$0xff]  ;;  %v1467_v19 = vld [vmem:[#allocation2 + $0xb60] sm:$0xff]  ;;  %v1592_v13 = vld [vmem:[#allocation4 + $0xb48] sm:$0xff]  ;;  %6191 = vst [vmem:[#allocation58_spill] sm:$0xff] %v4567_v20  ;;  %v4588_v20 = vsub.f32 %v4499_v63, %v1580_v41  ;;  %v4603_v63 = vsub.f32 %v4525_v12, %v1585_v16 }
 0x1d5   :  { %v1591_v7 = vld [vmem:[#allocation4 + $0xb40] sm:$0xff]  ;;  %v1593_v22 = vld [vmem:[#allocation4 + $0xb50] sm:$0xff]  ;;  %6192 = vst [vmem:[#allocation60_spill] sm:$0xff] %v4570_v18  ;;  %6193 = vst [vmem:[#allocation61_spill] sm:$0xff] %v4573_v55 }
 0x1d6   :  { %v1468_v36 = vld [vmem:[#allocation2 + $0xb68] sm:$0xff]  ;;  %v1469_v59 = vld [vmem:[#allocation2 + $0xb70] sm:$0xff]  ;;  %v1470_v29 = vld [vmem:[#allocation2 + $0xb78] sm:$0xff]  ;;  %6194 = vst [vmem:[#allocation63_spill] sm:$0xff] %v4579_v17  ;;  %v4600_v17 = vsub.f32 %v4523_v62, %v1584_v21  ;;  %v4613_v62 = vsub.f32 %v1461_v3, %v1589_v52  ;;  %v4615_v21 = vsub.f32 %v1462_v27, %v1590_v24  ;;  %v4617_v12 = vsub.f32 %v1463_v2, %v1591_v7 }
 0x1d7   :  { %v1471_v4 = vld [vmem:[#allocation2 + $0xb80] sm:$0xff]  ;;  %v1594_v11 = vld [vmem:[#allocation4 + $0xb58] sm:$0xff]  ;;  %v1596_v46 = vld [vmem:[#allocation4 + $0xb68] sm:$0xff]  ;;  %6195 = vst [vmem:[#allocation64_spill] sm:$0xff] %v4582_v45 }
 0x1d8   :  { %v1595_v44 = vld [vmem:[#allocation4 + $0xb60] sm:$0xff]  ;;  %6196 = vst [vmem:[#allocation66_spill] sm:$0xff] %v4585_v32  ;;  %v1472_v58 = vld [vmem:[#allocation2 + $0xb88] sm:$0xff]  ;;  %v1473_v6 = vld [vmem:[#allocation2 + $0xb90] sm:$0xff] }
 0x1d9   :  { %v1474_v60 = vld [vmem:[#allocation2 + $0xb98] sm:$0xff]  ;;  %v1475_v49 = vld [vmem:[#allocation2 + $0xba0] sm:$0xff]  ;;  %v1597_v38 = vld [vmem:[#allocation4 + $0xb70] sm:$0xff]  ;;  %6197 = vst [vmem:[#allocation67_spill] sm:$0xff] %v4591_v5  ;;  %v4611_v5 = vsub.f32 %v1460_v25, %v1588_v26  ;;  %v4625_v26 = vsub.f32 %v1467_v19, %v1595_v44  ;;  %v4627_v25 = vsub.f32 %v1468_v36, %v1596_v46 }
 0x1da   :  { %v1598_v55 = vld [vmem:[#allocation4 + $0xb78] sm:$0xff]  ;;  %v1599_v18 = vld [vmem:[#allocation4 + $0xb80] sm:$0xff]  ;;  %6198 = vst [vmem:[#allocation69_spill] sm:$0xff] %v4594_v47  ;;  %6199 = vst [vmem:[#allocation70_spill] sm:$0xff] %v4597_v10  ;;  %v4629_v2 = vsub.f32 %v1469_v59, %v1597_v38  ;;  %v4683_v38 = vmul.f32 %v3968_v56, %v3968_v56 }
 0x1db   :  { %v1476_v23 = vld [vmem:[#allocation2 + $0xba8] sm:$0xff]  ;;  %v1477_v54 = vld [vmem:[#allocation2 + $0xbb0] sm:$0xff]  ;;  %v1478_v43 = vld [vmem:[#allocation2 + $0xbb8] sm:$0xff]  ;;  %6200 = vst [vmem:[#allocation72_spill] sm:$0xff] %v4600_v17  ;;  %v4623_v17 = vsub.f32 %v1466_v50, %v1594_v11  ;;  %v4631_v7 = vsub.f32 %v1470_v29, %v1598_v55  ;;  %v4633_v24 = vsub.f32 %v1471_v4, %v1599_v18 }
 0x1dc   :  { %v1479_v33 = vld [vmem:[#allocation2 + $0xbc0] sm:$0xff]  ;;  %v1600_v14 = vld [vmem:[#allocation4 + $0xb88] sm:$0xff]  ;;  %v1601_v32 = vld [vmem:[#allocation4 + $0xb90] sm:$0xff]  ;;  %6201 = vst [vmem:[#allocation73_spill] sm:$0xff] %v4603_v63  ;;  %v4621_v63 = vsub.f32 %v1465_v39, %v1593_v22 }
 0x1dd   :  { %v1602_v45 = vld [vmem:[#allocation4 + $0xb98] sm:$0xff]  ;;  %6202 = vst [vmem:[#allocation75_spill] sm:$0xff] %v4606_v30  ;;  %6203 = vst [vmem:[#allocation76_spill] sm:$0xff] %v4609_v8  ;;  %v1480_v57 = vld [vmem:[#allocation2 + $0xbc8] sm:$0xff]  ;;  %v4619_v30 = vsub.f32 %v1464_v28, %v1592_v13  ;;  %v4635_v39 = vsub.f32 %v1472_v58, %v1600_v14  ;;  %v4637_v11 = vsub.f32 %v1473_v6, %v1601_v32 }
 0x1de   :  { %v1481_v40 = vld [vmem:[#allocation2 + $0xbd0] sm:$0xff]  ;;  %v1482_v41 = vld [vmem:[#allocation2 + $0xbd8] sm:$0xff]  ;;  %v1483_v53 = vld [vmem:[#allocation2 + $0xbe0] sm:$0xff]  ;;  %6204 = vst [vmem:[#allocation78_spill] sm:$0xff] %v4617_v12  ;;  %v4639_v19 = vsub.f32 %v1474_v60, %v1602_v45  ;;  %v4667_v58 = vmul.f32 %v3932_v31, %v3932_v31  ;;  %v4671_v6 = vmul.f32 %v3962_v48, %v3962_v48  ;;  %v4675_v60 = vmul.f32 %v3964_v51, %v3964_v51 }
 0x1df   :  { %v1603_v37 = vld [vmem:[#allocation4 + $0xba0] sm:$0xff]  ;;  %v1604_v10 = vld [vmem:[#allocation4 + $0xba8] sm:$0xff]  ;;  %v1605_v47 = vld [vmem:[#allocation4 + $0xbb0] sm:$0xff]  ;;  %v4687_v31 = vmul.f32 %v3996_v34, %v3996_v34 }
 0x1e0   :  { %v1484_v0 = vld [vmem:[#allocation2 + $0xbe8] sm:$0xff]  ;;  %v1485_v16 = vld [vmem:[#allocation2 + $0xbf0] sm:$0xff]  ;;  %v1486_v42 = vld [vmem:[#allocation2 + $0xbf8] sm:$0xff]  ;;  %v4641_v44 = vsub.f32 %v1475_v49, %v1603_v37  ;;  %v4643_v50 = vsub.f32 %v1476_v23, %v1604_v10  ;;  %v4645_v46 = vsub.f32 %v1477_v54, %v1605_v47  ;;  %v4679_v49 = vmul.f32 %v3966_v9, %v3966_v9 }
 0x1e1   :  { %v1606_v15 = vld [vmem:[#allocation4 + $0xbb8] sm:$0xff]  ;;  %v1607_v35 = vld [vmem:[#allocation4 + $0xbc0] sm:$0xff]  ;;  %v1608_v8 = vld [vmem:[#allocation4 + $0xbc8] sm:$0xff] }
 0x1e2   :  { %v1609_v52 = vld [vmem:[#allocation4 + $0xbd0] sm:$0xff]  ;;  %v1610_v3 = vld [vmem:[#allocation4 + $0xbd8] sm:$0xff]  ;;  %v1611_v27 = vld [vmem:[#allocation4 + $0xbe0] sm:$0xff]  ;;  %v4647_v22 = vsub.f32 %v1478_v43, %v1606_v15  ;;  %v4649_v55 = vsub.f32 %v1479_v33, %v1607_v35  ;;  %v4651_v4 = vsub.f32 %v1480_v57, %v1608_v8 }
 0x1e3   :  { %v1612_v12 = vld [vmem:[#allocation4 + $0xbe8] sm:$0xff]  ;;  %v1613_v13 = vld [vmem:[#allocation4 + $0xbf0] sm:$0xff]  ;;  %v1614_v28 = vld [vmem:[#allocation4 + $0xbf8] sm:$0xff]  ;;  %v4653_v18 = vsub.f32 %v1481_v40, %v1609_v52  ;;  %v4655_v36 = vsub.f32 %v1482_v41, %v1610_v3  ;;  %v4657_v59 = vsub.f32 %v1483_v53, %v1611_v27 }
 0x1e4   :  { %v4659_v29 = vsub.f32 %v1484_v0, %v1612_v12  ;;  %v4661_v45 = vsub.f32 %v1485_v16, %v1613_v13  ;;  %v4663_v32 = vsub.f32 %v1486_v42, %v1614_v28  ;;  %v6205_v47 = vld [vmem:[#allocation8_spill] sm:$0xff]  ;;  %v6207_v23 = vld [vmem:[#allocation9_spill] sm:$0xff]  ;;  %v6209_v43 = vld [vmem:[#allocation10_spill] sm:$0xff] }
 0x1e5   :  { %v4691_v48 = vmul.f32 %v6205_v47, %v6205_v47  ;;  %v6206_v10 = vld [vmem:[#allocation16_spill] sm:$0xff]  ;;  %v4699_v9 = vmul.f32 %v6207_v23, %v6207_v23  ;;  %v6208_v54 = vld [vmem:[#allocation17_spill] sm:$0xff]  ;;  %v4707_v34 = vmul.f32 %v6209_v43, %v6209_v43  ;;  %v6210_v33 = vld [vmem:[#allocation18_spill] sm:$0xff] }
 0x1e6   :  { %v4695_v51 = vmul.f32 %v6206_v10, %v6206_v10  ;;  %v4703_v56 = vmul.f32 %v6208_v54, %v6208_v54  ;;  %v4711_v14 = vmul.f32 %v6210_v33, %v6210_v33  ;;  %v6211_v8 = vld [vmem:[#allocation11_spill] sm:$0xff]  ;;  %v6212_v40 = vld [vmem:[#allocation20_spill] sm:$0xff]  ;;  %v6216_v15 = vld [vmem:[#allocation13_spill] sm:$0xff] }
 0x1e7   :  { %v4715_v57 = vmul.f32 %v6211_v8, %v6211_v8  ;;  %v4719_v41 = vmul.f32 %v6212_v40, %v6212_v40  ;;  %v6213_v53 = vld [vmem:[#allocation12_spill] sm:$0xff]  ;;  %v6214_v12 = vld [vmem:[#allocation23_spill] sm:$0xff]  ;;  %v4735_v35 = vmul.f32 %v6216_v15, %v6216_v15  ;;  %v6217_v52 = vld [vmem:[#allocation26_spill] sm:$0xff] }
 0x1e8   :  { %v4723_v37 = vmul.f32 %v6213_v53, %v6213_v53  ;;  %v4727_v0 = vmul.f32 %v6214_v12, %v6214_v12  ;;  %v6215_v16 = vld [vmem:[#allocation35_spill] sm:$0xff]  ;;  %v4739_v3 = vmul.f32 %v6217_v52, %v6217_v52  ;;  %v6218_v27 = vld [vmem:[#allocation14_spill] sm:$0xff]  ;;  %v6219_v28 = vld [vmem:[#allocation29_spill] sm:$0xff] }
 0x1e9   :  { %v4731_v42 = vmul.f32 %v6215_v16, %v6215_v16  ;;  %v4743_v13 = vmul.f32 %v6218_v27, %v6218_v27  ;;  %v4747_v47 = vmul.f32 %v6219_v28, %v6219_v28  ;;  %v6220_v10 = vld [vmem:[#allocation15_spill] sm:$0xff]  ;;  %v6221_v54 = vld [vmem:[#allocation32_spill] sm:$0xff]  ;;  %v6222_v33 = vld [vmem:[#allocation38_spill] sm:$0xff] }
 0x1ea   :  { %v4751_v23 = vmul.f32 %v6220_v10, %v6220_v10  ;;  %v4755_v43 = vmul.f32 %v6221_v54, %v6221_v54  ;;  %v4759_v8 = vmul.f32 %v6222_v33, %v6222_v33  ;;  %v6224_v40 = vld [vmem:[#allocation41_spill] sm:$0xff]  ;;  %v6225_v12 = vld [vmem:[#allocation44_spill] sm:$0xff]  ;;  %v6227_v15 = vld [vmem:[#allocation47_spill] sm:$0xff] }
 0x1eb   :  { %v4763_v53 = vmul.f32 %v6224_v40, %v6224_v40  ;;  %v4767_v16 = vmul.f32 %v6225_v12, %v6225_v12  ;;  %v4771_v52 = vmul.f32 %v6227_v15, %v6227_v15  ;;  %v6229_v27 = vld [vmem:[#allocation59_spill] sm:$0xff]  ;;  %v6231_v10 = vld [vmem:[#allocation50_spill] sm:$0xff]  ;;  %v6233_v33 = vld [vmem:[#allocation53_spill] sm:$0xff] }
 0x1ec   :  { %6223 = vst [vmem:[#allocation79_spill] sm:$0xff] %v4759_v8  ;;  %v4775_v28 = vmul.f32 %v6229_v27, %v6229_v27  ;;  %v4779_v54 = vmul.f32 %v6231_v10, %v6231_v10  ;;  %v4783_v40 = vmul.f32 %v6233_v33, %v6233_v33  ;;  %v6235_v8 = vld [vmem:[#allocation56_spill] sm:$0xff] }
 0x1ed   :  { %6226 = vst [vmem:[#allocation81_spill] sm:$0xff] %v4767_v16  ;;  %6228 = vst [vmem:[#allocation82_spill] sm:$0xff] %v4771_v52  ;;  %v4787_v12 = vmul.f32 %v6235_v8, %v6235_v8  ;;  %v6237_v16 = vld [vmem:[#allocation62_spill] sm:$0xff]  ;;  %v6239_v52 = vld [vmem:[#allocation65_spill] sm:$0xff] }
 0x1ee   :  { %6230 = vst [vmem:[#allocation84_spill] sm:$0xff] %v4775_v28  ;;  %6232 = vst [vmem:[#allocation85_spill] sm:$0xff] %v4779_v54  ;;  %v4791_v15 = vmul.f32 %v6237_v16, %v6237_v16  ;;  %v4795_v27 = vmul.f32 %v6239_v52, %v6239_v52  ;;  %v6241_v28 = vld [vmem:[#allocation68_spill] sm:$0xff]  ;;  %v6243_v54 = vld [vmem:[#allocation71_spill] sm:$0xff] }
 0x1ef   :  { %6234 = vst [vmem:[#allocation87_spill] sm:$0xff] %v4783_v40  ;;  %6236 = vst [vmem:[#allocation88_spill] sm:$0xff] %v4787_v12  ;;  %v4799_v10 = vmul.f32 %v6241_v28, %v6241_v28  ;;  %v4803_v33 = vmul.f32 %v6243_v54, %v6243_v54  ;;  %v6245_v40 = vld [vmem:[#allocation83_spill] sm:$0xff]  ;;  %v6247_v12 = vld [vmem:[#allocation74_spill] sm:$0xff] }
 0x1f0   :  { %6238 = vst [vmem:[#allocation90_spill] sm:$0xff] %v4791_v15  ;;  %6240 = vst [vmem:[#allocation91_spill] sm:$0xff] %v4795_v27  ;;  %v4807_v8 = vmul.f32 %v6245_v40, %v6245_v40  ;;  %v4811_v16 = vmul.f32 %v6247_v12, %v6247_v12  ;;  %v6249_v15 = vld [vmem:[#allocation77_spill] sm:$0xff]  ;;  %v6251_v27 = vld [vmem:[#allocation80_spill] sm:$0xff] }
 0x1f1   :  { %6242 = vst [vmem:[#allocation93_spill] sm:$0xff] %v4799_v10  ;;  %6244 = vst [vmem:[#allocation94_spill] sm:$0xff] %v4803_v33  ;;  %v4815_v52 = vmul.f32 %v6249_v15, %v6249_v15  ;;  %v4819_v28 = vmul.f32 %v6251_v27, %v6251_v27  ;;  %v6253_v10 = vld [vmem:[#allocation86_spill] sm:$0xff]  ;;  %v6255_v33 = vld [vmem:[#allocation89_spill] sm:$0xff] }
 0x1f2   :  { %6246 = vst [vmem:[#allocation96_spill] sm:$0xff] %v4807_v8  ;;  %6248 = vst [vmem:[#allocation97_spill] sm:$0xff] %v4811_v16  ;;  %v4823_v54 = vmul.f32 %v6253_v10, %v6253_v10  ;;  %v4827_v40 = vmul.f32 %v6255_v33, %v6255_v33  ;;  %v6257_v8 = vld [vmem:[#allocation92_spill] sm:$0xff]  ;;  %v6259_v16 = vld [vmem:[#allocation95_spill] sm:$0xff] }
 0x1f3   :  { %6250 = vst [vmem:[#allocation99_spill] sm:$0xff] %v4815_v52  ;;  %6252 = vst [vmem:[#allocation100_spill] sm:$0xff] %v4819_v28  ;;  %v4831_v12 = vmul.f32 %v6257_v8, %v6257_v8  ;;  %v4835_v15 = vmul.f32 %v6259_v16, %v6259_v16  ;;  %v6261_v52 = vld [vmem:[#allocation19_spill] sm:$0xff]  ;;  %v6263_v28 = vld [vmem:[#allocation98_spill] sm:$0xff] }
 0x1f4   :  { %6254 = vst [vmem:[#allocation102_spill] sm:$0xff] %v4823_v54  ;;  %6256 = vst [vmem:[#allocation103_spill] sm:$0xff] %v4827_v40  ;;  %v4839_v27 = vmul.f32 %v6261_v52, %v6261_v52  ;;  %v4843_v10 = vmul.f32 %v6263_v28, %v6263_v28  ;;  %v6265_v54 = vld [vmem:[#allocation101_spill] sm:$0xff] }
 0x1f5   :  { %6258 = vst [vmem:[#allocation108_spill] sm:$0xff] %v4831_v12  ;;  %6260 = vst [vmem:[#allocation104_spill] sm:$0xff] %v4835_v15  ;;  %v4847_v33 = vmul.f32 %v6265_v54, %v6265_v54  ;;  %v6267_v40 = vld [vmem:[#allocation105_spill] sm:$0xff]  ;;  %v6269_v12 = vld [vmem:[#allocation111_spill] sm:$0xff] }
 0x1f6   :  { %6262 = vst [vmem:[#allocation106_spill] sm:$0xff] %v4839_v27  ;;  %6264 = vst [vmem:[#allocation107_spill] sm:$0xff] %v4843_v10  ;;  %v4851_v8 = vmul.f32 %v6267_v40, %v6267_v40  ;;  %v4855_v16 = vmul.f32 %v6269_v12, %v6269_v12  ;;  %v6271_v15 = vld [vmem:[#allocation21_spill] sm:$0xff]  ;;  %v6273_v27 = vld [vmem:[#allocation22_spill] sm:$0xff] }
 0x1f7   :  { %6266 = vst [vmem:[#allocation109_spill] sm:$0xff] %v4847_v33  ;;  %v4859_v52 = vmul.f32 %v6271_v15, %v6271_v15  ;;  %v4863_v28 = vmul.f32 %v6273_v27, %v6273_v27  ;;  %v6275_v10 = vld [vmem:[#allocation120_spill] sm:$0xff]  ;;  %v6277_v33 = vld [vmem:[#allocation27_spill] sm:$0xff] }
 0x1f8   :  { %6268 = vst [vmem:[#allocation110_spill] sm:$0xff] %v4851_v8  ;;  %6270 = vst [vmem:[#allocation112_spill] sm:$0xff] %v4855_v16  ;;  %v4867_v54 = vmul.f32 %v6275_v10, %v6275_v10  ;;  %v4871_v40 = vmul.f32 %v6277_v33, %v6277_v33  ;;  %v6279_v8 = vld [vmem:[#allocation24_spill] sm:$0xff]  ;;  %v6281_v16 = vld [vmem:[#allocation25_spill] sm:$0xff] }
 0x1f9   :  { %6272 = vst [vmem:[#allocation116_spill] sm:$0xff] %v4859_v52  ;;  %6274 = vst [vmem:[#allocation113_spill] sm:$0xff] %v4863_v28  ;;  %v4875_v12 = vmul.f32 %v6279_v8, %v6279_v8  ;;  %v4879_v15 = vmul.f32 %v6281_v16, %v6281_v16  ;;  %v6283_v52 = vld [vmem:[#allocation129_spill] sm:$0xff]  ;;  %v6285_v28 = vld [vmem:[#allocation28_spill] sm:$0xff] }
 0x1fa   :  { %6276 = vst [vmem:[#allocation114_spill] sm:$0xff] %v4867_v54  ;;  %6278 = vst [vmem:[#allocation115_spill] sm:$0xff] %v4871_v40  ;;  %v4883_v27 = vmul.f32 %v6283_v52, %v6283_v52  ;;  %v4887_v10 = vmul.f32 %v6285_v28, %v6285_v28  ;;  %v6287_v54 = vld [vmem:[#allocation138_spill] sm:$0xff] }
 0x1fb   :  { %6280 = vst [vmem:[#allocation117_spill] sm:$0xff] %v4875_v12  ;;  %6282 = vst [vmem:[#allocation118_spill] sm:$0xff] %v4879_v15  ;;  %v4891_v33 = vmul.f32 %v6287_v54, %v6287_v54  ;;  %v6289_v40 = vld [vmem:[#allocation30_spill] sm:$0xff]  ;;  %v6291_v12 = vld [vmem:[#allocation31_spill] sm:$0xff] }
 0x1fc   :  { %6284 = vst [vmem:[#allocation119_spill] sm:$0xff] %v4883_v27  ;;  %6286 = vst [vmem:[#allocation124_spill] sm:$0xff] %v4887_v10  ;;  %v4895_v8 = vmul.f32 %v6289_v40, %v6289_v40  ;;  %v4899_v16 = vmul.f32 %v6291_v12, %v6291_v12  ;;  %v6293_v15 = vld [vmem:[#allocation156_spill] sm:$0xff]  ;;  %v6295_v27 = vld [vmem:[#allocation147_spill] sm:$0xff] }
 0x1fd   :  { %6288 = vst [vmem:[#allocation121_spill] sm:$0xff] %v4891_v33  ;;  %v4903_v52 = vmul.f32 %v6293_v15, %v6293_v15  ;;  %v4907_v28 = vmul.f32 %v6295_v27, %v6295_v27  ;;  %v6297_v10 = vld [vmem:[#allocation33_spill] sm:$0xff]  ;;  %v6299_v33 = vld [vmem:[#allocation34_spill] sm:$0xff] }
 0x1fe   :  { %6290 = vst [vmem:[#allocation122_spill] sm:$0xff] %v4895_v8  ;;  %6292 = vst [vmem:[#allocation123_spill] sm:$0xff] %v4899_v16  ;;  %v4911_v54 = vmul.f32 %v6297_v10, %v6297_v10  ;;  %v4915_v40 = vmul.f32 %v6299_v33, %v6299_v33  ;;  %v6301_v8 = vld [vmem:[#allocation36_spill] sm:$0xff]  ;;  %v6303_v16 = vld [vmem:[#allocation37_spill] sm:$0xff] }
 0x1ff   :  { %6294 = vst [vmem:[#allocation125_spill] sm:$0xff] %v4903_v52  ;;  %6296 = vst [vmem:[#allocation126_spill] sm:$0xff] %v4907_v28  ;;  %v4919_v12 = vmul.f32 %v6301_v8, %v6301_v8  ;;  %v4923_v15 = vmul.f32 %v6303_v16, %v6303_v16  ;;  %v6305_v52 = vld [vmem:[#allocation165_spill] sm:$0xff]  ;;  %v6307_v28 = vld [vmem:[#allocation39_spill] sm:$0xff] }
 0x200   :  { %6298 = vst [vmem:[#allocation127_spill] sm:$0xff] %v4911_v54  ;;  %6300 = vst [vmem:[#allocation132_spill] sm:$0xff] %v4915_v40  ;;  %v4927_v27 = vmul.f32 %v6305_v52, %v6305_v52  ;;  %v4931_v10 = vmul.f32 %v6307_v28, %v6307_v28  ;;  %v6309_v54 = vld [vmem:[#allocation43_spill] sm:$0xff]  ;;  %v6311_v40 = vld [vmem:[#allocation40_spill] sm:$0xff] }
 0x201   :  { %6302 = vst [vmem:[#allocation128_spill] sm:$0xff] %v4919_v12  ;;  %6304 = vst [vmem:[#allocation130_spill] sm:$0xff] %v4923_v15  ;;  %v4935_v33 = vmul.f32 %v6309_v54, %v6309_v54  ;;  %v4939_v8 = vmul.f32 %v6311_v40, %v6311_v40  ;;  %v6313_v12 = vld [vmem:[#allocation174_spill] sm:$0xff] }
 0x202   :  { %6306 = vst [vmem:[#allocation131_spill] sm:$0xff] %v4927_v27  ;;  %6308 = vst [vmem:[#allocation133_spill] sm:$0xff] %v4931_v10  ;;  %v4943_v16 = vmul.f32 %v6313_v12, %v6313_v12  ;;  %v6315_v15 = vld [vmem:[#allocation42_spill] sm:$0xff]  ;;  %v6317_v27 = vld [vmem:[#allocation183_spill] sm:$0xff] }
 0x203   :  { %6310 = vst [vmem:[#allocation134_spill] sm:$0xff] %v4935_v33  ;;  %6312 = vst [vmem:[#allocation135_spill] sm:$0xff] %v4939_v8  ;;  %v4947_v52 = vmul.f32 %v6315_v15, %v6315_v15  ;;  %v4951_v28 = vmul.f32 %v6317_v27, %v6317_v27  ;;  %v6319_v10 = vld [vmem:[#allocation45_spill] sm:$0xff]  ;;  %v6321_v33 = vld [vmem:[#allocation46_spill] sm:$0xff] }
 0x204   :  { %6314 = vst [vmem:[#allocation140_spill] sm:$0xff] %v4943_v16  ;;  %v4955_v54 = vmul.f32 %v6319_v10, %v6319_v10  ;;  %v4959_v40 = vmul.f32 %v6321_v33, %v6321_v33  ;;  %v6323_v8 = vld [vmem:[#allocation192_spill] sm:$0xff]  ;;  %v6325_v16 = vld [vmem:[#allocation51_spill] sm:$0xff] }
 0x205   :  { %6316 = vst [vmem:[#allocation136_spill] sm:$0xff] %v4947_v52  ;;  %6318 = vst [vmem:[#allocation137_spill] sm:$0xff] %v4951_v28  ;;  %v4963_v12 = vmul.f32 %v6323_v8, %v6323_v8  ;;  %v4967_v15 = vmul.f32 %v6325_v16, %v6325_v16  ;;  %v6327_v52 = vld [vmem:[#allocation48_spill] sm:$0xff]  ;;  %v6329_v28 = vld [vmem:[#allocation49_spill] sm:$0xff] }
 0x206   :  { %6320 = vst [vmem:[#allocation139_spill] sm:$0xff] %v4955_v54  ;;  %6322 = vst [vmem:[#allocation141_spill] sm:$0xff] %v4959_v40  ;;  %v4971_v27 = vmul.f32 %v6327_v52, %v6327_v52  ;;  %v4975_v10 = vmul.f32 %v6329_v28, %v6329_v28  ;;  %v6331_v54 = vld [vmem:[#allocation201_spill] sm:$0xff]  ;;  %v6333_v40 = vld [vmem:[#allocation52_spill] sm:$0xff] }
 0x207   :  { %6324 = vst [vmem:[#allocation142_spill] sm:$0xff] %v4963_v12  ;;  %6326 = vst [vmem:[#allocation143_spill] sm:$0xff] %v4967_v15  ;;  %v4979_v33 = vmul.f32 %v6331_v54, %v6331_v54  ;;  %v4983_v8 = vmul.f32 %v6333_v40, %v6333_v40  ;;  %v6335_v12 = vld [vmem:[#allocation210_spill] sm:$0xff] }
 0x208   :  { %6328 = vst [vmem:[#allocation144_spill] sm:$0xff] %v4971_v27  ;;  %6330 = vst [vmem:[#allocation145_spill] sm:$0xff] %v4975_v10  ;;  %v4987_v16 = vmul.f32 %v6335_v12, %v6335_v12  ;;  %v6336_v15 = vld [vmem:[#allocation54_spill] sm:$0xff]  ;;  %v6338_v27 = vld [vmem:[#allocation55_spill] sm:$0xff]  ;;  %v5007_v12 = vmul.f32 %v4564_v61, %v4564_v61 }
 0x209   :  { %6332 = vst [vmem:[#allocation146_spill] sm:$0xff] %v4979_v33  ;;  %6334 = vst [vmem:[#allocation148_spill] sm:$0xff] %v4983_v8  ;;  %v4991_v52 = vmul.f32 %v6336_v15, %v6336_v15  ;;  %v4995_v28 = vmul.f32 %v6338_v27, %v6338_v27  ;;  %v6340_v10 = vld [vmem:[#allocation217_spill] sm:$0xff]  ;;  %v6344_v8 = vld [vmem:[#allocation58_spill] sm:$0xff] }
 0x20a   :  { %v4999_v54 = vmul.f32 %v6340_v10, %v6340_v10  ;;  %v6341_v33 = vld [vmem:[#allocation57_spill] sm:$0xff]  ;;  %6343 = vst [vmem:[#allocation152_spill] sm:$0xff] %v5007_v12  ;;  %v5011_v15 = vmul.f32 %v6344_v8, %v6344_v8  ;;  %v6352_v12 = vld [vmem:[#allocation64_spill] sm:$0xff] }
 0x20b   :  { %6337 = vst [vmem:[#allocation149_spill] sm:$0xff] %v4991_v52  ;;  %6339 = vst [vmem:[#allocation150_spill] sm:$0xff] %v4995_v28  ;;  %v5003_v40 = vmul.f32 %v6341_v33, %v6341_v33  ;;  %v6346_v52 = vld [vmem:[#allocation60_spill] sm:$0xff]  ;;  %v6348_v28 = vld [vmem:[#allocation61_spill] sm:$0xff]  ;;  %v5023_v33 = vmul.f32 %v4576_v1, %v4576_v1  ;;  %v5031_v8 = vmul.f32 %v6352_v12, %v6352_v12 }
 0x20c   :  { %6345 = vst [vmem:[#allocation153_spill] sm:$0xff] %v5011_v15  ;;  %v5015_v27 = vmul.f32 %v6346_v52, %v6346_v52  ;;  %v5019_v10 = vmul.f32 %v6348_v28, %v6348_v28  ;;  %v6354_v15 = vld [vmem:[#allocation66_spill] sm:$0xff]  ;;  %v5039_v28 = vmul.f32 %v4588_v20, %v4588_v20 }
 0x20d   :  { %6342 = vst [vmem:[#allocation151_spill] sm:$0xff] %v5003_v40  ;;  %6349 = vst [vmem:[#allocation155_spill] sm:$0xff] %v5023_v33  ;;  %v6350_v40 = vld [vmem:[#allocation63_spill] sm:$0xff]  ;;  %v5035_v52 = vmul.f32 %v6354_v15, %v6354_v15  ;;  %v6359_v33 = vld [vmem:[#allocation69_spill] sm:$0xff] }
 0x20e   :  { %6347 = vst [vmem:[#allocation154_spill] sm:$0xff] %v5015_v27  ;;  %v5027_v61 = vmul.f32 %v6350_v40, %v6350_v40  ;;  %6353 = vst [vmem:[#allocation158_spill] sm:$0xff] %v5031_v8  ;;  %v6357_v27 = vld [vmem:[#allocation67_spill] sm:$0xff]  ;;  %v5047_v40 = vmul.f32 %v6359_v33, %v6359_v33  ;;  %v6361_v8 = vld [vmem:[#allocation72_spill] sm:$0xff] }
 0x20f   :  { %6355 = vst [vmem:[#allocation159_spill] sm:$0xff] %v5035_v52  ;;  %6356 = vst [vmem:[#allocation160_spill] sm:$0xff] %v5039_v28  ;;  %v5043_v1 = vmul.f32 %v6357_v27, %v6357_v27  ;;  %v5055_v15 = vmul.f32 %v6361_v8, %v6361_v8  ;;  %v6362_v52 = vld [vmem:[#allocation73_spill] sm:$0xff]  ;;  %v6364_v28 = vld [vmem:[#allocation75_spill] sm:$0xff]  ;;  %v5075_v8 = vmul.f32 %v4613_v62, %v4613_v62 }
 0x210   :  { %6351 = vst [vmem:[#allocation157_spill] sm:$0xff] %v5027_v61  ;;  %v6360_v61 = vld [vmem:[#allocation70_spill] sm:$0xff]  ;;  %v5059_v20 = vmul.f32 %v6362_v52, %v6362_v52  ;;  %v5063_v27 = vmul.f32 %v6364_v28, %v6364_v28  ;;  %v5079_v52 = vmul.f32 %v4615_v21, %v4615_v21  ;;  %v5095_v62 = vmul.f32 %v4623_v17, %v4623_v17 }
 0x211   :  { %6358 = vst [vmem:[#allocation161_spill] sm:$0xff] %v5043_v1  ;;  %v5051_v12 = vmul.f32 %v6360_v61, %v6360_v61  ;;  %v6365_v1 = vld [vmem:[#allocation76_spill] sm:$0xff]  ;;  %v5071_v61 = vmul.f32 %v4611_v5, %v4611_v5  ;;  %v5091_v5 = vmul.f32 %v4621_v63, %v4621_v63  ;;  %v5099_v21 = vmul.f32 %v4625_v26, %v4625_v26 }
 0x212   :  { %6363 = vst [vmem:[#allocation162_spill] sm:$0xff] %v5059_v20  ;;  %v5067_v33 = vmul.f32 %v6365_v1, %v6365_v1  ;;  %v6366_v20 = vld [vmem:[#allocation78_spill] sm:$0xff]  ;;  %v5087_v1 = vmul.f32 %v4619_v30, %v4619_v30  ;;  %v5107_v30 = vmul.f32 %v4629_v2, %v4629_v2  ;;  %v5111_v63 = vmul.f32 %v4631_v7, %v4631_v7 }
 0x213   :  { %v5083_v28 = vmul.f32 %v6366_v20, %v6366_v20  ;;  %v5103_v20 = vmul.f32 %v4627_v25, %v4627_v25  ;;  %v5115_v17 = vmul.f32 %v4633_v24, %v4633_v24  ;;  %v5119_v26 = vmul.f32 %v4635_v39, %v4635_v39 }
 0x214   :  { %v5123_v25 = vmul.f32 %v4637_v11, %v4637_v11  ;;  %v5127_v2 = vmul.f32 %v4639_v19, %v4639_v19  ;;  %v5131_v7 = vmul.f32 %v4641_v44, %v4641_v44  ;;  %v5135_v24 = vmul.f32 %v4643_v50, %v4643_v50 }
 0x215   :  { %v5139_v39 = vmul.f32 %v4645_v46, %v4645_v46  ;;  %v5143_v11 = vmul.f32 %v4647_v22, %v4647_v22  ;;  %v5147_v19 = vmul.f32 %v4649_v55, %v4649_v55  ;;  %v5151_v44 = vmul.f32 %v4651_v4, %v4651_v4 }
 0x216   :  { %v5155_v50 = vmul.f32 %v4653_v18, %v4653_v18  ;;  %v5159_v46 = vmul.f32 %v4655_v36, %v4655_v36  ;;  %v5163_v22 = vmul.f32 %v4657_v59, %v4657_v59  ;;  %v5167_v55 = vmul.f32 %v4659_v29, %v4659_v29 }
 0x217   :  { %v5171_v4 = vmul.f32 %v4661_v45, %v4661_v45  ;;  %v5175_v18 = vmul.f32 %v4663_v32, %v4663_v32  ;;  %v1879_v36 = vadd.f32 %v4699_v9, %v4667_v58  ;;  %v1909_v59 = vadd.f32 %v4707_v34, %v4675_v60 }
 0x218   :  { %6367 = vst [vmem:[#allocation163_spill] sm:$0xff] %v5159_v46  ;;  %v1894_v46 = vadd.f32 %v4703_v56, %v4671_v6  ;;  %v1924_v29 = vadd.f32 %v4711_v14, %v4679_v49  ;;  %v1939_v45 = vadd.f32 %v4715_v57, %v4683_v38  ;;  %v1954_v32 = vadd.f32 %v4719_v41, %v4687_v31  ;;  %v6369_v14 = vld [vmem:[#allocation79_spill] sm:$0xff] }
 0x219   :  { %6368 = vst [vmem:[#allocation164_spill] sm:$0xff] %v5171_v4  ;;  %v1880_v4 = vadd.f32 %v1879_v36, %v4731_v42  ;;  %v1969_v58 = vadd.f32 %v4723_v37, %v4691_v48  ;;  %v1984_v6 = vadd.f32 %v4727_v0, %v4695_v51  ;;  %v1910_v60 = vadd.f32 %v1909_v59, %v4739_v3  ;;  %v6370_v48 = vld [vmem:[#allocation81_spill] sm:$0xff]  ;;  %v6371_v37 = vld [vmem:[#allocation82_spill] sm:$0xff]  ;;  %v6372_v0 = vld [vmem:[#allocation84_spill] sm:$0xff] }
 0x21a   :  { %v1895_v9 = vadd.f32 %v1894_v46, %v4735_v35  ;;  %v1925_v49 = vadd.f32 %v1924_v29, %v4743_v13  ;;  %v1940_v56 = vadd.f32 %v1939_v45, %v4747_v47  ;;  %v1955_v34 = vadd.f32 %v1954_v32, %v4751_v23  ;;  %v6373_v35 = vld [vmem:[#allocation85_spill] sm:$0xff]  ;;  %v6374_v46 = vld [vmem:[#allocation91_spill] sm:$0xff]  ;;  %v6376_v59 = vld [vmem:[#allocation88_spill] sm:$0xff] }
 0x21b   :  { %v1881_v38 = vadd.f32 %v1880_v4, %v4763_v53  ;;  %v1970_v31 = vadd.f32 %v1969_v58, %v4755_v43  ;;  %v1985_v57 = vadd.f32 %v1984_v6, %v6369_v14  ;;  %v1911_v51 = vadd.f32 %v1910_v60, %v6371_v37  ;;  %v6375_v36 = vld [vmem:[#allocation87_spill] sm:$0xff]  ;;  %v6377_v4 = vld [vmem:[#allocation90_spill] sm:$0xff]  ;;  %v6378_v29 = vld [vmem:[#allocation93_spill] sm:$0xff] }
 0x21c   :  { %v1896_v41 = vadd.f32 %v1895_v9, %v6370_v48  ;;  %v1926_v42 = vadd.f32 %v1925_v49, %v6372_v0  ;;  %v1941_v3 = vadd.f32 %v1940_v56, %v6373_v35  ;;  %v1956_v47 = vadd.f32 %v1955_v34, %v6375_v36  ;;  %v6379_v45 = vld [vmem:[#allocation94_spill] sm:$0xff]  ;;  %v6380_v58 = vld [vmem:[#allocation96_spill] sm:$0xff]  ;;  %v6381_v9 = vld [vmem:[#allocation97_spill] sm:$0xff] }
 0x21d   :  { %v1882_v13 = vadd.f32 %v1881_v38, %v6374_v46  ;;  %v1971_v53 = vadd.f32 %v1970_v31, %v6376_v59  ;;  %v1986_v23 = vadd.f32 %v1985_v57, %v6377_v4  ;;  %v1912_v32 = vadd.f32 %v1911_v51, %v6379_v45  ;;  %v6382_v14 = vld [vmem:[#allocation103_spill] sm:$0xff]  ;;  %v6384_v37 = vld [vmem:[#allocation100_spill] sm:$0xff]  ;;  %v6385_v0 = vld [vmem:[#allocation102_spill] sm:$0xff] }
 0x21e   :  { %v1897_v43 = vadd.f32 %v1896_v41, %v6378_v29  ;;  %v1927_v6 = vadd.f32 %v1926_v42, %v6380_v58  ;;  %v1942_v60 = vadd.f32 %v1941_v3, %v6381_v9  ;;  %v6383_v48 = vld [vmem:[#allocation99_spill] sm:$0xff]  ;;  %v6386_v35 = vld [vmem:[#allocation108_spill] sm:$0xff]  ;;  %v6388_v36 = vld [vmem:[#allocation106_spill] sm:$0xff] }
 0x21f   :  { %v1883_v49 = vadd.f32 %v1882_v13, %v6382_v14  ;;  %v1957_v56 = vadd.f32 %v1956_v47, %v6383_v48  ;;  %v1972_v38 = vadd.f32 %v1971_v53, %v6384_v37  ;;  %v1987_v34 = vadd.f32 %v1986_v23, %v6385_v0  ;;  %v6387_v46 = vld [vmem:[#allocation104_spill] sm:$0xff]  ;;  %v6389_v59 = vld [vmem:[#allocation107_spill] sm:$0xff]  ;;  %v6391_v29 = vld [vmem:[#allocation109_spill] sm:$0xff] }
 0x220   :  { %v1898_v31 = vadd.f32 %v1897_v43, %v6386_v35  ;;  %v1913_v57 = vadd.f32 %v1912_v32, %v6387_v46  ;;  %v1928_v41 = vadd.f32 %v1927_v6, %v6388_v36  ;;  %v1943_v51 = vadd.f32 %v1942_v60, %v6389_v59  ;;  %v6390_v4 = vld [vmem:[#allocation116_spill] sm:$0xff]  ;;  %v6392_v45 = vld [vmem:[#allocation110_spill] sm:$0xff]  ;;  %v6394_v9 = vld [vmem:[#allocation113_spill] sm:$0xff] }
 0x221   :  { %v1884_v42 = vadd.f32 %v1883_v49, %v6390_v4  ;;  %v1958_v3 = vadd.f32 %v1957_v56, %v6391_v29  ;;  %v1973_v13 = vadd.f32 %v1972_v38, %v6392_v45  ;;  %v6393_v58 = vld [vmem:[#allocation112_spill] sm:$0xff]  ;;  %v6395_v14 = vld [vmem:[#allocation114_spill] sm:$0xff]  ;;  %v6396_v48 = vld [vmem:[#allocation115_spill] sm:$0xff] }
 0x222   :  { %v1988_v47 = vadd.f32 %v1987_v34, %v6393_v58  ;;  %v1899_v53 = vadd.f32 %v1898_v31, %v6394_v9  ;;  %v1914_v23 = vadd.f32 %v1913_v57, %v6395_v14  ;;  %v1929_v43 = vadd.f32 %v1928_v41, %v6396_v48  ;;  %v6397_v37 = vld [vmem:[#allocation117_spill] sm:$0xff]  ;;  %v6399_v35 = vld [vmem:[#allocation118_spill] sm:$0xff]  ;;  %v6400_v46 = vld [vmem:[#allocation119_spill] sm:$0xff] }
 0x223   :  { %v1944_v32 = vadd.f32 %v1943_v51, %v6397_v37  ;;  %v6398_v0 = vld [vmem:[#allocation121_spill] sm:$0xff]  ;;  %v1959_v60 = vadd.f32 %v1958_v3, %v6399_v35  ;;  %v1974_v49 = vadd.f32 %v1973_v13, %v6400_v46  ;;  %v6401_v36 = vld [vmem:[#allocation124_spill] sm:$0xff]  ;;  %v6402_v59 = vld [vmem:[#allocation122_spill] sm:$0xff] }
 0x224   :  { %v1885_v6 = vadd.f32 %v1884_v42, %v6398_v0  ;;  %v1989_v56 = vadd.f32 %v1988_v47, %v6401_v36  ;;  %v1900_v38 = vadd.f32 %v1899_v53, %v6402_v59  ;;  %v6403_v4 = vld [vmem:[#allocation123_spill] sm:$0xff]  ;;  %v6404_v29 = vld [vmem:[#allocation125_spill] sm:$0xff]  ;;  %v6405_v45 = vld [vmem:[#allocation126_spill] sm:$0xff] }
 0x225   :  { %v1915_v34 = vadd.f32 %v1914_v23, %v6403_v4  ;;  %v1930_v31 = vadd.f32 %v1929_v43, %v6404_v29  ;;  %v1945_v57 = vadd.f32 %v1944_v32, %v6405_v45  ;;  %v6406_v58 = vld [vmem:[#allocation130_spill] sm:$0xff]  ;;  %v6407_v9 = vld [vmem:[#allocation127_spill] sm:$0xff]  ;;  %v6408_v14 = vld [vmem:[#allocation132_spill] sm:$0xff] }
 0x226   :  { %v1886_v41 = vadd.f32 %v1885_v6, %v6406_v58  ;;  %v1960_v51 = vadd.f32 %v1959_v60, %v6407_v9  ;;  %v1975_v42 = vadd.f32 %v1974_v49, %v6408_v14  ;;  %v6409_v48 = vld [vmem:[#allocation128_spill] sm:$0xff]  ;;  %v6410_v37 = vld [vmem:[#allocation131_spill] sm:$0xff]  ;;  %v6411_v0 = vld [vmem:[#allocation133_spill] sm:$0xff] }
 0x227   :  { %v1990_v3 = vadd.f32 %v1989_v56, %v6409_v48  ;;  %v1901_v13 = vadd.f32 %v1900_v38, %v6410_v37  ;;  %v1916_v47 = vadd.f32 %v1915_v34, %v6411_v0  ;;  %v6412_v35 = vld [vmem:[#allocation134_spill] sm:$0xff]  ;;  %v6413_v46 = vld [vmem:[#allocation135_spill] sm:$0xff]  ;;  %v6415_v59 = vld [vmem:[#allocation140_spill] sm:$0xff] }
 0x228   :  { %v1931_v53 = vadd.f32 %v1930_v31, %v6412_v35  ;;  %v1946_v23 = vadd.f32 %v1945_v57, %v6413_v46  ;;  %v6414_v36 = vld [vmem:[#allocation139_spill] sm:$0xff]  ;;  %v1961_v32 = vadd.f32 %v1960_v51, %v6415_v59  ;;  %v6416_v4 = vld [vmem:[#allocation136_spill] sm:$0xff]  ;;  %v6417_v29 = vld [vmem:[#allocation137_spill] sm:$0xff] }
 0x229   :  { %v1887_v43 = vadd.f32 %v1886_v41, %v6414_v36  ;;  %v1976_v6 = vadd.f32 %v1975_v42, %v6416_v4  ;;  %v1991_v60 = vadd.f32 %v1990_v3, %v6417_v29  ;;  %v6418_v45 = vld [vmem:[#allocation141_spill] sm:$0xff]  ;;  %v6419_v58 = vld [vmem:[#allocation142_spill] sm:$0xff]  ;;  %v6420_v9 = vld [vmem:[#allocation143_spill] sm:$0xff] }
 0x22a   :  { %v1902_v49 = vadd.f32 %v1901_v13, %v6418_v45  ;;  %v1917_v56 = vadd.f32 %v1916_v47, %v6419_v58  ;;  %v1932_v38 = vadd.f32 %v1931_v53, %v6420_v9  ;;  %v6421_v14 = vld [vmem:[#allocation144_spill] sm:$0xff]  ;;  %v6422_v48 = vld [vmem:[#allocation145_spill] sm:$0xff]  ;;  %v6423_v37 = vld [vmem:[#allocation146_spill] sm:$0xff] }
 0x22b   :  { %v1947_v34 = vadd.f32 %v1946_v23, %v6421_v14  ;;  %v1888_v31 = vadd.f32 %v1887_v43, %v4987_v16  ;;  %v1962_v57 = vadd.f32 %v1961_v32, %v6422_v48  ;;  %v1977_v41 = vadd.f32 %v1976_v6, %v6423_v37  ;;  %v6424_v0 = vld [vmem:[#allocation148_spill] sm:$0xff]  ;;  %v6425_v35 = vld [vmem:[#allocation149_spill] sm:$0xff]  ;;  %v6426_v46 = vld [vmem:[#allocation150_spill] sm:$0xff] }
 0x22c   :  { %v1992_v51 = vadd.f32 %v1991_v60, %v6424_v0  ;;  %v1903_v42 = vadd.f32 %v1902_v49, %v6425_v35  ;;  %v1918_v3 = vadd.f32 %v1917_v56, %v6426_v46  ;;  %v1933_v13 = vadd.f32 %v1932_v38, %v4999_v54  ;;  %v6427_v36 = vld [vmem:[#allocation151_spill] sm:$0xff]  ;;  %v6428_v59 = vld [vmem:[#allocation152_spill] sm:$0xff]  ;;  %v6429_v4 = vld [vmem:[#allocation153_spill] sm:$0xff] }
 0x22d   :  { %v1948_v47 = vadd.f32 %v1947_v34, %v6427_v36  ;;  %v1889_v53 = vadd.f32 %v1888_v31, %v5019_v10  ;;  %v1963_v23 = vadd.f32 %v1962_v57, %v6428_v59  ;;  %v1978_v16 = vadd.f32 %v1977_v41, %v6429_v4  ;;  %v6430_v43 = vld [vmem:[#allocation154_spill] sm:$0xff]  ;;  %v6431_v29 = vld [vmem:[#allocation155_spill] sm:$0xff]  ;;  %v6432_v45 = vld [vmem:[#allocation157_spill] sm:$0xff] }
 0x22e   :  { %v1993_v32 = vadd.f32 %v1992_v51, %v6430_v43  ;;  %v1904_v6 = vadd.f32 %v1903_v42, %v6431_v29  ;;  %v1919_v60 = vadd.f32 %v1918_v3, %v6432_v45  ;;  %v6433_v58 = vld [vmem:[#allocation158_spill] sm:$0xff]  ;;  %v6434_v9 = vld [vmem:[#allocation159_spill] sm:$0xff]  ;;  %v6435_v38 = vld [vmem:[#allocation160_spill] sm:$0xff] }
 0x22f   :  { %v1934_v49 = vadd.f32 %v1933_v13, %v6433_v58  ;;  %v1949_v56 = vadd.f32 %v1948_v47, %v6434_v9  ;;  %v1890_v54 = vadd.f32 %v1889_v53, %v5051_v12  ;;  %v1964_v14 = vadd.f32 %v1963_v23, %v6435_v38  ;;  %v6436_v34 = vld [vmem:[#allocation161_spill] sm:$0xff]  ;;  %v6437_v57 = vld [vmem:[#allocation162_spill] sm:$0xff]  ;;  %v1878_v36 = vld [vmem:[%s5355_s2 + $0x38] sm:$0xff] }
 0x230   :  { %v1979_v10 = vadd.f32 %v1978_v16, %v6436_v34  ;;  %v1994_v31 = vadd.f32 %v1993_v32, %v5047_v40  ;;  %v1905_v48 = vadd.f32 %v1904_v6, %v5055_v15  ;;  %v1920_v37 = vadd.f32 %v1919_v60, %v6437_v57  ;;  %v1877_v13 = vld [vmem:[%s5355_s2 + $0x30] sm:$0xff]  ;;  %v6438_v47 = vld [vmem:[#allocation163_spill] sm:$0xff]  ;;  %v6439_v59 = vld [vmem:[#allocation164_spill] sm:$0xff] }
 0x231   :  { %v1935_v41 = vadd.f32 %v1934_v49, %v5063_v27  ;;  %v1950_v0 = vadd.f32 %v1949_v56, %v5067_v33  ;;  %v1891_v51 = vadd.f32 %v1890_v54, %v5083_v28  ;;  %v1965_v35 = vadd.f32 %v1964_v14, %v5071_v61 }
 0x232   :  { %v1980_v12 = vadd.f32 %v1979_v10, %v5075_v8  ;;  %v1995_v42 = vadd.f32 %v1994_v31, %v5079_v52  ;;  %v1906_v46 = vadd.f32 %v1905_v48, %v5087_v1  ;;  %v1921_v40 = vadd.f32 %v1920_v37, %v5091_v5  ;;  %v1871_v8 = vld [vmem:[%s5355_s2] sm:$0xff]  ;;  %v1872_v52 = vld [vmem:[%s5355_s2 + $0x8] sm:$0xff] }
 0x233   :  { %v1936_v15 = vadd.f32 %v1935_v41, %v5095_v62  ;;  %v1951_v3 = vadd.f32 %v1950_v0, %v5099_v21  ;;  %v1892_v27 = vadd.f32 %v1891_v51, %v5115_v17  ;;  %v1966_v33 = vadd.f32 %v1965_v35, %v5103_v20  ;;  %v1873_v20 = vld [vmem:[%s5355_s2 + $0x10] sm:$0xff] }
 0x234   :  { %v1981_v28 = vadd.f32 %v1980_v12, %v5107_v30  ;;  %v1996_v61 = vadd.f32 %v1995_v42, %v5111_v63  ;;  %v1907_v1 = vadd.f32 %v1906_v46, %v5119_v26  ;;  %v1922_v5 = vadd.f32 %v1921_v40, %v5123_v25  ;;  %v1874_v30 = vld [vmem:[%s5355_s2 + $0x18] sm:$0xff]  ;;  %v1875_v63 = vld [vmem:[%s5355_s2 + $0x20] sm:$0xff] }
 0x235   :  { %v1937_v62 = vadd.f32 %v1936_v15, %v5127_v2  ;;  %v1952_v21 = vadd.f32 %v1951_v3, %v5131_v7  ;;  %v1893_v17 = vadd.f32 %v1892_v27, %v5147_v19  ;;  %v1967_v26 = vadd.f32 %v1966_v33, %v5135_v24  ;;  %v1876_v7 = vld [vmem:[%s5355_s2 + $0x28] sm:$0xff] }
 0x236   :  { %v1982_v25 = vadd.f32 %v1981_v28, %v5139_v39  ;;  %v1997_v2 = vadd.f32 %v1996_v61, %v5143_v11  ;;  %v1908_v19 = vadd.f32 %v1907_v1, %v5151_v44  ;;  %v1923_v24 = vadd.f32 %v1922_v5, %v5155_v50 }
 0x237   :  { %v1938_v39 = vadd.f32 %v1937_v62, %v6438_v47  ;;  %v1953_v11 = vadd.f32 %v1952_v21, %v5163_v22  ;;  %v1968_v53 = vadd.f32 %v1967_v26, %v5167_v55  ;;  %v1999_v16 = vadd.f32 %v1893_v17, %v1871_v8 }
 0x238   :  { %v1983_v23 = vadd.f32 %v1982_v25, %v6439_v59  ;;  %v1998_v4 = vadd.f32 %v1997_v2, %v5175_v18  ;;  %v2000_v43 = vadd.f32 %v1908_v19, %v1872_v52  ;;  %v2001_v32 = vadd.f32 %v1923_v24, %v1873_v20 }
 0x239   :  { %v2002_v29 = vadd.f32 %v1938_v39, %v1874_v30  ;;  %v2003_v6 = vadd.f32 %v1953_v11, %v1875_v63  ;;  %v2004_v45 = vadd.f32 %v1968_v53, %v1876_v7  ;;  %2007 = vst [vmem:[%s5355_s2] sm:$0xff] %v1999_v16 }
 0x23a   :  { %v2005_v60 = vadd.f32 %v1983_v23, %v1877_v13  ;;  %v2006_v44 = vadd.f32 %v1998_v4, %v1878_v36  ;;  %2008 = vst [vmem:[%s5355_s2 + $0x8] sm:$0xff] %v2000_v43  ;;  %2009 = vst [vmem:[%s5355_s2 + $0x10] sm:$0xff] %v2001_v32 }
 0x23b   :  { %2010 = vst [vmem:[%s5355_s2 + $0x18] sm:$0xff] %v2002_v29  ;;  %2011 = vst [vmem:[%s5355_s2 + $0x20] sm:$0xff] %v2003_v6 }
 0x23c   :  { %2012 = vst [vmem:[%s5355_s2 + $0x28] sm:$0xff] %v2004_v45  ;;  %2013 = vst [vmem:[%s5355_s2 + $0x30] sm:$0xff] %v2005_v60 }
 0x23d   :  { %2014 = vst [vmem:[%s5355_s2 + $0x38] sm:$0xff] %v2006_v44 }
 0x23e   :  { %2019 = vsyncpa [#allocation3], 1 }
 0x23f   :  { %2020 = vsyncpa [#allocation5], 1 }

</bundles_post_ra>
